<compile_context>
chip_gen: v7x
topology: tpu7x:2x2x1
jax: 0.10.0
libtpu: 0.0.40
codegen_flags: <defaults>
</compile_context>

<pallas_src>
import functools

import jax
import jax.numpy as jnp
from jax.experimental import pallas as pl
from jax.experimental.pallas import tpu as pltpu


# ----------------------------------------------------------------------------
# Kernel 1: fused conv1 + ReLU -> conv2 (im2col GEMM) + ReLU -> global avg pool
# ----------------------------------------------------------------------------
def _backbone_pool_kernel(xcat_ref, w1_ref, w2_ref, b1_ref, b2_ref, pool_ref,
                          c1_ref, *, tile_h, H, W, c1, c2, rpc):
    # xcat_ref: (1, H+4, W+2, 3*Cin) bf16  input with conv1's width taps packed
    #           into the channel dim (built once in the wrapper); resident per n.
    # w1_ref  : (3, 3*Cin, c1) bf16   conv1 weights, one (3*Cin, c1) GEMM per kh
    # w2_ref  : (9*c1, c2)     bf16   conv2 weights in im2col layout
    # b1_ref  : (1, c1) f32 ; b2_ref: (1, c2) f32
    # pool_ref: (1, 1, c2) f32        accumulated, then averaged, pooled features
    # c1_ref  : (tile_h+2, W+2, c1) f32 VMEM scratch: conv1 tile + zero halo
    t = pl.program_id(1)
    th = tile_h + 2            # conv1 rows needed by this tile (1-row halo)
    wp = W + 2                 # conv1 cols incl. the zero halo for conv2

    @pl.when(t == 0)
    def _init():
        pool_ref[...] = jnp.zeros_like(pool_ref)

    # ---------------- conv1 + bias + ReLU into VMEM scratch -----------------
    start = pl.multiple_of(t * tile_h, tile_h)
    xw = xcat_ref[0, pl.ds(start, tile_h + 4), :, :]    # (tile_h+4, W+2, 3*Cin)
    w1_taps = [w1_ref[kh] for kh in range(3)]           # hoisted weight loads
    b1 = b1_ref[...]
    ci = jax.lax.broadcasted_iota(jnp.int32, (wp, 1), 0)
    col_ok = (ci >= 1) & (ci <= W)                      # zero the halo columns
    for lr in range(th):                                # static, small loop
        acc = jnp.zeros((wp, c1), jnp.float32)
        for kh in range(3):
            acc = acc + jnp.dot(xw[lr + kh], w1_taps[kh],
                                preferred_element_type=jnp.float32)
        acc = jnp.maximum(acc + b1, 0.0)
        g = t * tile_h - 1 + lr                         # global conv1 row
        ok = col_ok & (g >= 0) & (g < H)                # zero the halo rows too
        c1_ref[lr] = jnp.where(ok, acc, 0.0)

    # ------ conv2: single im2col GEMM (K = 9*c1) per M-chunk + pool sum ------
    w2m = w2_ref[...]
    b2 = b2_ref[...]
    psum = jnp.zeros((1, c2), jnp.float32)
    for r0 in range(0, tile_h, rpc):                    # static M-chunking
        mc = rpc * W
        taps = [c1_ref[r0 + kh:r0 + kh + rpc, kw:kw + W, :].reshape(mc, c1)
                for kh in range(3) for kw in range(3)]
        patch = jnp.concatenate(taps, axis=1)           # (mc, 9*c1) f32
        out = jnp.dot(patch.astype(jnp.bfloat16), w2m,
                      preferred_element_type=jnp.float32)
        out = jnp.maximum(out + b2, 0.0)
        psum = psum + jnp.sum(out, axis=0, keepdims=True)
    pool_ref[...] += psum.reshape(1, 1, c2)

    @pl.when(t == pl.num_programs(1) - 1)
    def _finalize():                                    # sum -> mean
        pool_ref[...] = pool_ref[...] * (1.0 / float(H * W))


def _pick_tile_h(H, max_tile=8):
    for th in range(min(H, max_tile), 0, -1):
        if H % th == 0:
            return th
    return 1


def backbone_avgpool(xcat, w1_kh, w2_mat, b1, b2, *, H, W, tile_h):
    """xcat: (N, H+4, W+2, 3*Cin) bf16 -> pooled features (N, c2) f32."""
    N = xcat.shape[0]
    ccat = xcat.shape[-1]
    c1 = w1_kh.shape[-1]
    c2 = w2_mat.shape[-1]
    n_tiles = H // tile_h
    # M-chunk of the conv2 GEMM: keep (rpc*W, c2) f32 chunk small; fall back to
    # one row per chunk when W is not sublane-aligned.
    rpc = 1 if (W % 8 != 0) else max(1, min(tile_h, 128 // max(1, W)))
    while tile_h % rpc != 0:
        rpc -= 1

    kernel = functools.partial(_backbone_pool_kernel, tile_h=tile_h, H=H, W=W,
                               c1=c1, c2=c2, rpc=rpc)

    # Explicit VMEM budget: double-buffered blocks + weights + scratch + temps.
    in_blk = (H + 4) * (W + 2) * ccat * 2
    w_bytes = 9 * ccat // 3 * 0 + w1_kh.size * 2 + w2_mat.size * 2 + (c1 + c2) * 4
    out_blk = c2 * 4
    scratch = (tile_h + 2) * (W + 2) * c1 * 4
    tmp = (tile_h + 4) * (W + 2) * ccat * 2 + rpc * W * (9 * c1 * 6 + c2 * 4)
    est = 2 * in_blk + 2 * w_bytes + 2 * out_blk + scratch + tmp
    vmem_bytes = int(min(64 * 2**20, max(32 * 2**20, est + (8 << 20))))

    pooled = pl.pallas_call(
        kernel,
        out_shape=jax.ShapeDtypeStruct((N, 1, c2), jnp.float32),
        grid_spec=pltpu.PrefetchScalarGridSpec(
            num_scalar_prefetch=0,
            grid=(N, n_tiles),
            in_specs=[
                pl.BlockSpec((1, H + 4, W + 2, ccat), lambda n, t: (n, 0, 0, 0)),
                pl.BlockSpec((3, w1_kh.shape[1], c1), lambda n, t: (0, 0, 0)),
                pl.BlockSpec((9 * c1, c2), lambda n, t: (0, 0)),
                pl.BlockSpec((1, c1), lambda n, t: (0, 0)),
                pl.BlockSpec((1, c2), lambda n, t: (0, 0)),
            ],
            out_specs=pl.BlockSpec((1, 1, c2), lambda n, t: (n, 0, 0)),
            scratch_shapes=[pltpu.VMEM((tile_h + 2, W + 2, c1), jnp.float32)],
        ),
        compiler_params=pltpu.CompilerParams(
            dimension_semantics=("parallel", "arbitrary"),
            vmem_limit_bytes=vmem_bytes),
    )(xcat, w1_kh, w2_mat, b1, b2)
    return pooled.reshape(N, c2)


# ----------------------------------------------------------------------------
# Kernel 2: head = dropout + Linear(fc_node, out_size) on (N, fc_node) features
# ----------------------------------------------------------------------------
def _head_kernel(x_ref, w_ref, b_ref, seed_ref, o_ref, *, p, training):
    x = x_ref[...]                                     # (N, C) f32 pooled feats
    if training and p > 0.0:
        # inverted dropout, matching nn.Dropout in training mode.
        # TODO(synk): caller must vary `seed` per training step for fresh masks.
        pltpu.prng_seed(seed_ref[0])
        if p >= 1.0:
            x = jnp.zeros_like(x)
        else:
            bits = pltpu.bitcast(pltpu.prng_random_bits(x.shape), jnp.uint32)
            thresh = jnp.uint32(min(int(p * 4294967296.0), 4294967295))
            keep = (bits >= thresh).astype(jnp.float32)
            x = x * keep * (1.0 / (1.0 - p))
    out = jnp.dot(x.astype(jnp.bfloat16), w_ref[...],
                  preferred_element_type=jnp.float32) + b_ref[...]
    o_ref[...] = out.astype(o_ref.dtype)


def head(pooled, w_t, b_row, seed, *, p, training):
    N, _ = pooled.shape
    out_size = w_t.shape[1]
    kernel = functools.partial(_head_kernel, p=p, training=training)
    return pl.pallas_call(
        kernel,
        out_shape=jax.ShapeDtypeStruct((N, out_size), jnp.float32),
        in_specs=[
            pl.BlockSpec(memory_space=pltpu.MemorySpace.VMEM),
            pl.BlockSpec(memory_space=pltpu.MemorySpace.VMEM),
            pl.BlockSpec(memory_space=pltpu.MemorySpace.VMEM),
            pl.BlockSpec(memory_space=pltpu.MemorySpace.SMEM),
        ],
        out_specs=pl.BlockSpec(memory_space=pltpu.MemorySpace.VMEM),
    )(pooled, w_t, b_row, seed)


# ----------------------------------------------------------------------------
# ImgSubNet in JAX + Pallas
# ----------------------------------------------------------------------------
class ImgSubNetPallas:
    def __init__(self, out_size, dropout, key, *, in_channels=3, c1=128,
                 fc_node=512):
        self.p = float(dropout)
        self.fc_node = fc_node
        self.in_channels = in_channels
        self.cin_pad = max(8, ((in_channels + 7) // 8) * 8)
        k1, k2, k3 = jax.random.split(key, 3)

        w1 = jax.random.normal(k1, (3, 3, in_channels, c1), jnp.float32)
        w1 = w1 * (1.0 / jnp.sqrt(9.0 * in_channels))
        w1p = jnp.zeros((3, 3, self.cin_pad, c1), jnp.float32)
        w1p = w1p.at[:, :, :in_channels, :].set(w1)
        # NOTE: if weights are ever loaded from a checkpoint, the zero padding
        # of the extra input channels must be re-applied.
        self.w1_full = w1p.astype(jnp.bfloat16)                   # (3,3,Cin,c1)
        self.w1_kh = self.w1_full.reshape(3, 3 * self.cin_pad, c1)
        self.b1 = jnp.zeros((1, c1), jnp.float32)

        w2 = jax.random.normal(k2, (3, 3, c1, fc_node), jnp.float32)
        w2 = w2 * (1.0 / jnp.sqrt(9.0 * c1))
        self.w2_full = w2.astype(jnp.bfloat16)                    # (3,3,c1,fc)
        self.w2_mat = self.w2_full.reshape(9 * c1, fc_node)       # im2col layout
        self.b2 = jnp.zeros((1, fc_node), jnp.float32)

        # nn.Linear(fc_node, out_size): weight (out_size, fc_node), bias (out,)
        wl = jax.random.normal(k3, (out_size, fc_node), jnp.float32)
        wl = wl * (1.0 / jnp.sqrt(float(fc_node)))
        self.w_lin_t = wl.T.astype(jnp.bfloat16)      # pre-transposed (fc, out)
        self.b_lin = jnp.zeros((out_size,), jnp.float32)
        self.b_lin_row = self.b_lin[None, :]

    def __call__(self, x_nchw, *, training=False, seed=0):
        # x_nchw: (N, C, H, W) like the PyTorch module
        x = jnp.transpose(x_nchw, (0, 2, 3, 1)).astype(jnp.float32)   # -> NHWC
        N, H, W, C = x.shape
        xp2 = jnp.pad(x, ((0, 0), (2, 2), (2, 2), (0, self.cin_pad - C)))
        # Pre-pack conv1's 3 width taps into the channel dim (cheap: the raw
        # input has few channels) so conv1 needs no in-kernel gather/reshape.
        xcat = jnp.concatenate(
            [xp2[:, :, kw:kw + W + 2, :] for kw in range(3)],
            axis=-1).astype(jnp.bfloat16)            # (N, H+4, W+2, 3*Cin)
        tile_h = _pick_tile_h(H)
        pooled = backbone_avgpool(xcat, self.w1_kh, self.w2_mat, self.b1,
                                  self.b2, H=H, W=W, tile_h=tile_h)  # (N, fc)
        return head(pooled, self.w_lin_t, self.b_lin_row,
                    jnp.array([seed], jnp.int32),
                    p=self.p, training=training)     # (N, out_size)

    # plain-JAX reference of the same (synthetic-backbone, bf16-MXU) forward
    def reference(self, x_nchw):
        x = jnp.transpose(x_nchw, (0, 2, 3, 1)).astype(jnp.float32)
        C = x.shape[-1]
        x = jnp.pad(x, ((0, 0), (0, 0), (0, 0), (0, self.cin_pad - C)))
        x = x.astype(jnp.bfloat16)
        dn = ('NHWC', 'HWIO', 'NHWC')
        h = jax.lax.conv_general_dilated(x, self.w1_full, (1, 1), 'SAME',
                                         dimension_numbers=dn,
                                         preferred_element_type=jnp.float32)
        h = jnp.maximum(h + self.b1, 0.0).astype(jnp.bfloat16)
        h = jax.lax.conv_general_dilated(h, self.w2_full, (1, 1), 'SAME',
                                         dimension_numbers=dn,
                                         preferred_element_type=jnp.float32)
        h = jnp.maximum(h + self.b2, 0.0)
        pooled = jnp.mean(h, axis=(1, 2))            # avgpool(1) + flatten
        out = jnp.dot(pooled.astype(jnp.bfloat16), self.w_lin_t,
                      preferred_element_type=jnp.float32) + self.b_lin_row
        return out                                   # dropout is identity (eval)


if __name__ == "__main__":
    key = jax.random.PRNGKey(0)
    k_in, k_par = jax.random.split(key)

    batch, in_ch, spatial, out_size = 2, 3, 16, 8
    x = jax.random.normal(k_in, (batch, in_ch, spatial, spatial), jnp.float32)

    net = ImgSubNetPallas(out_size=out_size, dropout=0.5, key=k_par)

    out = net(x, training=False, seed=0)       # eval mode: dropout = identity
    out = jax.block_until_ready(out)

    ref = net.reference(x)
    assert out.shape == (batch, out_size)
    assert jnp.allclose(out, ref, rtol=1e-2, atol=1e-2), (
        "mismatch vs. plain-JAX reference")

    print("KERNEL_OK")
</pallas_src>

<mosaic_0001>
module attributes {stable_mosaic.version = 11 : i64} {
  func.func @_backbone_pool_kernel(%arg0: i32, %arg1: i32, %arg2: memref<1x20x18x24xbf16, #tpu.memory_space<vmem>>, %arg3: memref<3x24x128xbf16, #tpu.memory_space<vmem>>, %arg4: memref<1152x512xbf16, #tpu.memory_space<vmem>>, %arg5: memref<1x128xf32, #tpu.memory_space<vmem>>, %arg6: memref<1x512xf32, #tpu.memory_space<vmem>>, %arg7: memref<1x1x512xf32, #tpu.memory_space<vmem>>, %arg8: memref<10x18x128xf32, #tpu.memory_space<vmem>>) attributes {dimension_semantics = [#tpu.dimension_semantics<parallel>, #tpu.dimension_semantics<arbitrary>], iteration_bounds = array<i64: 2, 2>, scalar_prefetch = 0 : i64, scratch_operands = 1 : i64, tpu.core_type = #tpu.core_type<tc>, window_params = [{transform_indices = @transform_0, window_bounds = array<i64: 1, 20, 18, 24>}, {pipeline_mode = #tpu.pipeline_mode<synchronous>, transform_indices = @transform_1, window_bounds = array<i64: 3, 24, 128>}, {pipeline_mode = #tpu.pipeline_mode<synchronous>, transform_indices = @transform_2, window_bounds = array<i64: 1152, 512>}, {pipeline_mode = #tpu.pipeline_mode<synchronous>, transform_indices = @transform_3, window_bounds = array<i64: 1, 128>}, {pipeline_mode = #tpu.pipeline_mode<synchronous>, transform_indices = @transform_4, window_bounds = array<i64: 1, 512>}, {transform_indices = @transform_5, window_bounds = array<i64: 1, 1, 512>}]} {
    %c0_i32 = arith.constant 0 : i32
    %0 = arith.cmpi eq, %arg1, %c0_i32 : i32
    %1 = arith.extui %0 : i1 to i32
    %c0_i32_0 = arith.constant 0 : i32
    %2 = arith.cmpi ne, %1, %c0_i32_0 : i32
    scf.if %2 {
      %cst_180 = arith.constant 0.000000e+00 : f32
      %389 = vector.broadcast %cst_180 : f32 to vector<1x1x512xf32>
      %c0_181 = arith.constant 0 : index
      %c0_182 = arith.constant 0 : index
      %c0_183 = arith.constant 0 : index
      %390 = vector.load %arg7[%c0_181, %c0_182, %c0_183] : memref<1x1x512xf32, #tpu.memory_space<vmem>>, vector<1x1x512xf32>
      tpu.vector_store %arg7[%c0_181, %c0_182, %c0_183], %389 {strides = array<i32>} : memref<1x1x512xf32, #tpu.memory_space<vmem>>, vector<1x1x512xf32>,
    } else {
    }
    %c8_i32 = arith.constant 8 : i32
    %3 = arith.muli %arg1, %c8_i32 : i32
    %4 = tpu.assume_multiple %3, 8 : i32
    %c0 = arith.constant 0 : index
    %5 = arith.index_cast %4 : i32 to index
    %c0_1 = arith.constant 0 : index
    %c0_2 = arith.constant 0 : index
    %6 = vector.load %arg2[%c0, %5, %c0_1, %c0_2] : memref<1x20x18x24xbf16, #tpu.memory_space<vmem>>, vector<1x12x18x24xbf16>
    %7 = vector.shape_cast %6 : vector<1x12x18x24xbf16> to vector<12x18x24xbf16>
    %c0_3 = arith.constant 0 : index
    %c0_4 = arith.constant 0 : index
    %c0_5 = arith.constant 0 : index
    %8 = vector.load %arg3[%c0_3, %c0_4, %c0_5] : memref<3x24x128xbf16, #tpu.memory_space<vmem>>, vector<1x24x128xbf16>
    %9 = vector.shape_cast %8 : vector<1x24x128xbf16> to vector<24x128xbf16>
    %c1 = arith.constant 1 : index
    %c0_6 = arith.constant 0 : index
    %c0_7 = arith.constant 0 : index
    %10 = vector.load %arg3[%c1, %c0_6, %c0_7] : memref<3x24x128xbf16, #tpu.memory_space<vmem>>, vector<1x24x128xbf16>
    %11 = vector.shape_cast %10 : vector<1x24x128xbf16> to vector<24x128xbf16>
    %c2 = arith.constant 2 : index
    %c0_8 = arith.constant 0 : index
    %c0_9 = arith.constant 0 : index
    %12 = vector.load %arg3[%c2, %c0_8, %c0_9] : memref<3x24x128xbf16, #tpu.memory_space<vmem>>, vector<1x24x128xbf16>
    %13 = vector.shape_cast %12 : vector<1x24x128xbf16> to vector<24x128xbf16>
    %c0_10 = arith.constant 0 : index
    %c0_11 = arith.constant 0 : index
    %14 = vector.load %arg5[%c0_10, %c0_11] : memref<1x128xf32, #tpu.memory_space<vmem>>, vector<1x128xf32>
    %15 = tpu.iota {dimensions = array<i32: 0>} : vector<18x1xi32>
    %c1_i32 = arith.constant 1 : i32
    %16 = vector.broadcast %c1_i32 : i32 to vector<18x1xi32>
    %17 = arith.cmpi sge, %15, %16 : vector<18x1xi32>
    %c16_i32 = arith.constant 16 : i32
    %18 = vector.broadcast %c16_i32 : i32 to vector<18x1xi32>
    %19 = arith.cmpi sle, %15, %18 : vector<18x1xi32>
    %20 = arith.andi %17, %19 : vector<18x1xi1>
    %cst = arith.constant 0.000000e+00 : f32
    %21 = vector.broadcast %cst : f32 to vector<18x128xf32>
    %22 = vector.extract_strided_slice %7 {offsets = [0, 0, 0], sizes = [1, 18, 24], strides = [1, 1, 1]} : vector<12x18x24xbf16> to vector<1x18x24xbf16>
    %23 = vector.shape_cast %22 : vector<1x18x24xbf16> to vector<18x24xbf16>
    %cst_12 = arith.constant dense<0.000000e+00> : vector<18x128xf32>
    %24 = tpu.matmul %23, %9, %cst_12 {dimension_numbers = #tpu.dot_dimension_numbers<[1], [0], [0], [1], [0, 0, 1, 1], [], []>} : vector<18x24xbf16>, vector<24x128xbf16>, vector<18x128xf32> -> vector<18x128xf32>
    %25 = arith.addf %21, %24 : vector<18x128xf32>
    %26 = vector.extract_strided_slice %7 {offsets = [1, 0, 0], sizes = [1, 18, 24], strides = [1, 1, 1]} : vector<12x18x24xbf16> to vector<1x18x24xbf16>
    %27 = vector.shape_cast %26 : vector<1x18x24xbf16> to vector<18x24xbf16>
    %cst_13 = arith.constant dense<0.000000e+00> : vector<18x128xf32>
    %28 = tpu.matmul %27, %11, %cst_13 {dimension_numbers = #tpu.dot_dimension_numbers<[1], [0], [0], [1], [0, 0, 1, 1], [], []>} : vector<18x24xbf16>, vector<24x128xbf16>, vector<18x128xf32> -> vector<18x128xf32>
    %29 = arith.addf %25, %28 : vector<18x128xf32>
    %30 = vector.extract_strided_slice %7 {offsets = [2, 0, 0], sizes = [1, 18, 24], strides = [1, 1, 1]} : vector<12x18x24xbf16> to vector<1x18x24xbf16>
    %31 = vector.shape_cast %30 : vector<1x18x24xbf16> to vector<18x24xbf16>
    %cst_14 = arith.constant dense<0.000000e+00> : vector<18x128xf32>
    %32 = tpu.matmul %31, %13, %cst_14 {dimension_numbers = #tpu.dot_dimension_numbers<[1], [0], [0], [1], [0, 0, 1, 1], [], []>} : vector<18x24xbf16>, vector<24x128xbf16>, vector<18x128xf32> -> vector<18x128xf32>
    %33 = arith.addf %29, %32 : vector<18x128xf32>
    %34 = vector.broadcast %14 : vector<1x128xf32> to vector<18x128xf32>
    %35 = arith.addf %33, %34 : vector<18x128xf32>
    %cst_15 = arith.constant 0.000000e+00 : f32
    %36 = vector.broadcast %cst_15 : f32 to vector<18x128xf32>
    %37 = arith.maximumf %35, %36 : vector<18x128xf32>
    %c8_i32_16 = arith.constant 8 : i32
    %38 = arith.muli %arg1, %c8_i32_16 : i32
    %c1_i32_17 = arith.constant 1 : i32
    %39 = arith.subi %38, %c1_i32_17 : i32
    %c0_i32_18 = arith.constant 0 : i32
    %40 = arith.addi %39, %c0_i32_18 : i32
    %c0_i32_19 = arith.constant 0 : i32
    %41 = arith.cmpi sge, %40, %c0_i32_19 : i32
    %42 = vector.broadcast %41 : i1 to vector<18x1xi1>
    %43 = arith.andi %20, %42 : vector<18x1xi1>
    %c16_i32_20 = arith.constant 16 : i32
    %44 = arith.cmpi slt, %40, %c16_i32_20 : i32
    %45 = vector.broadcast %44 : i1 to vector<18x1xi1>
    %46 = arith.andi %43, %45 : vector<18x1xi1>
    %cst_21 = arith.constant 0.000000e+00 : f32
    %47 = vector.shape_cast %46 : vector<18x1xi1> to vector<18x1xi1>
    %48 = vector.broadcast %47 : vector<18x1xi1> to vector<18x128xi1>
    %49 = vector.broadcast %cst_21 : f32 to vector<18x128xf32>
    %50 = arith.select %48, %37, %49 : vector<18x128xi1>, vector<18x128xf32>
    %c0_22 = arith.constant 0 : index
    %c0_23 = arith.constant 0 : index
    %c0_24 = arith.constant 0 : index
    %51 = vector.load %arg8[%c0_22, %c0_23, %c0_24] : memref<10x18x128xf32, #tpu.memory_space<vmem>>, vector<1x18x128xf32>
    %52 = vector.shape_cast %51 : vector<1x18x128xf32> to vector<18x128xf32>
    %53 = vector.shape_cast %50 : vector<18x128xf32> to vector<1x18x128xf32>
    tpu.vector_store %arg8[%c0_22, %c0_23, %c0_24], %53 {strides = array<i32>} : memref<10x18x128xf32, #tpu.memory_space<vmem>>, vector<1x18x128xf32>,
    %cst_25 = arith.constant 0.000000e+00 : f32
    %54 = vector.broadcast %cst_25 : f32 to vector<18x128xf32>
    %55 = vector.extract_strided_slice %7 {offsets = [1, 0, 0], sizes = [1, 18, 24], strides = [1, 1, 1]} : vector<12x18x24xbf16> to vector<1x18x24xbf16>
    %56 = vector.shape_cast %55 : vector<1x18x24xbf16> to vector<18x24xbf16>
    %cst_26 = arith.constant dense<0.000000e+00> : vector<18x128xf32>
    %57 = tpu.matmul %56, %9, %cst_26 {dimension_numbers = #tpu.dot_dimension_numbers<[1], [0], [0], [1], [0, 0, 1, 1], [], []>} : vector<18x24xbf16>, vector<24x128xbf16>, vector<18x128xf32> -> vector<18x128xf32>
    %58 = arith.addf %54, %57 : vector<18x128xf32>
    %59 = vector.extract_strided_slice %7 {offsets = [2, 0, 0], sizes = [1, 18, 24], strides = [1, 1, 1]} : vector<12x18x24xbf16> to vector<1x18x24xbf16>
    %60 = vector.shape_cast %59 : vector<1x18x24xbf16> to vector<18x24xbf16>
    %cst_27 = arith.constant dense<0.000000e+00> : vector<18x128xf32>
    %61 = tpu.matmul %60, %11, %cst_27 {dimension_numbers = #tpu.dot_dimension_numbers<[1], [0], [0], [1], [0, 0, 1, 1], [], []>} : vector<18x24xbf16>, vector<24x128xbf16>, vector<18x128xf32> -> vector<18x128xf32>
    %62 = arith.addf %58, %61 : vector<18x128xf32>
    %63 = vector.extract_strided_slice %7 {offsets = [3, 0, 0], sizes = [1, 18, 24], strides = [1, 1, 1]} : vector<12x18x24xbf16> to vector<1x18x24xbf16>
    %64 = vector.shape_cast %63 : vector<1x18x24xbf16> to vector<18x24xbf16>
    %cst_28 = arith.constant dense<0.000000e+00> : vector<18x128xf32>
    %65 = tpu.matmul %64, %13, %cst_28 {dimension_numbers = #tpu.dot_dimension_numbers<[1], [0], [0], [1], [0, 0, 1, 1], [], []>} : vector<18x24xbf16>, vector<24x128xbf16>, vector<18x128xf32> -> vector<18x128xf32>
    %66 = arith.addf %62, %65 : vector<18x128xf32>
    %67 = vector.broadcast %14 : vector<1x128xf32> to vector<18x128xf32>
    %68 = arith.addf %66, %67 : vector<18x128xf32>
    %cst_29 = arith.constant 0.000000e+00 : f32
    %69 = vector.broadcast %cst_29 : f32 to vector<18x128xf32>
    %70 = arith.maximumf %68, %69 : vector<18x128xf32>
    %c8_i32_30 = arith.constant 8 : i32
    %71 = arith.muli %arg1, %c8_i32_30 : i32
    %c1_i32_31 = arith.constant 1 : i32
    %72 = arith.subi %71, %c1_i32_31 : i32
    %c1_i32_32 = arith.constant 1 : i32
    %73 = arith.addi %72, %c1_i32_32 : i32
    %c0_i32_33 = arith.constant 0 : i32
    %74 = arith.cmpi sge, %73, %c0_i32_33 : i32
    %75 = vector.broadcast %74 : i1 to vector<18x1xi1>
    %76 = arith.andi %20, %75 : vector<18x1xi1>
    %c16_i32_34 = arith.constant 16 : i32
    %77 = arith.cmpi slt, %73, %c16_i32_34 : i32
    %78 = vector.broadcast %77 : i1 to vector<18x1xi1>
    %79 = arith.andi %76, %78 : vector<18x1xi1>
    %cst_35 = arith.constant 0.000000e+00 : f32
    %80 = vector.shape_cast %79 : vector<18x1xi1> to vector<18x1xi1>
    %81 = vector.broadcast %80 : vector<18x1xi1> to vector<18x128xi1>
    %82 = vector.broadcast %cst_35 : f32 to vector<18x128xf32>
    %83 = arith.select %81, %70, %82 : vector<18x128xi1>, vector<18x128xf32>
    %c1_36 = arith.constant 1 : index
    %c0_37 = arith.constant 0 : index
    %c0_38 = arith.constant 0 : index
    %84 = vector.load %arg8[%c1_36, %c0_37, %c0_38] : memref<10x18x128xf32, #tpu.memory_space<vmem>>, vector<1x18x128xf32>
    %85 = vector.shape_cast %84 : vector<1x18x128xf32> to vector<18x128xf32>
    %86 = vector.shape_cast %83 : vector<18x128xf32> to vector<1x18x128xf32>
    tpu.vector_store %arg8[%c1_36, %c0_37, %c0_38], %86 {strides = array<i32>} : memref<10x18x128xf32, #tpu.memory_space<vmem>>, vector<1x18x128xf32>,
    %cst_39 = arith.constant 0.000000e+00 : f32
    %87 = vector.broadcast %cst_39 : f32 to vector<18x128xf32>
    %88 = vector.extract_strided_slice %7 {offsets = [2, 0, 0], sizes = [1, 18, 24], strides = [1, 1, 1]} : vector<12x18x24xbf16> to vector<1x18x24xbf16>
    %89 = vector.shape_cast %88 : vector<1x18x24xbf16> to vector<18x24xbf16>
    %cst_40 = arith.constant dense<0.000000e+00> : vector<18x128xf32>
    %90 = tpu.matmul %89, %9, %cst_40 {dimension_numbers = #tpu.dot_dimension_numbers<[1], [0], [0], [1], [0, 0, 1, 1], [], []>} : vector<18x24xbf16>, vector<24x128xbf16>, vector<18x128xf32> -> vector<18x128xf32>
    %91 = arith.addf %87, %90 : vector<18x128xf32>
    %92 = vector.extract_strided_slice %7 {offsets = [3, 0, 0], sizes = [1, 18, 24], strides = [1, 1, 1]} : vector<12x18x24xbf16> to vector<1x18x24xbf16>
    %93 = vector.shape_cast %92 : vector<1x18x24xbf16> to vector<18x24xbf16>
    %cst_41 = arith.constant dense<0.000000e+00> : vector<18x128xf32>
    %94 = tpu.matmul %93, %11, %cst_41 {dimension_numbers = #tpu.dot_dimension_numbers<[1], [0], [0], [1], [0, 0, 1, 1], [], []>} : vector<18x24xbf16>, vector<24x128xbf16>, vector<18x128xf32> -> vector<18x128xf32>
    %95 = arith.addf %91, %94 : vector<18x128xf32>
    %96 = vector.extract_strided_slice %7 {offsets = [4, 0, 0], sizes = [1, 18, 24], strides = [1, 1, 1]} : vector<12x18x24xbf16> to vector<1x18x24xbf16>
    %97 = vector.shape_cast %96 : vector<1x18x24xbf16> to vector<18x24xbf16>
    %cst_42 = arith.constant dense<0.000000e+00> : vector<18x128xf32>
    %98 = tpu.matmul %97, %13, %cst_42 {dimension_numbers = #tpu.dot_dimension_numbers<[1], [0], [0], [1], [0, 0, 1, 1], [], []>} : vector<18x24xbf16>, vector<24x128xbf16>, vector<18x128xf32> -> vector<18x128xf32>
    %99 = arith.addf %95, %98 : vector<18x128xf32>
    %100 = vector.broadcast %14 : vector<1x128xf32> to vector<18x128xf32>
    %101 = arith.addf %99, %100 : vector<18x128xf32>
    %cst_43 = arith.constant 0.000000e+00 : f32
    %102 = vector.broadcast %cst_43 : f32 to vector<18x128xf32>
    %103 = arith.maximumf %101, %102 : vector<18x128xf32>
    %c8_i32_44 = arith.constant 8 : i32
    %104 = arith.muli %arg1, %c8_i32_44 : i32
    %c1_i32_45 = arith.constant 1 : i32
    %105 = arith.subi %104, %c1_i32_45 : i32
    %c2_i32 = arith.constant 2 : i32
    %106 = arith.addi %105, %c2_i32 : i32
    %c0_i32_46 = arith.constant 0 : i32
    %107 = arith.cmpi sge, %106, %c0_i32_46 : i32
    %108 = vector.broadcast %107 : i1 to vector<18x1xi1>
    %109 = arith.andi %20, %108 : vector<18x1xi1>
    %c16_i32_47 = arith.constant 16 : i32
    %110 = arith.cmpi slt, %106, %c16_i32_47 : i32
    %111 = vector.broadcast %110 : i1 to vector<18x1xi1>
    %112 = arith.andi %109, %111 : vector<18x1xi1>
    %cst_48 = arith.constant 0.000000e+00 : f32
    %113 = vector.shape_cast %112 : vector<18x1xi1> to vector<18x1xi1>
    %114 = vector.broadcast %113 : vector<18x1xi1> to vector<18x128xi1>
    %115 = vector.broadcast %cst_48 : f32 to vector<18x128xf32>
    %116 = arith.select %114, %103, %115 : vector<18x128xi1>, vector<18x128xf32>
    %c2_49 = arith.constant 2 : index
    %c0_50 = arith.constant 0 : index
    %c0_51 = arith.constant 0 : index
    %117 = vector.load %arg8[%c2_49, %c0_50, %c0_51] : memref<10x18x128xf32, #tpu.memory_space<vmem>>, vector<1x18x128xf32>
    %118 = vector.shape_cast %117 : vector<1x18x128xf32> to vector<18x128xf32>
    %119 = vector.shape_cast %116 : vector<18x128xf32> to vector<1x18x128xf32>
    tpu.vector_store %arg8[%c2_49, %c0_50, %c0_51], %119 {strides = array<i32>} : memref<10x18x128xf32, #tpu.memory_space<vmem>>, vector<1x18x128xf32>,
    %cst_52 = arith.constant 0.000000e+00 : f32
    %120 = vector.broadcast %cst_52 : f32 to vector<18x128xf32>
    %121 = vector.extract_strided_slice %7 {offsets = [3, 0, 0], sizes = [1, 18, 24], strides = [1, 1, 1]} : vector<12x18x24xbf16> to vector<1x18x24xbf16>
    %122 = vector.shape_cast %121 : vector<1x18x24xbf16> to vector<18x24xbf16>
    %cst_53 = arith.constant dense<0.000000e+00> : vector<18x128xf32>
    %123 = tpu.matmul %122, %9, %cst_53 {dimension_numbers = #tpu.dot_dimension_numbers<[1], [0], [0], [1], [0, 0, 1, 1], [], []>} : vector<18x24xbf16>, vector<24x128xbf16>, vector<18x128xf32> -> vector<18x128xf32>
    %124 = arith.addf %120, %123 : vector<18x128xf32>
    %125 = vector.extract_strided_slice %7 {offsets = [4, 0, 0], sizes = [1, 18, 24], strides = [1, 1, 1]} : vector<12x18x24xbf16> to vector<1x18x24xbf16>
    %126 = vector.shape_cast %125 : vector<1x18x24xbf16> to vector<18x24xbf16>
    %cst_54 = arith.constant dense<0.000000e+00> : vector<18x128xf32>
    %127 = tpu.matmul %126, %11, %cst_54 {dimension_numbers = #tpu.dot_dimension_numbers<[1], [0], [0], [1], [0, 0, 1, 1], [], []>} : vector<18x24xbf16>, vector<24x128xbf16>, vector<18x128xf32> -> vector<18x128xf32>
    %128 = arith.addf %124, %127 : vector<18x128xf32>
    %129 = vector.extract_strided_slice %7 {offsets = [5, 0, 0], sizes = [1, 18, 24], strides = [1, 1, 1]} : vector<12x18x24xbf16> to vector<1x18x24xbf16>
    %130 = vector.shape_cast %129 : vector<1x18x24xbf16> to vector<18x24xbf16>
    %cst_55 = arith.constant dense<0.000000e+00> : vector<18x128xf32>
    %131 = tpu.matmul %130, %13, %cst_55 {dimension_numbers = #tpu.dot_dimension_numbers<[1], [0], [0], [1], [0, 0, 1, 1], [], []>} : vector<18x24xbf16>, vector<24x128xbf16>, vector<18x128xf32> -> vector<18x128xf32>
    %132 = arith.addf %128, %131 : vector<18x128xf32>
    %133 = vector.broadcast %14 : vector<1x128xf32> to vector<18x128xf32>
    %134 = arith.addf %132, %133 : vector<18x128xf32>
    %cst_56 = arith.constant 0.000000e+00 : f32
    %135 = vector.broadcast %cst_56 : f32 to vector<18x128xf32>
    %136 = arith.maximumf %134, %135 : vector<18x128xf32>
    %c8_i32_57 = arith.constant 8 : i32
    %137 = arith.muli %arg1, %c8_i32_57 : i32
    %c1_i32_58 = arith.constant 1 : i32
    %138 = arith.subi %137, %c1_i32_58 : i32
    %c3_i32 = arith.constant 3 : i32
    %139 = arith.addi %138, %c3_i32 : i32
    %c0_i32_59 = arith.constant 0 : i32
    %140 = arith.cmpi sge, %139, %c0_i32_59 : i32
    %141 = vector.broadcast %140 : i1 to vector<18x1xi1>
    %142 = arith.andi %20, %141 : vector<18x1xi1>
    %c16_i32_60 = arith.constant 16 : i32
    %143 = arith.cmpi slt, %139, %c16_i32_60 : i32
    %144 = vector.broadcast %143 : i1 to vector<18x1xi1>
    %145 = arith.andi %142, %144 : vector<18x1xi1>
    %cst_61 = arith.constant 0.000000e+00 : f32
    %146 = vector.shape_cast %145 : vector<18x1xi1> to vector<18x1xi1>
    %147 = vector.broadcast %146 : vector<18x1xi1> to vector<18x128xi1>
    %148 = vector.broadcast %cst_61 : f32 to vector<18x128xf32>
    %149 = arith.select %147, %136, %148 : vector<18x128xi1>, vector<18x128xf32>
    %c3 = arith.constant 3 : index
    %c0_62 = arith.constant 0 : index
    %c0_63 = arith.constant 0 : index
    %150 = vector.load %arg8[%c3, %c0_62, %c0_63] : memref<10x18x128xf32, #tpu.memory_space<vmem>>, vector<1x18x128xf32>
    %151 = vector.shape_cast %150 : vector<1x18x128xf32> to vector<18x128xf32>
    %152 = vector.shape_cast %149 : vector<18x128xf32> to vector<1x18x128xf32>
    tpu.vector_store %arg8[%c3, %c0_62, %c0_63], %152 {strides = array<i32>} : memref<10x18x128xf32, #tpu.memory_space<vmem>>, vector<1x18x128xf32>,
    %cst_64 = arith.constant 0.000000e+00 : f32
    %153 = vector.broadcast %cst_64 : f32 to vector<18x128xf32>
    %154 = vector.extract_strided_slice %7 {offsets = [4, 0, 0], sizes = [1, 18, 24], strides = [1, 1, 1]} : vector<12x18x24xbf16> to vector<1x18x24xbf16>
    %155 = vector.shape_cast %154 : vector<1x18x24xbf16> to vector<18x24xbf16>
    %cst_65 = arith.constant dense<0.000000e+00> : vector<18x128xf32>
    %156 = tpu.matmul %155, %9, %cst_65 {dimension_numbers = #tpu.dot_dimension_numbers<[1], [0], [0], [1], [0, 0, 1, 1], [], []>} : vector<18x24xbf16>, vector<24x128xbf16>, vector<18x128xf32> -> vector<18x128xf32>
    %157 = arith.addf %153, %156 : vector<18x128xf32>
    %158 = vector.extract_strided_slice %7 {offsets = [5, 0, 0], sizes = [1, 18, 24], strides = [1, 1, 1]} : vector<12x18x24xbf16> to vector<1x18x24xbf16>
    %159 = vector.shape_cast %158 : vector<1x18x24xbf16> to vector<18x24xbf16>
    %cst_66 = arith.constant dense<0.000000e+00> : vector<18x128xf32>
    %160 = tpu.matmul %159, %11, %cst_66 {dimension_numbers = #tpu.dot_dimension_numbers<[1], [0], [0], [1], [0, 0, 1, 1], [], []>} : vector<18x24xbf16>, vector<24x128xbf16>, vector<18x128xf32> -> vector<18x128xf32>
    %161 = arith.addf %157, %160 : vector<18x128xf32>
    %162 = vector.extract_strided_slice %7 {offsets = [6, 0, 0], sizes = [1, 18, 24], strides = [1, 1, 1]} : vector<12x18x24xbf16> to vector<1x18x24xbf16>
    %163 = vector.shape_cast %162 : vector<1x18x24xbf16> to vector<18x24xbf16>
    %cst_67 = arith.constant dense<0.000000e+00> : vector<18x128xf32>
    %164 = tpu.matmul %163, %13, %cst_67 {dimension_numbers = #tpu.dot_dimension_numbers<[1], [0], [0], [1], [0, 0, 1, 1], [], []>} : vector<18x24xbf16>, vector<24x128xbf16>, vector<18x128xf32> -> vector<18x128xf32>
    %165 = arith.addf %161, %164 : vector<18x128xf32>
    %166 = vector.broadcast %14 : vector<1x128xf32> to vector<18x128xf32>
    %167 = arith.addf %165, %166 : vector<18x128xf32>
    %cst_68 = arith.constant 0.000000e+00 : f32
    %168 = vector.broadcast %cst_68 : f32 to vector<18x128xf32>
    %169 = arith.maximumf %167, %168 : vector<18x128xf32>
    %c8_i32_69 = arith.constant 8 : i32
    %170 = arith.muli %arg1, %c8_i32_69 : i32
    %c1_i32_70 = arith.constant 1 : i32
    %171 = arith.subi %170, %c1_i32_70 : i32
    %c4_i32 = arith.constant 4 : i32
    %172 = arith.addi %171, %c4_i32 : i32
    %c0_i32_71 = arith.constant 0 : i32
    %173 = arith.cmpi sge, %172, %c0_i32_71 : i32
    %174 = vector.broadcast %173 : i1 to vector<18x1xi1>
    %175 = arith.andi %20, %174 : vector<18x1xi1>
    %c16_i32_72 = arith.constant 16 : i32
    %176 = arith.cmpi slt, %172, %c16_i32_72 : i32
    %177 = vector.broadcast %176 : i1 to vector<18x1xi1>
    %178 = arith.andi %175, %177 : vector<18x1xi1>
    %cst_73 = arith.constant 0.000000e+00 : f32
    %179 = vector.shape_cast %178 : vector<18x1xi1> to vector<18x1xi1>
    %180 = vector.broadcast %179 : vector<18x1xi1> to vector<18x128xi1>
    %181 = vector.broadcast %cst_73 : f32 to vector<18x128xf32>
    %182 = arith.select %180, %169, %181 : vector<18x128xi1>, vector<18x128xf32>
    %c4 = arith.constant 4 : index
    %c0_74 = arith.constant 0 : index
    %c0_75 = arith.constant 0 : index
    %183 = vector.load %arg8[%c4, %c0_74, %c0_75] : memref<10x18x128xf32, #tpu.memory_space<vmem>>, vector<1x18x128xf32>
    %184 = vector.shape_cast %183 : vector<1x18x128xf32> to vector<18x128xf32>
    %185 = vector.shape_cast %182 : vector<18x128xf32> to vector<1x18x128xf32>
    tpu.vector_store %arg8[%c4, %c0_74, %c0_75], %185 {strides = array<i32>} : memref<10x18x128xf32, #tpu.memory_space<vmem>>, vector<1x18x128xf32>,
    %cst_76 = arith.constant 0.000000e+00 : f32
    %186 = vector.broadcast %cst_76 : f32 to vector<18x128xf32>
    %187 = vector.extract_strided_slice %7 {offsets = [5, 0, 0], sizes = [1, 18, 24], strides = [1, 1, 1]} : vector<12x18x24xbf16> to vector<1x18x24xbf16>
    %188 = vector.shape_cast %187 : vector<1x18x24xbf16> to vector<18x24xbf16>
    %cst_77 = arith.constant dense<0.000000e+00> : vector<18x128xf32>
    %189 = tpu.matmul %188, %9, %cst_77 {dimension_numbers = #tpu.dot_dimension_numbers<[1], [0], [0], [1], [0, 0, 1, 1], [], []>} : vector<18x24xbf16>, vector<24x128xbf16>, vector<18x128xf32> -> vector<18x128xf32>
    %190 = arith.addf %186, %189 : vector<18x128xf32>
    %191 = vector.extract_strided_slice %7 {offsets = [6, 0, 0], sizes = [1, 18, 24], strides = [1, 1, 1]} : vector<12x18x24xbf16> to vector<1x18x24xbf16>
    %192 = vector.shape_cast %191 : vector<1x18x24xbf16> to vector<18x24xbf16>
    %cst_78 = arith.constant dense<0.000000e+00> : vector<18x128xf32>
    %193 = tpu.matmul %192, %11, %cst_78 {dimension_numbers = #tpu.dot_dimension_numbers<[1], [0], [0], [1], [0, 0, 1, 1], [], []>} : vector<18x24xbf16>, vector<24x128xbf16>, vector<18x128xf32> -> vector<18x128xf32>
    %194 = arith.addf %190, %193 : vector<18x128xf32>
    %195 = vector.extract_strided_slice %7 {offsets = [7, 0, 0], sizes = [1, 18, 24], strides = [1, 1, 1]} : vector<12x18x24xbf16> to vector<1x18x24xbf16>
    %196 = vector.shape_cast %195 : vector<1x18x24xbf16> to vector<18x24xbf16>
    %cst_79 = arith.constant dense<0.000000e+00> : vector<18x128xf32>
    %197 = tpu.matmul %196, %13, %cst_79 {dimension_numbers = #tpu.dot_dimension_numbers<[1], [0], [0], [1], [0, 0, 1, 1], [], []>} : vector<18x24xbf16>, vector<24x128xbf16>, vector<18x128xf32> -> vector<18x128xf32>
    %198 = arith.addf %194, %197 : vector<18x128xf32>
    %199 = vector.broadcast %14 : vector<1x128xf32> to vector<18x128xf32>
    %200 = arith.addf %198, %199 : vector<18x128xf32>
    %cst_80 = arith.constant 0.000000e+00 : f32
    %201 = vector.broadcast %cst_80 : f32 to vector<18x128xf32>
    %202 = arith.maximumf %200, %201 : vector<18x128xf32>
    %c8_i32_81 = arith.constant 8 : i32
    %203 = arith.muli %arg1, %c8_i32_81 : i32
    %c1_i32_82 = arith.constant 1 : i32
    %204 = arith.subi %203, %c1_i32_82 : i32
    %c5_i32 = arith.constant 5 : i32
    %205 = arith.addi %204, %c5_i32 : i32
    %c0_i32_83 = arith.constant 0 : i32
    %206 = arith.cmpi sge, %205, %c0_i32_83 : i32
    %207 = vector.broadcast %206 : i1 to vector<18x1xi1>
    %208 = arith.andi %20, %207 : vector<18x1xi1>
    %c16_i32_84 = arith.constant 16 : i32
    %209 = arith.cmpi slt, %205, %c16_i32_84 : i32
    %210 = vector.broadcast %209 : i1 to vector<18x1xi1>
    %211 = arith.andi %208, %210 : vector<18x1xi1>
    %cst_85 = arith.constant 0.000000e+00 : f32
    %212 = vector.shape_cast %211 : vector<18x1xi1> to vector<18x1xi1>
    %213 = vector.broadcast %212 : vector<18x1xi1> to vector<18x128xi1>
    %214 = vector.broadcast %cst_85 : f32 to vector<18x128xf32>
    %215 = arith.select %213, %202, %214 : vector<18x128xi1>, vector<18x128xf32>
    %c5 = arith.constant 5 : index
    %c0_86 = arith.constant 0 : index
    %c0_87 = arith.constant 0 : index
    %216 = vector.load %arg8[%c5, %c0_86, %c0_87] : memref<10x18x128xf32, #tpu.memory_space<vmem>>, vector<1x18x128xf32>
    %217 = vector.shape_cast %216 : vector<1x18x128xf32> to vector<18x128xf32>
    %218 = vector.shape_cast %215 : vector<18x128xf32> to vector<1x18x128xf32>
    tpu.vector_store %arg8[%c5, %c0_86, %c0_87], %218 {strides = array<i32>} : memref<10x18x128xf32, #tpu.memory_space<vmem>>, vector<1x18x128xf32>,
    %cst_88 = arith.constant 0.000000e+00 : f32
    %219 = vector.broadcast %cst_88 : f32 to vector<18x128xf32>
    %220 = vector.extract_strided_slice %7 {offsets = [6, 0, 0], sizes = [1, 18, 24], strides = [1, 1, 1]} : vector<12x18x24xbf16> to vector<1x18x24xbf16>
    %221 = vector.shape_cast %220 : vector<1x18x24xbf16> to vector<18x24xbf16>
    %cst_89 = arith.constant dense<0.000000e+00> : vector<18x128xf32>
    %222 = tpu.matmul %221, %9, %cst_89 {dimension_numbers = #tpu.dot_dimension_numbers<[1], [0], [0], [1], [0, 0, 1, 1], [], []>} : vector<18x24xbf16>, vector<24x128xbf16>, vector<18x128xf32> -> vector<18x128xf32>
    %223 = arith.addf %219, %222 : vector<18x128xf32>
    %224 = vector.extract_strided_slice %7 {offsets = [7, 0, 0], sizes = [1, 18, 24], strides = [1, 1, 1]} : vector<12x18x24xbf16> to vector<1x18x24xbf16>
    %225 = vector.shape_cast %224 : vector<1x18x24xbf16> to vector<18x24xbf16>
    %cst_90 = arith.constant dense<0.000000e+00> : vector<18x128xf32>
    %226 = tpu.matmul %225, %11, %cst_90 {dimension_numbers = #tpu.dot_dimension_numbers<[1], [0], [0], [1], [0, 0, 1, 1], [], []>} : vector<18x24xbf16>, vector<24x128xbf16>, vector<18x128xf32> -> vector<18x128xf32>
    %227 = arith.addf %223, %226 : vector<18x128xf32>
    %228 = vector.extract_strided_slice %7 {offsets = [8, 0, 0], sizes = [1, 18, 24], strides = [1, 1, 1]} : vector<12x18x24xbf16> to vector<1x18x24xbf16>
    %229 = vector.shape_cast %228 : vector<1x18x24xbf16> to vector<18x24xbf16>
    %cst_91 = arith.constant dense<0.000000e+00> : vector<18x128xf32>
    %230 = tpu.matmul %229, %13, %cst_91 {dimension_numbers = #tpu.dot_dimension_numbers<[1], [0], [0], [1], [0, 0, 1, 1], [], []>} : vector<18x24xbf16>, vector<24x128xbf16>, vector<18x128xf32> -> vector<18x128xf32>
    %231 = arith.addf %227, %230 : vector<18x128xf32>
    %232 = vector.broadcast %14 : vector<1x128xf32> to vector<18x128xf32>
    %233 = arith.addf %231, %232 : vector<18x128xf32>
    %cst_92 = arith.constant 0.000000e+00 : f32
    %234 = vector.broadcast %cst_92 : f32 to vector<18x128xf32>
    %235 = arith.maximumf %233, %234 : vector<18x128xf32>
    %c8_i32_93 = arith.constant 8 : i32
    %236 = arith.muli %arg1, %c8_i32_93 : i32
    %c1_i32_94 = arith.constant 1 : i32
    %237 = arith.subi %236, %c1_i32_94 : i32
    %c6_i32 = arith.constant 6 : i32
    %238 = arith.addi %237, %c6_i32 : i32
    %c0_i32_95 = arith.constant 0 : i32
    %239 = arith.cmpi sge, %238, %c0_i32_95 : i32
    %240 = vector.broadcast %239 : i1 to vector<18x1xi1>
    %241 = arith.andi %20, %240 : vector<18x1xi1>
    %c16_i32_96 = arith.constant 16 : i32
    %242 = arith.cmpi slt, %238, %c16_i32_96 : i32
    %243 = vector.broadcast %242 : i1 to vector<18x1xi1>
    %244 = arith.andi %241, %243 : vector<18x1xi1>
    %cst_97 = arith.constant 0.000000e+00 : f32
    %245 = vector.shape_cast %244 : vector<18x1xi1> to vector<18x1xi1>
    %246 = vector.broadcast %245 : vector<18x1xi1> to vector<18x128xi1>
    %247 = vector.broadcast %cst_97 : f32 to vector<18x128xf32>
    %248 = arith.select %246, %235, %247 : vector<18x128xi1>, vector<18x128xf32>
    %c6 = arith.constant 6 : index
    %c0_98 = arith.constant 0 : index
    %c0_99 = arith.constant 0 : index
    %249 = vector.load %arg8[%c6, %c0_98, %c0_99] : memref<10x18x128xf32, #tpu.memory_space<vmem>>, vector<1x18x128xf32>
    %250 = vector.shape_cast %249 : vector<1x18x128xf32> to vector<18x128xf32>
    %251 = vector.shape_cast %248 : vector<18x128xf32> to vector<1x18x128xf32>
    tpu.vector_store %arg8[%c6, %c0_98, %c0_99], %251 {strides = array<i32>} : memref<10x18x128xf32, #tpu.memory_space<vmem>>, vector<1x18x128xf32>,
    %cst_100 = arith.constant 0.000000e+00 : f32
    %252 = vector.broadcast %cst_100 : f32 to vector<18x128xf32>
    %253 = vector.extract_strided_slice %7 {offsets = [7, 0, 0], sizes = [1, 18, 24], strides = [1, 1, 1]} : vector<12x18x24xbf16> to vector<1x18x24xbf16>
    %254 = vector.shape_cast %253 : vector<1x18x24xbf16> to vector<18x24xbf16>
    %cst_101 = arith.constant dense<0.000000e+00> : vector<18x128xf32>
    %255 = tpu.matmul %254, %9, %cst_101 {dimension_numbers = #tpu.dot_dimension_numbers<[1], [0], [0], [1], [0, 0, 1, 1], [], []>} : vector<18x24xbf16>, vector<24x128xbf16>, vector<18x128xf32> -> vector<18x128xf32>
    %256 = arith.addf %252, %255 : vector<18x128xf32>
    %257 = vector.extract_strided_slice %7 {offsets = [8, 0, 0], sizes = [1, 18, 24], strides = [1, 1, 1]} : vector<12x18x24xbf16> to vector<1x18x24xbf16>
    %258 = vector.shape_cast %257 : vector<1x18x24xbf16> to vector<18x24xbf16>
    %cst_102 = arith.constant dense<0.000000e+00> : vector<18x128xf32>
    %259 = tpu.matmul %258, %11, %cst_102 {dimension_numbers = #tpu.dot_dimension_numbers<[1], [0], [0], [1], [0, 0, 1, 1], [], []>} : vector<18x24xbf16>, vector<24x128xbf16>, vector<18x128xf32> -> vector<18x128xf32>
    %260 = arith.addf %256, %259 : vector<18x128xf32>
    %261 = vector.extract_strided_slice %7 {offsets = [9, 0, 0], sizes = [1, 18, 24], strides = [1, 1, 1]} : vector<12x18x24xbf16> to vector<1x18x24xbf16>
    %262 = vector.shape_cast %261 : vector<1x18x24xbf16> to vector<18x24xbf16>
    %cst_103 = arith.constant dense<0.000000e+00> : vector<18x128xf32>
    %263 = tpu.matmul %262, %13, %cst_103 {dimension_numbers = #tpu.dot_dimension_numbers<[1], [0], [0], [1], [0, 0, 1, 1], [], []>} : vector<18x24xbf16>, vector<24x128xbf16>, vector<18x128xf32> -> vector<18x128xf32>
    %264 = arith.addf %260, %263 : vector<18x128xf32>
    %265 = vector.broadcast %14 : vector<1x128xf32> to vector<18x128xf32>
    %266 = arith.addf %264, %265 : vector<18x128xf32>
    %cst_104 = arith.constant 0.000000e+00 : f32
    %267 = vector.broadcast %cst_104 : f32 to vector<18x128xf32>
    %268 = arith.maximumf %266, %267 : vector<18x128xf32>
    %c8_i32_105 = arith.constant 8 : i32
    %269 = arith.muli %arg1, %c8_i32_105 : i32
    %c1_i32_106 = arith.constant 1 : i32
    %270 = arith.subi %269, %c1_i32_106 : i32
    %c7_i32 = arith.constant 7 : i32
    %271 = arith.addi %270, %c7_i32 : i32
    %c0_i32_107 = arith.constant 0 : i32
    %272 = arith.cmpi sge, %271, %c0_i32_107 : i32
    %273 = vector.broadcast %272 : i1 to vector<18x1xi1>
    %274 = arith.andi %20, %273 : vector<18x1xi1>
    %c16_i32_108 = arith.constant 16 : i32
    %275 = arith.cmpi slt, %271, %c16_i32_108 : i32
    %276 = vector.broadcast %275 : i1 to vector<18x1xi1>
    %277 = arith.andi %274, %276 : vector<18x1xi1>
    %cst_109 = arith.constant 0.000000e+00 : f32
    %278 = vector.shape_cast %277 : vector<18x1xi1> to vector<18x1xi1>
    %279 = vector.broadcast %278 : vector<18x1xi1> to vector<18x128xi1>
    %280 = vector.broadcast %cst_109 : f32 to vector<18x128xf32>
    %281 = arith.select %279, %268, %280 : vector<18x128xi1>, vector<18x128xf32>
    %c7 = arith.constant 7 : index
    %c0_110 = arith.constant 0 : index
    %c0_111 = arith.constant 0 : index
    %282 = vector.load %arg8[%c7, %c0_110, %c0_111] : memref<10x18x128xf32, #tpu.memory_space<vmem>>, vector<1x18x128xf32>
    %283 = vector.shape_cast %282 : vector<1x18x128xf32> to vector<18x128xf32>
    %284 = vector.shape_cast %281 : vector<18x128xf32> to vector<1x18x128xf32>
    tpu.vector_store %arg8[%c7, %c0_110, %c0_111], %284 {strides = array<i32>} : memref<10x18x128xf32, #tpu.memory_space<vmem>>, vector<1x18x128xf32>,
    %cst_112 = arith.constant 0.000000e+00 : f32
    %285 = vector.broadcast %cst_112 : f32 to vector<18x128xf32>
    %286 = vector.extract_strided_slice %7 {offsets = [8, 0, 0], sizes = [1, 18, 24], strides = [1, 1, 1]} : vector<12x18x24xbf16> to vector<1x18x24xbf16>
    %287 = vector.shape_cast %286 : vector<1x18x24xbf16> to vector<18x24xbf16>
    %cst_113 = arith.constant dense<0.000000e+00> : vector<18x128xf32>
    %288 = tpu.matmul %287, %9, %cst_113 {dimension_numbers = #tpu.dot_dimension_numbers<[1], [0], [0], [1], [0, 0, 1, 1], [], []>} : vector<18x24xbf16>, vector<24x128xbf16>, vector<18x128xf32> -> vector<18x128xf32>
    %289 = arith.addf %285, %288 : vector<18x128xf32>
    %290 = vector.extract_strided_slice %7 {offsets = [9, 0, 0], sizes = [1, 18, 24], strides = [1, 1, 1]} : vector<12x18x24xbf16> to vector<1x18x24xbf16>
    %291 = vector.shape_cast %290 : vector<1x18x24xbf16> to vector<18x24xbf16>
    %cst_114 = arith.constant dense<0.000000e+00> : vector<18x128xf32>
    %292 = tpu.matmul %291, %11, %cst_114 {dimension_numbers = #tpu.dot_dimension_numbers<[1], [0], [0], [1], [0, 0, 1, 1], [], []>} : vector<18x24xbf16>, vector<24x128xbf16>, vector<18x128xf32> -> vector<18x128xf32>
    %293 = arith.addf %289, %292 : vector<18x128xf32>
    %294 = vector.extract_strided_slice %7 {offsets = [10, 0, 0], sizes = [1, 18, 24], strides = [1, 1, 1]} : vector<12x18x24xbf16> to vector<1x18x24xbf16>
    %295 = vector.shape_cast %294 : vector<1x18x24xbf16> to vector<18x24xbf16>
    %cst_115 = arith.constant dense<0.000000e+00> : vector<18x128xf32>
    %296 = tpu.matmul %295, %13, %cst_115 {dimension_numbers = #tpu.dot_dimension_numbers<[1], [0], [0], [1], [0, 0, 1, 1], [], []>} : vector<18x24xbf16>, vector<24x128xbf16>, vector<18x128xf32> -> vector<18x128xf32>
    %297 = arith.addf %293, %296 : vector<18x128xf32>
    %298 = vector.broadcast %14 : vector<1x128xf32> to vector<18x128xf32>
    %299 = arith.addf %297, %298 : vector<18x128xf32>
    %cst_116 = arith.constant 0.000000e+00 : f32
    %300 = vector.broadcast %cst_116 : f32 to vector<18x128xf32>
    %301 = arith.maximumf %299, %300 : vector<18x128xf32>
    %c8_i32_117 = arith.constant 8 : i32
    %302 = arith.muli %arg1, %c8_i32_117 : i32
    %c1_i32_118 = arith.constant 1 : i32
    %303 = arith.subi %302, %c1_i32_118 : i32
    %c8_i32_119 = arith.constant 8 : i32
    %304 = arith.addi %303, %c8_i32_119 : i32
    %c0_i32_120 = arith.constant 0 : i32
    %305 = arith.cmpi sge, %304, %c0_i32_120 : i32
    %306 = vector.broadcast %305 : i1 to vector<18x1xi1>
    %307 = arith.andi %20, %306 : vector<18x1xi1>
    %c16_i32_121 = arith.constant 16 : i32
    %308 = arith.cmpi slt, %304, %c16_i32_121 : i32
    %309 = vector.broadcast %308 : i1 to vector<18x1xi1>
    %310 = arith.andi %307, %309 : vector<18x1xi1>
    %cst_122 = arith.constant 0.000000e+00 : f32
    %311 = vector.shape_cast %310 : vector<18x1xi1> to vector<18x1xi1>
    %312 = vector.broadcast %311 : vector<18x1xi1> to vector<18x128xi1>
    %313 = vector.broadcast %cst_122 : f32 to vector<18x128xf32>
    %314 = arith.select %312, %301, %313 : vector<18x128xi1>, vector<18x128xf32>
    %c8 = arith.constant 8 : index
    %c0_123 = arith.constant 0 : index
    %c0_124 = arith.constant 0 : index
    %315 = vector.load %arg8[%c8, %c0_123, %c0_124] : memref<10x18x128xf32, #tpu.memory_space<vmem>>, vector<1x18x128xf32>
    %316 = vector.shape_cast %315 : vector<1x18x128xf32> to vector<18x128xf32>
    %317 = vector.shape_cast %314 : vector<18x128xf32> to vector<1x18x128xf32>
    tpu.vector_store %arg8[%c8, %c0_123, %c0_124], %317 {strides = array<i32>} : memref<10x18x128xf32, #tpu.memory_space<vmem>>, vector<1x18x128xf32>,
    %cst_125 = arith.constant 0.000000e+00 : f32
    %318 = vector.broadcast %cst_125 : f32 to vector<18x128xf32>
    %319 = vector.extract_strided_slice %7 {offsets = [9, 0, 0], sizes = [1, 18, 24], strides = [1, 1, 1]} : vector<12x18x24xbf16> to vector<1x18x24xbf16>
    %320 = vector.shape_cast %319 : vector<1x18x24xbf16> to vector<18x24xbf16>
    %cst_126 = arith.constant dense<0.000000e+00> : vector<18x128xf32>
    %321 = tpu.matmul %320, %9, %cst_126 {dimension_numbers = #tpu.dot_dimension_numbers<[1], [0], [0], [1], [0, 0, 1, 1], [], []>} : vector<18x24xbf16>, vector<24x128xbf16>, vector<18x128xf32> -> vector<18x128xf32>
    %322 = arith.addf %318, %321 : vector<18x128xf32>
    %323 = vector.extract_strided_slice %7 {offsets = [10, 0, 0], sizes = [1, 18, 24], strides = [1, 1, 1]} : vector<12x18x24xbf16> to vector<1x18x24xbf16>
    %324 = vector.shape_cast %323 : vector<1x18x24xbf16> to vector<18x24xbf16>
    %cst_127 = arith.constant dense<0.000000e+00> : vector<18x128xf32>
    %325 = tpu.matmul %324, %11, %cst_127 {dimension_numbers = #tpu.dot_dimension_numbers<[1], [0], [0], [1], [0, 0, 1, 1], [], []>} : vector<18x24xbf16>, vector<24x128xbf16>, vector<18x128xf32> -> vector<18x128xf32>
    %326 = arith.addf %322, %325 : vector<18x128xf32>
    %327 = vector.extract_strided_slice %7 {offsets = [11, 0, 0], sizes = [1, 18, 24], strides = [1, 1, 1]} : vector<12x18x24xbf16> to vector<1x18x24xbf16>
    %328 = vector.shape_cast %327 : vector<1x18x24xbf16> to vector<18x24xbf16>
    %cst_128 = arith.constant dense<0.000000e+00> : vector<18x128xf32>
    %329 = tpu.matmul %328, %13, %cst_128 {dimension_numbers = #tpu.dot_dimension_numbers<[1], [0], [0], [1], [0, 0, 1, 1], [], []>} : vector<18x24xbf16>, vector<24x128xbf16>, vector<18x128xf32> -> vector<18x128xf32>
    %330 = arith.addf %326, %329 : vector<18x128xf32>
    %331 = vector.broadcast %14 : vector<1x128xf32> to vector<18x128xf32>
    %332 = arith.addf %330, %331 : vector<18x128xf32>
    %cst_129 = arith.constant 0.000000e+00 : f32
    %333 = vector.broadcast %cst_129 : f32 to vector<18x128xf32>
    %334 = arith.maximumf %332, %333 : vector<18x128xf32>
    %c8_i32_130 = arith.constant 8 : i32
    %335 = arith.muli %arg1, %c8_i32_130 : i32
    %c1_i32_131 = arith.constant 1 : i32
    %336 = arith.subi %335, %c1_i32_131 : i32
    %c9_i32 = arith.constant 9 : i32
    %337 = arith.addi %336, %c9_i32 : i32
    %c0_i32_132 = arith.constant 0 : i32
    %338 = arith.cmpi sge, %337, %c0_i32_132 : i32
    %339 = vector.broadcast %338 : i1 to vector<18x1xi1>
    %340 = arith.andi %20, %339 : vector<18x1xi1>
    %c16_i32_133 = arith.constant 16 : i32
    %341 = arith.cmpi slt, %337, %c16_i32_133 : i32
    %342 = vector.broadcast %341 : i1 to vector<18x1xi1>
    %343 = arith.andi %340, %342 : vector<18x1xi1>
    %cst_134 = arith.constant 0.000000e+00 : f32
    %344 = vector.shape_cast %343 : vector<18x1xi1> to vector<18x1xi1>
    %345 = vector.broadcast %344 : vector<18x1xi1> to vector<18x128xi1>
    %346 = vector.broadcast %cst_134 : f32 to vector<18x128xf32>
    %347 = arith.select %345, %334, %346 : vector<18x128xi1>, vector<18x128xf32>
    %c9 = arith.constant 9 : index
    %c0_135 = arith.constant 0 : index
    %c0_136 = arith.constant 0 : index
    %348 = vector.load %arg8[%c9, %c0_135, %c0_136] : memref<10x18x128xf32, #tpu.memory_space<vmem>>, vector<1x18x128xf32>
    %349 = vector.shape_cast %348 : vector<1x18x128xf32> to vector<18x128xf32>
    %350 = vector.shape_cast %347 : vector<18x128xf32> to vector<1x18x128xf32>
    tpu.vector_store %arg8[%c9, %c0_135, %c0_136], %350 {strides = array<i32>} : memref<10x18x128xf32, #tpu.memory_space<vmem>>, vector<1x18x128xf32>,
    %c0_137 = arith.constant 0 : index
    %c0_138 = arith.constant 0 : index
    %351 = vector.load %arg4[%c0_137, %c0_138] : memref<1152x512xbf16, #tpu.memory_space<vmem>>, vector<1152x512xbf16>
    %c0_139 = arith.constant 0 : index
    %c0_140 = arith.constant 0 : index
    %352 = vector.load %arg6[%c0_139, %c0_140] : memref<1x512xf32, #tpu.memory_space<vmem>>, vector<1x512xf32>
    %cst_141 = arith.constant 0.000000e+00 : f32
    %353 = vector.broadcast %cst_141 : f32 to vector<1x512xf32>
    %c0_142 = arith.constant 0 : index
    %c0_143 = arith.constant 0 : index
    %c0_144 = arith.constant 0 : index
    %354 = vector.load %arg8[%c0_142, %c0_143, %c0_144] : memref<10x18x128xf32, #tpu.memory_space<vmem>>, vector<8x16x128xf32>
    %355 = vector.shape_cast %354 : vector<8x16x128xf32> to vector<128x128xf32>
    %c0_145 = arith.constant 0 : index
    %c1_146 = arith.constant 1 : index
    %c0_147 = arith.constant 0 : index
    %356 = vector.load %arg8[%c0_145, %c1_146, %c0_147] : memref<10x18x128xf32, #tpu.memory_space<vmem>>, vector<8x16x128xf32>
    %357 = vector.shape_cast %356 : vector<8x16x128xf32> to vector<128x128xf32>
    %c0_148 = arith.constant 0 : index
    %c2_149 = arith.constant 2 : index
    %c0_150 = arith.constant 0 : index
    %358 = vector.load %arg8[%c0_148, %c2_149, %c0_150] : memref<10x18x128xf32, #tpu.memory_space<vmem>>, vector<8x16x128xf32>
    %359 = vector.shape_cast %358 : vector<8x16x128xf32> to vector<128x128xf32>
    %c1_151 = arith.constant 1 : index
    %c0_152 = arith.constant 0 : index
    %c0_153 = arith.constant 0 : index
    %360 = vector.load %arg8[%c1_151, %c0_152, %c0_153] : memref<10x18x128xf32, #tpu.memory_space<vmem>>, vector<8x16x128xf32>
    %361 = vector.shape_cast %360 : vector<8x16x128xf32> to vector<128x128xf32>
    %c1_154 = arith.constant 1 : index
    %c1_155 = arith.constant 1 : index
    %c0_156 = arith.constant 0 : index
    %362 = vector.load %arg8[%c1_154, %c1_155, %c0_156] : memref<10x18x128xf32, #tpu.memory_space<vmem>>, vector<8x16x128xf32>
    %363 = vector.shape_cast %362 : vector<8x16x128xf32> to vector<128x128xf32>
    %c1_157 = arith.constant 1 : index
    %c2_158 = arith.constant 2 : index
    %c0_159 = arith.constant 0 : index
    %364 = vector.load %arg8[%c1_157, %c2_158, %c0_159] : memref<10x18x128xf32, #tpu.memory_space<vmem>>, vector<8x16x128xf32>
    %365 = vector.shape_cast %364 : vector<8x16x128xf32> to vector<128x128xf32>
    %c2_160 = arith.constant 2 : index
    %c0_161 = arith.constant 0 : index
    %c0_162 = arith.constant 0 : index
    %366 = vector.load %arg8[%c2_160, %c0_161, %c0_162] : memref<10x18x128xf32, #tpu.memory_space<vmem>>, vector<8x16x128xf32>
    %367 = vector.shape_cast %366 : vector<8x16x128xf32> to vector<128x128xf32>
    %c2_163 = arith.constant 2 : index
    %c1_164 = arith.constant 1 : index
    %c0_165 = arith.constant 0 : index
    %368 = vector.load %arg8[%c2_163, %c1_164, %c0_165] : memref<10x18x128xf32, #tpu.memory_space<vmem>>, vector<8x16x128xf32>
    %369 = vector.shape_cast %368 : vector<8x16x128xf32> to vector<128x128xf32>
    %c2_166 = arith.constant 2 : index
    %c2_167 = arith.constant 2 : index
    %c0_168 = arith.constant 0 : index
    %370 = vector.load %arg8[%c2_166, %c2_167, %c0_168] : memref<10x18x128xf32, #tpu.memory_space<vmem>>, vector<8x16x128xf32>
    %371 = vector.shape_cast %370 : vector<8x16x128xf32> to vector<128x128xf32>
    %372 = tpu.concatenate %355, %357, %359, %361, %363, %365, %367, %369, %371 in 1 : vector<128x128xf32>, vector<128x128xf32>, vector<128x128xf32>, vector<128x128xf32>, vector<128x128xf32>, vector<128x128xf32>, vector<128x128xf32>, vector<128x128xf32>, vector<128x128xf32> -> vector<128x1152xf32>
    %373 = arith.truncf %372 : vector<128x1152xf32> to vector<128x1152xbf16>
    %cst_169 = arith.constant dense<0.000000e+00> : vector<128x512xf32>
    %374 = tpu.matmul %373, %351, %cst_169 {dimension_numbers = #tpu.dot_dimension_numbers<[1], [0], [0], [1], [0, 0, 1, 1], [], []>} : vector<128x1152xbf16>, vector<1152x512xbf16>, vector<128x512xf32> -> vector<128x512xf32>
    %375 = vector.broadcast %352 : vector<1x512xf32> to vector<128x512xf32>
    %376 = arith.addf %374, %375 : vector<128x512xf32>
    %cst_170 = arith.constant 0.000000e+00 : f32
    %377 = vector.broadcast %cst_170 : f32 to vector<128x512xf32>
    %378 = arith.maximumf %376, %377 : vector<128x512xf32>
    %cst_171 = arith.constant dense<0.000000e+00> : vector<512xf32>
    %379 = vector.multi_reduction <add>, %378, %cst_171 [0] : vector<128x512xf32> to vector<512xf32>
    %380 = vector.shape_cast %379 : vector<512xf32> to vector<1x512xf32>
    %381 = arith.addf %353, %380 : vector<1x512xf32>
    %c0_172 = arith.constant 0 : index
    %c0_173 = arith.constant 0 : index
    %c0_174 = arith.constant 0 : index
    %382 = vector.load %arg7[%c0_172, %c0_173, %c0_174] : memref<1x1x512xf32, #tpu.memory_space<vmem>>, vector<1x1x512xf32>
    %383 = vector.shape_cast %381 : vector<1x512xf32> to vector<1x1x512xf32>
    %384 = arith.addf %382, %383 : vector<1x1x512xf32>
    %c0_175 = arith.constant 0 : index
    %c0_176 = arith.constant 0 : index
    %c0_177 = arith.constant 0 : index
    %385 = vector.load %arg7[%c0_175, %c0_176, %c0_177] : memref<1x1x512xf32, #tpu.memory_space<vmem>>, vector<1x1x512xf32>
    tpu.vector_store %arg7[%c0_175, %c0_176, %c0_177], %384 {strides = array<i32>} : memref<1x1x512xf32, #tpu.memory_space<vmem>>, vector<1x1x512xf32>,
    %c1_i32_178 = arith.constant 1 : i32
    %386 = arith.cmpi eq, %arg1, %c1_i32_178 : i32
    %387 = arith.extui %386 : i1 to i32
    %c0_i32_179 = arith.constant 0 : i32
    %388 = arith.cmpi ne, %387, %c0_i32_179 : i32
    scf.if %388 {
      %c0_180 = arith.constant 0 : index
      %c0_181 = arith.constant 0 : index
      %c0_182 = arith.constant 0 : index
      %389 = vector.load %arg7[%c0_180, %c0_181, %c0_182] : memref<1x1x512xf32, #tpu.memory_space<vmem>>, vector<1x1x512xf32>
      %cst_183 = arith.constant 3.906250e-03 : f32
      %390 = vector.broadcast %cst_183 : f32 to vector<1x1x512xf32>
      %391 = arith.mulf %389, %390 : vector<1x1x512xf32>
      %c0_184 = arith.constant 0 : index
      %c0_185 = arith.constant 0 : index
      %c0_186 = arith.constant 0 : index
      %392 = vector.load %arg7[%c0_184, %c0_185, %c0_186] : memref<1x1x512xf32, #tpu.memory_space<vmem>>, vector<1x1x512xf32>
      tpu.vector_store %arg7[%c0_184, %c0_185, %c0_186], %391 {strides = array<i32>} : memref<1x1x512xf32, #tpu.memory_space<vmem>>, vector<1x1x512xf32>,
    } else {
    }
    return
  }
  func.func @transform_0(%arg0: i32, %arg1: i32) -> (i32, i32, i32, i32) {
    %c0_i32 = arith.constant 0 : i32
    %c0_i32_0 = arith.constant 0 : i32
    %c0_i32_1 = arith.constant 0 : i32
    %c0_i32_2 = arith.constant 0 : i32
    return %arg0, %c0_i32, %c0_i32_0, %c0_i32_1 : i32, i32, i32, i32
  }
  func.func @transform_1(%arg0: i32, %arg1: i32) -> (i32, i32, i32) {
    %c0_i32 = arith.constant 0 : i32
    %c0_i32_0 = arith.constant 0 : i32
    %c0_i32_1 = arith.constant 0 : i32
    %c0_i32_2 = arith.constant 0 : i32
    return %c0_i32, %c0_i32_0, %c0_i32_1 : i32, i32, i32
  }
  func.func @transform_2(%arg0: i32, %arg1: i32) -> (i32, i32) {
    %c0_i32 = arith.constant 0 : i32
    %c0_i32_0 = arith.constant 0 : i32
    %c0_i32_1 = arith.constant 0 : i32
    return %c0_i32, %c0_i32_0 : i32, i32
  }
  func.func @transform_3(%arg0: i32, %arg1: i32) -> (i32, i32) {
    %c0_i32 = arith.constant 0 : i32
    %c0_i32_0 = arith.constant 0 : i32
    %c0_i32_1 = arith.constant 0 : i32
    return %c0_i32, %c0_i32_0 : i32, i32
  }
  func.func @transform_4(%arg0: i32, %arg1: i32) -> (i32, i32) {
    %c0_i32 = arith.constant 0 : i32
    %c0_i32_0 = arith.constant 0 : i32
    %c0_i32_1 = arith.constant 0 : i32
    return %c0_i32, %c0_i32_0 : i32, i32
  }
  func.func @transform_5(%arg0: i32, %arg1: i32) -> (i32, i32, i32) {
    %c0_i32 = arith.constant 0 : i32
    %c0_i32_0 = arith.constant 0 : i32
    %c0_i32_1 = arith.constant 0 : i32
    return %arg0, %c0_i32, %c0_i32_0 : i32, i32, i32
  }
}

</mosaic_0001>

<bundles_post_ra>
// kernel: tpu_custom_call.1
= control target key start
LH: loop header
LB: loop body
LE: loop exit
PB: predicated region body
PF: predicated region fallthrough
CT: control target
= control target key end

     0   :  { %s9389_s0 = inlined_call_operand.vmem [shape: bf16[2,20,18,24], index: 0, kind: input, shape index: {}]   ;;  %s9390_s1 = inlined_call_operand.hbm [shape: bf16[3,24,128], index: 1, kind: input, shape index: {}]   ;;  %s9391_s2 = inlined_call_operand.hbm [shape: bf16[1152,512], index: 2, kind: input, shape index: {}]   ;;  %s9392_s3 = inlined_call_operand.hbm [shape: f32[1,128], index: 3, kind: input, shape index: {}]   ;;  %s9393_s4 = inlined_call_operand.hbm [shape: f32[1,512], index: 4, kind: input, shape index: {}]   ;;  %s9394_s5 = inlined_call_operand.hbm [shape: f32[2,1,512], index: 5, kind: output, shape index: {}]  }
   0x1   :  { %9404 = sst [smem:[#allocation23_spill]] %s9391_s2 }
   0x2   :  { %10 = vsyncpa [#allocation4], 0 }
   0x3   :  { %11 = vsyncpa [#allocation7], 0 }
   0x4   :  { %12 = vsyncpa [#allocation10], 0 }
   0x5   :  { %13 = vsyncpa [#allocation5], 0 }
   0x6   :  { %15 = vsyncpa [#allocation5 + $0x1], 0  ;;  %s7862_s18 = smov 0   ;;  %s7864_s19 = smov 0  }
   0x7   :  { %s7866_s20 = smov 0   ;;  %s7868_s21 = smov 0  }
   0x8   :  { %s7870_s22 = smov 0   ;;  %s7872_s23 = smov 0  }
   0x9   :  { %s7874_s24 = smov 0   ;;  %s7876_s25 = smov 0  }
   0xa LB: > { %9405 = sst [smem:[#allocation16_spill]] %s7798_s20  ;;  %s5804_s26 = sadd.s32 4294967295, %s7818_s25   ;;  %s7818_s25 = sphi %s7876_s25, %s21_s25   ;;  %s7814_s24 = sphi %s7874_s24, %s9529_s24   ;;  %s7810_s23 = sphi %s7872_s23, %s9528_s23   ;;  %s7806_s22 = sphi %s7870_s22, %s9527_s22   ;;  %s7802_s21 = sphi %s7868_s21, %s9526_s21   ;;  %s7798_s20 = sphi %s7866_s20, %s9525_s20   ;;  %s7794_s19 = sphi %s7864_s19, %s9531_s19   ;;  %s7790_s18 = sphi %s7862_s18, %s9530_s18  }
   0xb   : > { %9406 = sst [smem:[#allocation17_spill]] %s7810_s23  ;;  %s5805_s27 = sadd.s32 4294967294, %s7818_s25  }
   0xc   : > { %9407 = sst [smem:[#allocation18_spill]] %s7814_s24  ;;  %s30_s28 = sadd.s32 1, %s7810_s23 }
   0xd   : > { %s33_s29 = sadd.s32 1, %s7814_s24  ;;  %p31_p0 = scmp.ge.s32.totalorder %s30_s28, 2 }
   0xe   : > { %s150_s30 = sadd.s32 1, %s7798_s20  ;;  %p160_p1 = scmp.ne.s32.totalorder %s7798_s20, %s7794_s19 }
   0xf   : > { %p161_p2 = scmp.eq.s32.totalorder %s5804_s26, 3  ;;  %s9533_s28 = smov (%p31_p0, %s30_s28), 0 }
  0x10   : > { %9408 = sst [smem:[#allocation19_spill]] %s9533_s28  ;;  %s9535_s29 = smov (!%p31_p0, %s33_s29), %s7814_s24 }
  0x11   : > { %p7912_p3 = por %p161_p2, %p160_p1  ;;  %p166_p4 = scmp.ne.s32.totalorder %s7794_s19, %s7790_s18 }
  0x12   : > { %p35_p5 = scmp.ge.s32.totalorder %s9535_s29, 2  ;;  %p167_p6 = scmp.eq.s32.totalorder %s5805_s27, 3 }
  0x13   : > { %s9409_s6 = scalar_select %p7912_p3, 1, 0 }
  0x14   : > { %p5806_p7 = scmp.ge.s32.totalorder %s7818_s25, 1  ;;  %p174_p8 = scmp.lt.s32.totalorder %s7818_s25, 5 }
  0x15   : > { %s9537_s29 = smov (%p35_p5, %s9535_s29), 0  ;;  %p7922_p9 = por %p167_p6, %p166_p4 }
  0x16   : > { %9410 = sst [smem:[#allocation20_spill]] %s9537_s29  ;;  %p7926_p10 = pnand %p5806_p7, %p174_p8 }
  0x17   : > { %s9411_s7 = scalar_select %p7922_p9, 1, 0 }
  0x18   : > { %s9413_s8 = scalar_select %p7926_p10, 1, 0 }
  0x19   : > { %9412 = sst [smem:[#allocation21_spill]] %s9411_s7  ;;  %s147_s9 = ssub.s32 %s7814_s24, %s9537_s29 }
  0x1a   : > { %p148_p11 = scmp.eq.s32.totalorder %s147_s9, 0  ;;  %p6940_p12 = pneg %p7926_p10 }
  0x1b   : > { %p7934_p13 = scmp.eq.s32.totalorder %s5804_s26, 0  ;;  %s7820_s13 = smov [#allocation6]  }
  0x1c   : > { %s7939_s11 = scalar_select %p148_p11, %s7798_s20, %s150_s30  }
  0x1d   : > { %s9414_s10 = scalar_select %p7934_p13, 1, 0 }
  0x1e   : > { %9415 = sst [smem:[#allocation22_spill]] %s7939_s11  ;;  %p7943_p0 = pnand %p7934_p13, %p6940_p12 }
  0x1f   : > { %s199_s14 = sshll.u32 %s7820_s13, 4  ;;  %s9417_s2 = sld [smem:[#allocation23_spill]]  ;;  %s200_s14 = int_to_ptr.vmem [resolvable:$true] %s199_s14 }
  0x20   : > { %p7955_p2 = pneg %p7943_p0 }
  0x25   : > { %s7600_s17 = scalar_lea.hbm %s9417_s2, 36864 }
  0x26   : > { %p7601_p1 = scmp.ne.s32.totalorder %s9417_s2, %s7600_s17  ;;  %p7607_p6 = scmp.lt.u32.totalorder %s7600_s17, %s9417_s2 }
  0x28   : > { %p7603_p4 = pnand %p7955_p2, %p7601_p1 }
  0x2a   : > { %p7604_p5 = pneg %p7603_p4 }
  0x2c   : > { %p7609_p7 = pnand %p7607_p6, %p7604_p5 }
  0x2e   : > { %7612 = shalt.err (!%p7609_p7)
}
  0x2f   : > { %s7613_s15 = scalar_lea.vmem %s200_s14, 36864  ;;  %p7621_p9 = scmp.lt.s32.totalorder %s200_s14, %s200_s14 }
  0x30   : > { %p7614_p8 = scmp.ne.s32.totalorder %s200_s14, %s7613_s15  ;;  %p7622_p3 = scmp.lt.s32.totalorder %s7613_s15, %s7613_s15 }
  0x32   : > { %p7616_p11 = pnand %p7614_p8, %p7955_p2  ;;  %p7623_p13 = por %p7622_p3, %p7621_p9 }
  0x34   : > { %p7617_p12 = pneg %p7616_p11 }
  0x36   : > { %p7624_p10 = pnand %p7623_p13, %p7617_p12 }
  0x38   : > { %7627 = shalt.err (!%p7624_p10)
}
  0x39   : > { %s7821_s16 = smov 256   ;;  %s7822_s26 = smov 16  }
  0x3a   : > { %6946 = dma.hbm_to_vmem [thread:$0]  (!%p7943_p0), %s9417_s2, 36864, %s200_s14, [#allocation7], %s7821_s16, %s7821_s16, %s7822_s26  }
  0x3b   : > { %s7823_s9 = smov [#allocation3]   ;;  %s7628_s24 = scalar_lea.hbm %s9390_s1, 576 }
  0x3c   : > { %s186_s13 = sshll.u32 %s7823_s9, 4  ;;  %p7629_p3 = scmp.ne.s32.totalorder %s9390_s1, %s7628_s24  ;;  %s187_s13 = int_to_ptr.vmem [resolvable:$true] %s186_s13 }
  0x3d   : > { %p7635_p13 = scmp.lt.u32.totalorder %s7628_s24, %s9390_s1 }
  0x3e   : > { %p7631_p9 = pnand %p7629_p3, %p7955_p2 }
  0x40   : > { %p7632_p10 = pneg %p7631_p9 }
  0x42   : > { %p7637_p1 = pnand %p7635_p13, %p7632_p10 }
  0x44   : > { %7640 = shalt.err (!%p7637_p1)
}
  0x45   : > { %s7641_s14 = scalar_lea.vmem %s187_s13, 576  ;;  %p7649_p7 = scmp.lt.s32.totalorder %s187_s13, %s187_s13 }
  0x46   : > { %p7642_p4 = scmp.ne.s32.totalorder %s187_s13, %s7641_s14  ;;  %p7650_p8 = scmp.lt.s32.totalorder %s7641_s14, %s7641_s14 }
  0x48   : > { %p7644_p5 = pnand %p7642_p4, %p7955_p2  ;;  %p7651_p11 = por %p7650_p8, %p7649_p7 }
  0x4a   : > { %p7645_p6 = pneg %p7644_p5 }
  0x4c   : > { %p7652_p12 = pnand %p7651_p11, %p7645_p6 }
  0x4e   : > { %7655 = shalt.err (!%p7652_p12)
}
  0x4f   : > { %s7824_s23 = smov 64   ;;  %s7825_s28 = smov 4  }
  0x50   : > { %6943 = dma.hbm_to_vmem [thread:$0]  (!%p7943_p0), %s9390_s1, 576, %s187_s13, [#allocation4], %s7824_s23, %s7824_s23, %s7825_s28  }
  0x51   : > { %s7826_s29 = smov [#allocation8]   ;;  %s7827_s16 = smov [#allocation9]  }
  0x52   : > { %s213_s11 = sshll.u32 %s7826_s29, 4  ;;  %s224_s26 = sshll.u32 %s7827_s16, 4  ;;  %s214_s11 = int_to_ptr.vmem [resolvable:$true] %s213_s11  ;;  %s225_s26 = int_to_ptr.vmem [resolvable:$true] %s224_s26 }
  0x53   : > { %s7656_s9 = scalar_lea.hbm %s9392_s3, 16 }
  0x54   : > { %p7657_p3 = scmp.ne.s32.totalorder %s9392_s3, %s7656_s9  ;;  %p7663_p13 = scmp.lt.u32.totalorder %s7656_s9, %s9392_s3 }
  0x56   : > { %p7659_p9 = pnand %p7657_p3, %p7955_p2 }
  0x58   : > { %p7660_p10 = pneg %p7659_p9 }
  0x5a   : > { %p7665_p1 = pnand %p7663_p13, %p7660_p10 }
  0x5c   : > { %7668 = shalt.err (!%p7665_p1)
}
  0x5d   : > { %s7669_s13 = scalar_lea.vmem %s214_s11, 16  ;;  %s7676_s23 = scalar_lea.vmem %s214_s11, 32 }
  0x5e   : > { %p7670_p4 = scmp.ne.s32.totalorder %s214_s11, %s7669_s13  ;;  %p7677_p7 = scmp.lt.s32.totalorder %s214_s11, %s214_s11 }
  0x5f   : > { %p7678_p8 = scmp.lt.s32.totalorder %s7676_s23, %s7669_s13 }
  0x60   : > { %p7672_p5 = pnand %p7670_p4, %p7955_p2 }
  0x61   : > { %p7679_p11 = por %p7678_p8, %p7677_p7 }
  0x62   : > { %p7673_p6 = pneg %p7672_p5 }
  0x64   : > { %p7680_p12 = pnand %p7679_p11, %p7673_p6 }
  0x66   : > { %7683 = shalt.err (!%p7680_p12)
}
  0x67   : > { %6949 = dma.hbm_to_vmem [thread:$0]  (!%p7943_p0), %s9392_s3, 16, %s214_s11, [#allocation7]  }
  0x68   : > { %s7684_s24 = scalar_lea.hbm %s9393_s4, 64 }
  0x69   : > { %p7685_p3 = scmp.ne.s32.totalorder %s9393_s4, %s7684_s24  ;;  %p7691_p13 = scmp.lt.u32.totalorder %s7684_s24, %s9393_s4 }
  0x6b   : > { %p7687_p9 = pnand %p7685_p3, %p7955_p2 }
  0x6d   : > { %p7688_p10 = pneg %p7687_p9 }
  0x6f   : > { %p7693_p1 = pnand %p7691_p13, %p7688_p10 }
  0x71   : > { %7696 = shalt.err (!%p7693_p1)
}
  0x72   : > { %s7697_s9 = scalar_lea.vmem %s225_s26, 64  ;;  %p7705_p7 = scmp.lt.s32.totalorder %s225_s26, %s225_s26 }
  0x73   : > { %p7698_p4 = scmp.ne.s32.totalorder %s225_s26, %s7697_s9  ;;  %p7706_p8 = scmp.lt.s32.totalorder %s7697_s9, %s7697_s9 }
  0x75   : > { %p7700_p5 = pnand %p7698_p4, %p7955_p2  ;;  %p7707_p11 = por %p7706_p8, %p7705_p7 }
  0x77   : > { %p7701_p6 = pneg %p7700_p5 }
  0x79   : > { %p7708_p12 = pnand %p7707_p11, %p7701_p6 }
  0x7b   : > { %7711 = shalt.err (!%p7708_p12)
}
  0x7c   : > { %6952 = dma.hbm_to_vmem [thread:$0]  (!%p7943_p0), %s9393_s4, 64, %s225_s26, [#allocation10]  }
  0x7d   : > { %p9419_p3 = scmp.ne.s32.totalorder %s9413_s8, 0 }
  0x7e   : > { %p9420_p9 = scmp.ne.s32.totalorder (!%p9419_p3), %s9414_s10, 0 }
  0x7f   : > { %245 = sbr.rel (%p9419_p3) target bundleno = 1018 (0x3fa), region = 40 }
  0x86   : > { %7773 = dma.done.wait (%p9420_p9), [#allocation4], 576  }
  0x87   : > { %7775 = vsyncadd (%p9420_p9), [#allocation4], 4294966720 }
  0x88   : > { %7777 = dma.done.wait (%p9420_p9), [#allocation7], 36880  }
  0x89   : > { %7779 = vsyncadd (%p9420_p9), [#allocation7], 4294930416 }
  0x8a   : > { %7781 = dma.done.wait (%p9420_p9), [#allocation10], 64  }
  0x8b   : > { %7783 = vsyncadd (%p9420_p9), [#allocation10], 4294967232  ;;  %s282_s8 = sand.u32 1, %s7794_s19   ;;  %p285_p0 = scmp.lt.s32.totalorder %s7806_s22, 1 }
  0x8c   : > { %s5817_s12 = sshll.u32 %s282_s8, 2  ;;  %p5819_p2 = scmp.ne.s32.totalorder %s7802_s21, 0 }
  0x8d   : > { %s286_s30 = scalar_select %p285_p0, %s7806_s22, 1 }
  0x8e   : > { %s8047_s28 = scalar_lea.vmem [#allocation11], %s5817_s12  ;;  %294 = sbr.rel (%p5819_p2) target bundleno = 149 (0x95), region = 60  ;;  %v295_v0 = vlaneseq (!%p5819_p2)  ;;  %v7828_v1 = vmov (!%p5819_p2), 0.0  }
  0x8f   : > { %s6921_s26 = smul.u32 240, %s286_s30 }
  0x90   : > { %vm297_vm0 = vcmp.lt.s32.totalorder (!%p5819_p2), %v295_v0, 512 }
  0x91   : > { %s289_s23 = scalar_lea.vmem %s9389_s0, %s6921_s26  ;;  %299 = vst.msk [vmem:[%s8047_s28] sm:$0xf] (!%p5819_p2), %vm297_vm0, %v7828_v1 }
  0x95 PF: > { %v8051_v2 = vld [vmem:[#allocation3 + $0xc] sm:$0xff]   ;;  %vm389_vm1 = vcmask 1043456   ;;  %v8053_v3 = vld [vmem:[#allocation3] sm:$0xff]   ;;  %s6209_s10 = smul.u32 96, %s7802_s21  ;;  %v8057_v4 = vld [vmem:[#allocation3 + $0x14] ss:$0 sps:$4 sm:$0xff]  }
  0x96   : > { %6331 = vmatprep.subr.bf16.mxu0 %v8051_v2  ;;  %6339 = vmatprep.subr.bf16.mxu1 %v8053_v3  ;;  %v8061_v5 = vld [vmem:[#allocation3 + $0x8] ss:$0 sps:$4 sm:$0xff]   ;;  %vm382_vm2 = vcmask 195584   ;;  %v8065_v6 = vld [vmem:[#allocation3 + $0x18] sm:$0xff]   ;;  %v8072_v7 = vsel %vm389_vm1, %v8057_v4, 0  ;;  %s8313_s2 = sshll.u32 %s7802_s21, 3 }
  0x97   : > { %6332 = vmatpush3.bf16.msra.mxu0 %v8051_v2  ;;  %s8063_s20 = scalar_lea.vmem %s289_s23, %s6209_s10  ;;  %6340 = vmatpush3.bf16.msra.mxu1 %v8053_v3  ;;  %v8079_v9 = vsel %vm389_vm1, %v8061_v5, 0  ;;  %v8090_v14 = vld [vmem:[#allocation3 + $0x20] ss:$0 sps:$4 sm:$0xff]   ;;  %v7072_v34 = vld [vmem:[#allocation6 + $0x4] ss:$16 sps:$4 sm:$0xff]   ;;  %s5842_s7 = sadd.s32 4294967295, %s8313_s2 }
  0x98   : > { %6891 = vmatprep.subr.msk.bf16.mxu0 %vm389_vm1, %v8057_v4  ;;  %v7045_v8 = vld [vmem:[%s8063_s20 + $0xc] sm:$0xff]   ;;  %6892 = vmatprep.subr.msk.bf16.mxu1 %vm389_vm1, %v8061_v5  ;;  %v7046_v10 = vld [vmem:[%s8063_s20] sm:$0xff]   ;;  %v7047_v11 = vld [vmem:[%s8063_s20 + $0x14] ss:$0 sps:$4 sm:$0x11]   ;;  %v8101_v15 = vsel %vm389_vm1, %v8090_v14, 0 }
  0x99   : > { %6335 = vmatprep.mubr.msk.bf16.mxu0 %vm382_vm2, %v7045_v8  ;;  %6343 = vmatprep.mubr.msk.bf16.mxu1 %vm382_vm2, %v7046_v10  ;;  %v7048_v12 = vld [vmem:[%s8063_s20 + $0x8] ss:$0 sps:$4 sm:$0x11]   ;;  %v7051_v13 = vld [vmem:[%s8063_s20 + $0x18] sm:$0xff]   ;;  %v7055_v19 = vld [vmem:[%s8063_s20 + $0x30] sm:$0xff]   ;;  %p8316_p10 = scmp.ge.s32.totalorder %s5842_s7, 0 }
  0x9a   : > { %v7052_v16 = vld [vmem:[%s8063_s20 + $0x20] ss:$0 sps:$4 sm:$0x11]   ;;  %v7053_v17 = vld [vmem:[%s8063_s20 + $0x24] sm:$0xff]   ;;  %v7061_v25 = vld [vmem:[%s8063_s20 + $0x54] sm:$0xff]   ;;  %p8323_p13 = scmp.lt.s32.totalorder %s5842_s7, 16 }
  0x9b   : > { %6334 = vmatpush3.bf16.msra.mxu0 %v8072_v7  ;;  %6342 = vmatpush3.bf16.msra.mxu1 %v8079_v9  ;;  %v7054_v18 = vld [vmem:[%s8063_s20 + $0x2c] ss:$0 sps:$4 sm:$0x11]   ;;  %v7056_v20 = vld [vmem:[%s8063_s20 + $0x38] ss:$0 sps:$4 sm:$0x11]  }
  0x9c   : > { %6347 = vmatprep.subr.bf16.mxu0 %v8065_v6  ;;  %6355 = vmatprep.subr.bf16.mxu1 %v8051_v2  ;;  %v7057_v21 = vld [vmem:[%s8063_s20 + $0x3c] sm:$0xff]   ;;  %v7058_v22 = vld [vmem:[%s8063_s20 + $0x44] ss:$0 sps:$4 sm:$0x11]   ;;  %v7059_v23 = vld [vmem:[%s8063_s20 + $0x48] sm:$0xff]   ;;  %p798_p1 = scmp.ge.s32.totalorder %s8313_s2, 0 }
  0x9d   : > { %v7060_v24 = vld [vmem:[%s8063_s20 + $0x50] ss:$0 sps:$4 sm:$0x11]   ;;  %v7062_v26 = vld [vmem:[%s8063_s20 + $0x5c] ss:$0 sps:$4 sm:$0x11]  }
  0x9e   : > { %6336 = vmatmul.mubr.msk.bf16.vlgmr.msra.gmra.mrb[0].mxu0 %vm382_vm2, %v7047_v11  ;;  %6344 = vmatmul.mubr.msk.bf16.vlgmr.msra.gmra.mrb[0].mxu1 %vm382_vm2, %v7048_v12  ;;  %v7063_v27 = vld [vmem:[%s8063_s20 + $0x60] sm:$0xff]   ;;  %v7064_v28 = vld [vmem:[%s8063_s20 + $0x68] ss:$0 sps:$4 sm:$0x11]   ;;  %v7065_v29 = vld [vmem:[%s8063_s20 + $0x6c] sm:$0xff]   ;;  %p805_p4 = scmp.lt.s32.totalorder %s8313_s2, 16 }
  0x9f   : > { %6348 = vmatpush3.bf16.msra.mxu0 %v8065_v6  ;;  %6356 = vmatpush3.bf16.msra.mxu1 %v8051_v2  ;;  %v7066_v30 = vld [vmem:[%s8063_s20 + $0x74] ss:$0 sps:$4 sm:$0x11]   ;;  %v7067_v31 = vld [vmem:[%s8063_s20 + $0x78] sm:$0xff]   ;;  %v7069_v33 = vld [vmem:[%s8063_s20 + $0x84] sm:$0xff]   ;;  %s992_s11 = sadd.s32 1, %s8313_s2 }
  0xa0   : > { %6893 = vmatprep.subr.msk.bf16.mxu0 %vm389_vm1, %v8090_v14  ;;  %6894 = vmatprep.subr.msk.bf16.mxu1 %vm389_vm1, %v8057_v4  ;;  %v7068_v32 = vld [vmem:[%s8063_s20 + $0x80] ss:$0 sps:$4 sm:$0x11]   ;;  %v7070_v35 = vld [vmem:[#allocation6] ss:$16 sps:$4 sm:$0xff]   ;;  %p8394_p5 = scmp.ge.s32.totalorder %s992_s11, 0 }
  0xa1   : > { %6351 = vmatprep.mubr.msk.bf16.mxu0 %vm382_vm2, %v7051_v13  ;;  %6359 = vmatprep.mubr.msk.bf16.mxu1 %vm382_vm2, %v7051_v13  ;;  %v7075_v36 = vld [vmem:[#allocation6 + $0xc] ss:$16 sps:$4 sm:$0xff]   ;;  %v7073_v37 = vld [vmem:[#allocation6 + $0x8] ss:$16 sps:$4 sm:$0xff]   ;;  %v7079_v39 = vld [vmem:[#allocation6 + $0x24] ss:$16 sps:$4 sm:$0xff]  }
  0xa2   : > { %v7076_v38 = vld [vmem:[%s8063_s20 + $0x8c] ss:$0 sps:$4 sm:$0x11]   ;;  %v7077_v40 = vld [vmem:[#allocation6 + $0x20] ss:$16 sps:$4 sm:$0xff]   ;;  %p8406_p6 = scmp.lt.s32.totalorder %s992_s11, 16 }
  0xa3   : > { %6350 = vmatpush3.bf16.msra.mxu0 %v8101_v15  ;;  %6358 = vmatpush3.bf16.msra.mxu1 %v8072_v7  ;;  %v7082_v41 = vld [vmem:[#allocation6 + $0x2c] ss:$16 sps:$4 sm:$0xff]   ;;  %v7085_v42 = vld [vmem:[#allocation6 + $0x44] ss:$16 sps:$4 sm:$0xff]   ;;  %v7080_v43 = vld [vmem:[#allocation6 + $0x28] ss:$16 sps:$4 sm:$0xff]  }
  0xa4   : > { %6363 = vmatprep.subr.bf16.mxu0 %v8053_v3  ;;  %6371 = vmatprep.subr.bf16.mxu1 %v8065_v6  ;;  %v7088_v44 = vld [vmem:[#allocation6 + $0x4c] ss:$16 sps:$4 sm:$0xff]   ;;  %v7083_v45 = vld [vmem:[#allocation6 + $0x40] ss:$16 sps:$4 sm:$0xff]   ;;  %v7091_v46 = vld [vmem:[#allocation6 + $0x64] ss:$16 sps:$4 sm:$0xff]  }
  0xa5   : > { %v7086_v47 = vld [vmem:[#allocation6 + $0x48] ss:$16 sps:$4 sm:$0xff]   ;;  %v7094_v48 = vld [vmem:[#allocation6 + $0x6c] ss:$16 sps:$4 sm:$0xff]   ;;  %v7089_v49 = vld [vmem:[#allocation6 + $0x60] ss:$16 sps:$4 sm:$0xff]  }
  0xa6   : > { %6352 = vmatmul.mubr.msk.bf16.vlgmr.msra.gmra.mrb[4].mxu0 %vm382_vm2, %v7052_v16  ;;  %6360 = vmatmul.mubr.msk.bf16.vlgmr.msra.gmra.mrb[4].mxu1 %vm382_vm2, %v7052_v16  ;;  %v7092_v50 = vld [vmem:[#allocation6 + $0x68] ss:$16 sps:$4 sm:$0xff]   ;;  %v7097_v51 = vld [vmem:[#allocation6 + $0x84] ss:$16 sps:$4 sm:$0xff]   ;;  %v7095_v52 = vld [vmem:[#allocation6 + $0x80] ss:$16 sps:$4 sm:$0xff]  }
  0xa7   : > { %6364 = vmatpush3.bf16.msra.mxu0 %v8053_v3  ;;  %6372 = vmatpush3.bf16.msra.mxu1 %v8065_v6  ;;  %v7100_v53 = vld [vmem:[#allocation6 + $0x8c] ss:$16 sps:$4 sm:$0xff]   ;;  %v7098_v54 = vld [vmem:[#allocation6 + $0x88] ss:$16 sps:$4 sm:$0xff]   ;;  %v7103_v55 = vld [vmem:[#allocation6 + $0xa4] ss:$16 sps:$4 sm:$0xff]  }
  0xa8   : > { %6895 = vmatprep.subr.msk.bf16.mxu0 %vm389_vm1, %v8061_v5  ;;  %6896 = vmatprep.subr.msk.bf16.mxu1 %vm389_vm1, %v8090_v14  ;;  %v7106_v56 = vld [vmem:[#allocation6 + $0xac] ss:$16 sps:$4 sm:$0xff]   ;;  %v7101_v57 = vld [vmem:[#allocation6 + $0xa0] ss:$16 sps:$4 sm:$0xff]   ;;  %v7109_v58 = vld [vmem:[#allocation6 + $0xc4] ss:$16 sps:$4 sm:$0xff]  }
  0xa9   : > { %6367 = vmatprep.mubr.msk.bf16.mxu0 %vm382_vm2, %v7045_v8  ;;  %6375 = vmatprep.mubr.msk.bf16.mxu1 %vm382_vm2, %v7053_v17  ;;  %v7104_v59 = vld [vmem:[#allocation6 + $0xa8] ss:$16 sps:$4 sm:$0xff]   ;;  %v7107_v60 = vld [vmem:[#allocation6 + $0xc0] ss:$16 sps:$4 sm:$0xff]   ;;  %v7112_v61 = vld [vmem:[#allocation6 + $0xcc] ss:$16 sps:$4 sm:$0xff]  }
  0xaa   : > { %v7110_v62 = vld [vmem:[#allocation6 + $0xc8] ss:$16 sps:$4 sm:$0xff]   ;;  %v7115_v63 = vld [vmem:[#allocation6 + $0xe4] ss:$16 sps:$4 sm:$0xff]   ;;  %v7113_v0 = vld [vmem:[#allocation6 + $0xe0] ss:$16 sps:$4 sm:$0xff]  }
  0xab   : > { %6366 = vmatpush3.bf16.msra.mxu0 %v8079_v9  ;;  %6374 = vmatpush3.bf16.msra.mxu1 %v8101_v15  ;;  %v7118_v1 = vld [vmem:[#allocation6 + $0xec] ss:$16 sps:$4 sm:$0xff]   ;;  %v7133_v10 = vld [vmem:[#allocation6 + $0x144] ss:$16 sps:$4 sm:$0xff]   ;;  %s606_s16 = scalar_select %p8316_p10, 1, 0 }
  0xac   : > { %6379 = vmatprep.subr.bf16.mxu0 %v8051_v2  ;;  %6387 = vmatprep.subr.bf16.mxu1 %v8053_v3  ;;  %v7130_v8 = vld [vmem:[#allocation6 + $0x12c] ss:$16 sps:$4 sm:$0xff]   ;;  %s613_s27 = scalar_select %p8323_p13, 1, 0 }
  0xad   : > { %v7136_v12 = vld [vmem:[#allocation6 + $0x14c] ss:$16 sps:$4 sm:$0xff]   ;;  %s799_s17 = scalar_select %p798_p1, 1, 0 }
  0xae   : > { %6368 = vmatmul.mubr.msk.bf16.vlgmr.msra.gmra.mrb[8].mxu0 %vm382_vm2, %v7047_v11  ;;  %6376 = vmatmul.mubr.msk.bf16.vlgmr.msra.gmra.mrb[8].mxu1 %vm382_vm2, %v7054_v18  ;;  %v7128_v11 = vld [vmem:[#allocation6 + $0x128] ss:$16 sps:$4 sm:$0xff]   ;;  %s806_s9 = scalar_select %p805_p4, 1, 0 }
  0xaf   : > { %6380 = vmatpush3.bf16.msra.mxu0 %v8051_v2  ;;  %6388 = vmatpush3.bf16.msra.mxu1 %v8053_v3  ;;  %s1187_s30 = sadd.s32 2, %s8313_s2  ;;  %s1382_s7 = sadd.s32 3, %s8313_s2 }
  0xb0   : > { %6897 = vmatprep.subr.msk.bf16.mxu0 %vm389_vm1, %v8057_v4  ;;  %6898 = vmatprep.subr.msk.bf16.mxu1 %vm389_vm1, %v8061_v5  ;;  %s994_s26 = scalar_select %p8394_p5, 1, 0 }
  0xb1   : > { %6383 = vmatprep.mubr.msk.bf16.mxu0 %vm382_vm2, %v7053_v17  ;;  %6391 = vmatprep.mubr.msk.bf16.mxu1 %vm382_vm2, %v7051_v13  ;;  %v7131_v13 = vld [vmem:[#allocation6 + $0x140] ss:$16 sps:$4 sm:$0xff]   ;;  %s1001_s14 = scalar_select %p8406_p6, 1, 0 }
  0xb2   : > { %p8437_p7 = scmp.ge.s32.totalorder %s1187_s30, 0  ;;  %p8471_p8 = scmp.lt.s32.totalorder %s1187_s30, 16 }
  0xb3   : > { %6382 = vmatpush3.bf16.msra.mxu0 %v8072_v7  ;;  %6390 = vmatpush3.bf16.msra.mxu1 %v8079_v9  ;;  %p8553_p11 = scmp.ge.s32.totalorder %s1382_s7, 0  ;;  %p8565_p12 = scmp.lt.s32.totalorder %s1382_s7, 16 }
  0xb4   : > { %6395 = vmatprep.subr.bf16.mxu0 %v8065_v6  ;;  %6403 = vmatprep.subr.bf16.mxu1 %v8051_v2  ;;  %s1189_s23 = scalar_select %p8437_p7, 1, 0 }
  0xb5   : > { %s1196_s20 = scalar_select %p8471_p8, 1, 0 }
  0xb6   : > { %6384 = vmatmul.mubr.msk.bf16.vlgmr.msra.gmra.mrb[12].mxu0 %vm382_vm2, %v7054_v18  ;;  %6392 = vmatmul.mubr.msk.bf16.vlgmr.msra.gmra.mrb[12].mxu1 %vm382_vm2, %v7052_v16  ;;  %v7142_v16 = vld [vmem:[#allocation6 + $0x16c] ss:$16 sps:$4 sm:$0xff]   ;;  %s1772_s30 = sadd.s32 5, %s8313_s2  ;;  %s1967_s10 = sadd.s32 6, %s8313_s2 }
  0xb7   : > { %6396 = vmatpush3.bf16.msra.mxu0 %v8065_v6  ;;  %6404 = vmatpush3.bf16.msra.mxu1 %v8051_v2  ;;  %p8729_p0 = scmp.ge.s32.totalorder %s1772_s30, 0  ;;  %p8741_p2 = scmp.lt.s32.totalorder %s1772_s30, 16 }
  0xb8   : > { %6899 = vmatprep.subr.msk.bf16.mxu0 %vm389_vm1, %v8090_v14  ;;  %6900 = vmatprep.subr.msk.bf16.mxu1 %vm389_vm1, %v8057_v4  ;;  %p8788_p10 = scmp.ge.s32.totalorder %s1967_s10, 0  ;;  %p8818_p13 = scmp.lt.s32.totalorder %s1967_s10, 16 }
  0xb9   : > { %6399 = vmatprep.mubr.msk.bf16.mxu0 %vm382_vm2, %v7055_v19  ;;  %6407 = vmatprep.mubr.msk.bf16.mxu1 %vm382_vm2, %v7055_v19  ;;  %s1774_s13 = scalar_select %p8729_p0, 1, 0 }
  0xba   : > { %s1969_s24 = scalar_select %p8788_p10, 1, 0 }
  0xbb   : > { %6398 = vmatpush3.bf16.msra.mxu0 %v8101_v15  ;;  %6406 = vmatpush3.bf16.msra.mxu1 %v8072_v7  ;;  %s1976_s29 = scalar_select %p8818_p13, 1, 0 }
  0xbc   : > { %6411 = vmatprep.subr.bf16.mxu0 %v8053_v3  ;;  %6419 = vmatprep.subr.bf16.mxu1 %v8065_v6  ;;  %s2357_s15 = sadd.s32 8, %s8313_s2  ;;  %p6203_p7 = scmp.ne.s32.totalorder %s7802_s21, 1 }
  0xbd   : > { %p8969_p5 = scmp.ge.s32.totalorder %s2357_s15, 0  ;;  %p8999_p6 = scmp.lt.s32.totalorder %s2357_s15, 16 }
  0xbe   : > { %6400 = vmatmul.mubr.msk.bf16.vlgmr.msra.gmra.mrb[16].mxu0 %vm382_vm2, %v7056_v20  ;;  %6408 = vmatmul.mubr.msk.bf16.vlgmr.msra.gmra.mrb[16].mxu1 %vm382_vm2, %v7056_v20 }
  0xbf   : > { %6412 = vmatpush3.bf16.msra.mxu0 %v8053_v3  ;;  %6420 = vmatpush3.bf16.msra.mxu1 %v8065_v6 }
  0xc0   : > { %6901 = vmatprep.subr.msk.bf16.mxu0 %vm389_vm1, %v8061_v5  ;;  %6902 = vmatprep.subr.msk.bf16.mxu1 %vm389_vm1, %v8090_v14 }
  0xc1   : > { %6415 = vmatprep.mubr.msk.bf16.mxu0 %vm382_vm2, %v7053_v17  ;;  %6423 = vmatprep.mubr.msk.bf16.mxu1 %vm382_vm2, %v7057_v21  ;;  %v7137_v17 = vld [vmem:[#allocation6 + $0x160] ss:$16 sps:$4 sm:$0xff]  }
  0xc3   : > { %6414 = vmatpush3.bf16.msra.mxu0 %v8079_v9  ;;  %6422 = vmatpush3.bf16.msra.mxu1 %v8101_v15 }
  0xc4   : > { %6427 = vmatprep.subr.bf16.mxu0 %v8051_v2  ;;  %6435 = vmatprep.subr.bf16.mxu1 %v8053_v3 }
  0xc6   : > { %6416 = vmatmul.mubr.msk.bf16.vlgmr.msra.gmra.mrb[20].mxu0 %vm382_vm2, %v7054_v18  ;;  %6424 = vmatmul.mubr.msk.bf16.vlgmr.msra.gmra.mrb[20].mxu1 %vm382_vm2, %v7058_v22  ;;  %v7145_v18 = vld [vmem:[#allocation6 + $0x184] ss:$16 sps:$4 sm:$0xff]  }
  0xc7   : > { %6428 = vmatpush3.bf16.msra.mxu0 %v8051_v2  ;;  %6436 = vmatpush3.bf16.msra.mxu1 %v8053_v3 }
  0xc8   : > { %6903 = vmatprep.subr.msk.bf16.mxu0 %vm389_vm1, %v8057_v4  ;;  %6904 = vmatprep.subr.msk.bf16.mxu1 %vm389_vm1, %v8061_v5 }
  0xc9   : > { %6431 = vmatprep.mubr.msk.bf16.mxu0 %vm382_vm2, %v7057_v21  ;;  %6439 = vmatprep.mubr.msk.bf16.mxu1 %vm382_vm2, %v7055_v19  ;;  %v7140_v19 = vld [vmem:[#allocation6 + $0x168] ss:$16 sps:$4 sm:$0xff]  }
  0xcb   : > { %6430 = vmatpush3.bf16.msra.mxu0 %v8072_v7  ;;  %6438 = vmatpush3.bf16.msra.mxu1 %v8079_v9 }
  0xcc   : > { %6443 = vmatprep.subr.bf16.mxu0 %v8065_v6  ;;  %6451 = vmatprep.subr.bf16.mxu1 %v8051_v2 }
  0xce   : > { %6432 = vmatmul.mubr.msk.bf16.vlgmr.msra.gmra.mrb[24].mxu0 %vm382_vm2, %v7058_v22  ;;  %6440 = vmatmul.mubr.msk.bf16.vlgmr.msra.gmra.mrb[24].mxu1 %vm382_vm2, %v7056_v20  ;;  %v7148_v20 = vld [vmem:[#allocation6 + $0x18c] ss:$16 sps:$4 sm:$0xff]  }
  0xcf   : > { %6444 = vmatpush3.bf16.msra.mxu0 %v8065_v6  ;;  %6452 = vmatpush3.bf16.msra.mxu1 %v8051_v2 }
  0xd0   : > { %6905 = vmatprep.subr.msk.bf16.mxu0 %vm389_vm1, %v8090_v14  ;;  %6906 = vmatprep.subr.msk.bf16.mxu1 %vm389_vm1, %v8057_v4 }
  0xd1   : > { %6447 = vmatprep.mubr.msk.bf16.mxu0 %vm382_vm2, %v7059_v23  ;;  %6455 = vmatprep.mubr.msk.bf16.mxu1 %vm382_vm2, %v7059_v23 }
  0xd3   : > { %6446 = vmatpush3.bf16.msra.mxu0 %v8101_v15  ;;  %6454 = vmatpush3.bf16.msra.mxu1 %v8072_v7 }
  0xd4   : > { %6459 = vmatprep.subr.bf16.mxu0 %v8053_v3  ;;  %6467 = vmatprep.subr.bf16.mxu1 %v8065_v6 }
  0xd6   : > { %6448 = vmatmul.mubr.msk.bf16.vlgmr.msra.gmra.mrb[28].mxu0 %vm382_vm2, %v7060_v24  ;;  %6456 = vmatmul.mubr.msk.bf16.vlgmr.msra.gmra.mrb[28].mxu1 %vm382_vm2, %v7060_v24 }
  0xd7   : > { %6460 = vmatpush3.bf16.msra.mxu0 %v8053_v3  ;;  %6468 = vmatpush3.bf16.msra.mxu1 %v8065_v6 }
  0xd8   : > { %6907 = vmatprep.subr.msk.bf16.mxu0 %vm389_vm1, %v8061_v5  ;;  %6908 = vmatprep.subr.msk.bf16.mxu1 %vm389_vm1, %v8090_v14 }
  0xd9   : > { %6463 = vmatprep.mubr.msk.bf16.mxu0 %vm382_vm2, %v7057_v21  ;;  %6471 = vmatprep.mubr.msk.bf16.mxu1 %vm382_vm2, %v7061_v25  ;;  %v7143_v21 = vld [vmem:[#allocation6 + $0x180] ss:$16 sps:$4 sm:$0xff]  }
  0xdb   : > { %6462 = vmatpush3.bf16.msra.mxu0 %v8079_v9  ;;  %6470 = vmatpush3.bf16.msra.mxu1 %v8101_v15 }
  0xdc   : > { %6475 = vmatprep.subr.bf16.mxu0 %v8051_v2  ;;  %6483 = vmatprep.subr.bf16.mxu1 %v8053_v3 }
  0xde   : > { %6464 = vmatmul.mubr.msk.bf16.vlgmr.msra.gmra.mrb[32].mxu0 %vm382_vm2, %v7058_v22  ;;  %6472 = vmatmul.mubr.msk.bf16.vlgmr.msra.gmra.mrb[32].mxu1 %vm382_vm2, %v7062_v26  ;;  %v7151_v22 = vld [vmem:[#allocation6 + $0x1a4] ss:$16 sps:$4 sm:$0xff]  }
  0xdf   : > { %6476 = vmatpush3.bf16.msra.mxu0 %v8051_v2  ;;  %6484 = vmatpush3.bf16.msra.mxu1 %v8053_v3 }
  0xe0   : > { %6909 = vmatprep.subr.msk.bf16.mxu0 %vm389_vm1, %v8057_v4  ;;  %6910 = vmatprep.subr.msk.bf16.mxu1 %vm389_vm1, %v8061_v5 }
  0xe1   : > { %6479 = vmatprep.mubr.msk.bf16.mxu0 %vm382_vm2, %v7061_v25  ;;  %6487 = vmatprep.mubr.msk.bf16.mxu1 %vm382_vm2, %v7059_v23  ;;  %v7146_v23 = vld [vmem:[#allocation6 + $0x188] ss:$16 sps:$4 sm:$0xff]  }
  0xe3   : > { %6478 = vmatpush3.bf16.msra.mxu0 %v8072_v7  ;;  %6486 = vmatpush3.bf16.msra.mxu1 %v8079_v9 }
  0xe4   : > { %6491 = vmatprep.subr.bf16.mxu0 %v8065_v6  ;;  %6499 = vmatprep.subr.bf16.mxu1 %v8051_v2 }
  0xe6   : > { %6480 = vmatmul.mubr.msk.bf16.vlgmr.msra.gmra.mrb[36].mxu0 %vm382_vm2, %v7062_v26  ;;  %6488 = vmatmul.mubr.msk.bf16.vlgmr.msra.gmra.mrb[36].mxu1 %vm382_vm2, %v7060_v24  ;;  %v7154_v24 = vld [vmem:[#allocation6 + $0x1ac] ss:$16 sps:$4 sm:$0xff]  }
  0xe7   : > { %6492 = vmatpush3.bf16.msra.mxu0 %v8065_v6  ;;  %6500 = vmatpush3.bf16.msra.mxu1 %v8051_v2 }
  0xe8   : > { %6911 = vmatprep.subr.msk.bf16.mxu0 %vm389_vm1, %v8090_v14  ;;  %6912 = vmatprep.subr.msk.bf16.mxu1 %vm389_vm1, %v8057_v4 }
  0xe9   : > { %6495 = vmatprep.mubr.msk.bf16.mxu0 %vm382_vm2, %v7063_v27  ;;  %6503 = vmatprep.mubr.msk.bf16.mxu1 %vm382_vm2, %v7063_v27 }
  0xeb   : > { %6494 = vmatpush3.bf16.msra.mxu0 %v8101_v15  ;;  %6502 = vmatpush3.bf16.msra.mxu1 %v8072_v7 }
  0xec   : > { %6507 = vmatprep.subr.bf16.mxu0 %v8053_v3  ;;  %6515 = vmatprep.subr.bf16.mxu1 %v8065_v6 }
  0xee   : > { %6496 = vmatmul.mubr.msk.bf16.vlgmr.msra.gmra.mrb[40].mxu0 %vm382_vm2, %v7064_v28  ;;  %6504 = vmatmul.mubr.msk.bf16.vlgmr.msra.gmra.mrb[40].mxu1 %vm382_vm2, %v7064_v28 }
  0xef   : > { %6508 = vmatpush3.bf16.msra.mxu0 %v8053_v3  ;;  %6516 = vmatpush3.bf16.msra.mxu1 %v8065_v6 }
  0xf0   : > { %6913 = vmatprep.subr.msk.bf16.mxu0 %vm389_vm1, %v8061_v5  ;;  %6914 = vmatprep.subr.msk.bf16.mxu1 %vm389_vm1, %v8090_v14 }
  0xf1   : > { %6511 = vmatprep.mubr.msk.bf16.mxu0 %vm382_vm2, %v7061_v25  ;;  %6519 = vmatprep.mubr.msk.bf16.mxu1 %vm382_vm2, %v7065_v29  ;;  %v7149_v25 = vld [vmem:[#allocation6 + $0x1a0] ss:$16 sps:$4 sm:$0xff]  }
  0xf3   : > { %6510 = vmatpush3.bf16.msra.mxu0 %v8079_v9  ;;  %6518 = vmatpush3.bf16.msra.mxu1 %v8101_v15 }
  0xf4   : > { %6523 = vmatprep.subr.bf16.mxu0 %v8051_v2  ;;  %6531 = vmatprep.subr.bf16.mxu1 %v8053_v3 }
  0xf6   : > { %6512 = vmatmul.mubr.msk.bf16.vlgmr.msra.gmra.mrb[44].mxu0 %vm382_vm2, %v7062_v26  ;;  %6520 = vmatmul.mubr.msk.bf16.vlgmr.msra.gmra.mrb[44].mxu1 %vm382_vm2, %v7066_v30  ;;  %v7157_v26 = vld [vmem:[#allocation6 + $0x1c4] ss:$16 sps:$4 sm:$0xff]  }
  0xf7   : > { %6524 = vmatpush3.bf16.msra.mxu0 %v8051_v2  ;;  %6527 = vmatprep.mubr.msk.bf16.mxu0 %vm382_vm2, %v7065_v29 }
  0xf8   : > { %6915 = vmatprep.subr.msk.bf16.mxu0 %vm389_vm1, %v8057_v4  ;;  %6532 = vmatpush3.bf16.msra.mxu1 %v8053_v3 }
  0xf9   : > { %6535 = vmatprep.mubr.msk.bf16.mxu1 %vm382_vm2, %v7063_v27  ;;  %6916 = vmatprep.subr.msk.bf16.mxu1 %vm389_vm1, %v8061_v5  ;;  %v7152_v27 = vld [vmem:[#allocation6 + $0x1a8] ss:$16 sps:$4 sm:$0xff]  }
  0xfb   : > { %6526 = vmatpush3.bf16.msra.mxu0 %v8072_v7 }
  0xfc   : > { %6539 = vmatprep.subr.bf16.mxu0 %v8065_v6  ;;  %6534 = vmatpush3.bf16.msra.mxu1 %v8079_v9 }
  0xfd   : > { %6547 = vmatprep.subr.bf16.mxu1 %v8051_v2 }
  0xfe   : > { %6528 = vmatmul.mubr.msk.bf16.vlgmr.msra.gmra.mrb[48].mxu0 %vm382_vm2, %v7066_v30 }
  0xff   : > { %6540 = vmatpush3.bf16.msra.mxu0 %v8065_v6  ;;  %6543 = vmatprep.mubr.msk.bf16.mxu0 %vm382_vm2, %v7067_v31 }
 0x100   : > { %6917 = vmatprep.subr.msk.bf16.mxu0 %vm389_vm1, %v8090_v14  ;;  %6536 = vmatmul.mubr.msk.bf16.vlgmr.msra.gmra.mrb[48].mxu1 %vm382_vm2, %v7064_v28  ;;  %v7160_v28 = vld [vmem:[#allocation6 + $0x1cc] ss:$16 sps:$4 sm:$0xff]  }
 0x101   : > { %6548 = vmatpush3.bf16.msra.mxu1 %v8051_v2  ;;  %6551 = vmatprep.mubr.msk.bf16.mxu1 %vm382_vm2, %v7067_v31  ;;  %v7116_v2 = vld [vmem:[#allocation6 + $0xe8] ss:$16 sps:$4 sm:$0xff]  }
 0x102   : > { %6918 = vmatprep.subr.msk.bf16.mxu1 %vm389_vm1, %v8057_v4  ;;  %v7119_v4 = vld [vmem:[#allocation6 + $0x100] ss:$16 sps:$4 sm:$0xff]   ;;  %v7158_v31 = vld [vmem:[#allocation6 + $0x1c8] ss:$16 sps:$4 sm:$0xff]  }
 0x103   : > { %6542 = vmatpush3.bf16.msra.mxu0 %v8101_v15 }
 0x104   : > { %6555 = vmatprep.subr.bf16.mxu0 %v8053_v3 }
 0x105   : > { %6550 = vmatpush3.bf16.msra.mxu1 %v8072_v7  ;;  %v7122_v7 = vld [vmem:[#allocation6 + $0x108] ss:$16 sps:$4 sm:$0xff]  }
 0x106   : > { %6544 = vmatmul.mubr.msk.bf16.vlgmr.msra.gmra.mrb[52].mxu0 %vm382_vm2, %v7068_v32  ;;  %6563 = vmatprep.subr.bf16.mxu1 %v8065_v6 }
 0x107   : > { %6556 = vmatpush3.bf16.msra.mxu0 %v8053_v3  ;;  %6559 = vmatprep.mubr.msk.bf16.mxu0 %vm382_vm2, %v7065_v29  ;;  %v7121_v3 = vld [vmem:[#allocation6 + $0x104] ss:$16 sps:$4 sm:$0xff]   ;;  %v7155_v29 = vld [vmem:[#allocation6 + $0x1c0] ss:$16 sps:$4 sm:$0xff]  }
 0x108   : > { %6552 = vmatmul.mubr.msk.bf16.vlgmr.msra.gmra.mrb[52].mxu1 %vm382_vm2, %v7068_v32  ;;  %6919 = vmatprep.subr.msk.bf16.mxu0 %vm389_vm1, %v8061_v5  ;;  %v7124_v5 = vld [vmem:[#allocation6 + $0x10c] ss:$16 sps:$4 sm:$0xff]  }
 0x109   : > { %6564 = vmatpush3.bf16.msra.mxu1 %v8065_v6  ;;  %6567 = vmatprep.mubr.msk.bf16.mxu1 %vm382_vm2, %v7069_v33  ;;  %v7127_v6 = vld [vmem:[#allocation6 + $0x124] ss:$16 sps:$4 sm:$0xff]   ;;  %v7166_v32 = vld [vmem:[#allocation6 + $0x1ec] ss:$16 sps:$4 sm:$0xff]   ;;  %v7161_v33 = vld [vmem:[#allocation6 + $0x1e0] ss:$16 sps:$4 sm:$0xff]  }
 0x10a   : > { %6920 = vmatprep.subr.msk.bf16.mxu1 %vm389_vm1, %v8090_v14  ;;  %v7139_v14 = vld [vmem:[#allocation6 + $0x164] ss:$16 sps:$4 sm:$0xff]  }
 0x10b   : > { %6558 = vmatpush3.bf16.msra.mxu0 %v8079_v9  ;;  %v7125_v9 = vld [vmem:[#allocation6 + $0x120] ss:$16 sps:$4 sm:$0xff]  }
 0x10c   : > { %4351 = vmatprep.subr.bf16.mxu0 %v7072_v34  ;;  %v7169_v34 = vld [vmem:[#allocation6 + $0x204] ss:$16 sps:$4 sm:$0xff]  }
 0x10d   : > { %6566 = vmatpush3.bf16.msra.mxu1 %v8101_v15  ;;  %v7134_v15 = vld [vmem:[#allocation6 + $0x148] ss:$16 sps:$4 sm:$0xff]  }
 0x10e   : > { %4916 = vmatprep.subr.bf16.mxu1 %v7075_v36  ;;  %6560 = vmatmul.mubr.msk.bf16.vlgmr.msra.gmra.mrb[56].mxu0 %vm382_vm2, %v7066_v30  ;;  %v7163_v30 = vld [vmem:[#allocation6 + $0x1e4] ss:$16 sps:$4 sm:$0xff]   ;;  %v7172_v36 = vld [vmem:[#allocation6 + $0x20c] ss:$16 sps:$4 sm:$0xff]  }
 0x10f   : > { %4352 = vmatpush1.bf16.msra.mxu0 %v7070_v35  ;;  %v7164_v35 = vld [vmem:[#allocation6 + $0x1e8] ss:$16 sps:$4 sm:$0xff]  }
 0x110   : > { %6568 = vmatmul.mubr.msk.bf16.vlgmr.msra.gmra.mrb[56].mxu1 %vm382_vm2, %v7076_v38  ;;  %4353 = vmatprep.subr.bf16.mxu0 %v7079_v39 }
 0x111   : > { %4917 = vmatpush1.bf16.msra.mxu1 %v7073_v37  ;;  %v352_v37 = vlaneseq }
 0x112   : > { %4918 = vmatprep.subr.bf16.mxu1 %v7082_v41 }
 0x113   : > { %4354 = vmatpush1.bf16.msra.mxu0 %v7077_v40  ;;  %v8321_v38 = vshrl.u32 %v352_v37, 7 }
 0x114   : > { %4355 = vmatprep.subr.bf16.mxu0 %v7085_v42 }
 0x115   : > { %4919 = vmatpush1.bf16.msra.mxu1 %v7080_v43  ;;  %vm356_vm5 = vcmp.ge.s32.totalorder %v8321_v38, 1 }
 0x116   : > { %4920 = vmatprep.subr.bf16.mxu1 %v7088_v44 }
 0x117   : > { %4356 = vmatpush1.bf16.msra.mxu0 %v7083_v45  ;;  %v8330_v45 = vadd.s32 16, %v8321_v38 }
 0x118   : > { %4357 = vmatprep.subr.bf16.mxu0 %v7091_v46 }
 0x119   : > { %4921 = vmatpush1.bf16.msra.mxu1 %v7086_v47  ;;  %vm361_vm3 = vcmp.le.s32.totalorder %v8330_v45, 16 }
 0x11a   : > { %4922 = vmatprep.subr.bf16.mxu1 %v7094_v48 }
 0x11b   : > { %4358 = vmatpush1.bf16.msra.mxu0 %v7089_v49  ;;  %v607_v49 = vstv %s606_s16  ;;  %s1577_s16 = sadd.s32 4, %s8313_s2 }
 0x11c   : > { %4359 = vmatprep.subr.bf16.mxu0 %v7097_v51  ;;  %vm608_vm4 = vcmp.eq.s32.totalorder %v607_v49, 1  ;;  %p8601_p3 = scmp.ge.s32.totalorder %s1577_s16, 0  ;;  %p8641_p9 = scmp.lt.s32.totalorder %s1577_s16, 16 }
 0x11d   : > { %4923 = vmatpush1.bf16.msra.mxu1 %v7092_v50  ;;  %vm611_vm6 = vmand %vm361_vm3, %vm608_vm4  ;;  %s2162_s16 = sadd.s32 7, %s8313_s2 }
 0x11e   : > { %4924 = vmatprep.subr.bf16.mxu1 %v7100_v53  ;;  %v8337_v53 = vld [vmem:[#allocation8] ss:$0 sm:$0xff]  ;;  %vm609_vm8 = vmand %vm356_vm5, %vm608_vm4  ;;  %s1579_s11 = scalar_select %p8601_p3, 1, 0 }
 0x11f   : > { %4360 = vmatpush1.bf16.msra.mxu0 %v7095_v52  ;;  %v614_v52 = vstv %s613_s27  ;;  %s1384_s27 = scalar_select %p8553_p11, 1, 0 }
 0x120   : > { %4361 = vmatprep.subr.bf16.mxu0 %v7103_v55  ;;  %vm615_vm7 = vcmp.eq.s32.totalorder %v614_v52, 1  ;;  %s1586_s12 = scalar_select %p8641_p9, 1, 0 }
 0x121   : > { %4925 = vmatpush1.bf16.msra.mxu1 %v7098_v54  ;;  %vm618_vm9 = vmand %vm611_vm6, %vm615_vm7  ;;  %p8902_p1 = scmp.ge.s32.totalorder %s2162_s16, 0  ;;  %p8920_p4 = scmp.lt.s32.totalorder %s2162_s16, 16 }
 0x122   : > { %4926 = vmatprep.subr.bf16.mxu1 %v7106_v56  ;;  %vm8354_vm10 = vmand %vm609_vm8, %vm615_vm7  ;;  %s2366_s2 = scalar_select %p8999_p6, 1, 0 }
 0x123   : > { %4362 = vmatpush1.bf16.msra.mxu0 %v7101_v57  ;;  %vm8364_vm11 = vmand %vm608_vm4, %vm615_vm7 }
 0x124   : > { %4363 = vmatprep.subr.bf16.mxu0 %v7109_v58  ;;  %vm7504_vm4 = vmpackc.low %vm8364_vm11, %vm8354_vm10 }
 0x125   : > { %4927 = vmatpush1.bf16.msra.mxu1 %v7104_v59 }
 0x126   : > { %4928 = vmatprep.subr.bf16.mxu1 %v7112_v61 }
 0x127   : > { %4364 = vmatpush1.bf16.msra.mxu0 %v7107_v60 }
 0x128   : > { %4365 = vmatprep.subr.bf16.mxu0 %v7115_v63 }
 0x129   : > { %4929 = vmatpush1.bf16.msra.mxu1 %v7110_v62 }
 0x12a   : > { %4930 = vmatprep.subr.bf16.mxu1 %v7118_v1 }
 0x12b   : > { %4366 = vmatpush1.bf16.msra.mxu0 %v7113_v0 }
 0x12c   : > { %4367 = vmatprep.subr.bf16.mxu0 %v7121_v3 }
 0x12d   : > { %4931 = vmatpush1.bf16.msra.mxu1 %v7116_v2 }
 0x12e   : > { %4932 = vmatprep.subr.bf16.mxu1 %v7124_v5  ;;  %v800_v5 = vstv %s799_s17  ;;  %s1391_s17 = scalar_select %p8565_p12, 1, 0 }
 0x12f   : > { %4368 = vmatpush1.bf16.msra.mxu0 %v7119_v4  ;;  %vm8373_vm12 = vcmp.eq.s32.totalorder %v800_v5, 1  ;;  %v7176_v4 = vld [vmem:[#allocation6 + $0x228] ss:$16 sps:$4 sm:$0xff]  }
 0x130   : > { %4369 = vmatprep.subr.bf16.mxu0 %v7127_v6  ;;  %vm8386_vm13 = vmand %vm361_vm3, %vm8373_vm12 }
 0x131   : > { %4933 = vmatpush1.bf16.msra.mxu1 %v7122_v7  ;;  %vm8402_vm15 = vmand %vm356_vm5, %vm8373_vm12 }
 0x132   : > { %4934 = vmatprep.subr.bf16.mxu1 %v7130_v8 }
 0x133   : > { %4370 = vmatpush1.bf16.msra.mxu0 %v7125_v9 }
 0x134   : > { %4371 = vmatprep.subr.bf16.mxu0 %v7133_v10 }
 0x135   : > { %4935 = vmatpush1.bf16.msra.mxu1 %v7128_v11 }
 0x136   : > { %4936 = vmatprep.subr.bf16.mxu1 %v7136_v12 }
 0x137   : > { %4372 = vmatpush1.bf16.msra.mxu0 %v7131_v13  ;;  %v7188_v13 = vld [vmem:[#allocation6 + $0x268] ss:$16 sps:$4 sm:$0xff]  }
 0x138   : > { %4373 = vmatprep.subr.bf16.mxu0 %v7139_v14  ;;  %v807_v14 = vstv %s806_s9  ;;  %s2164_s9 = scalar_select %p8902_p1, 1, 0 }
 0x139   : > { %4937 = vmatpush1.bf16.msra.mxu1 %v7134_v15  ;;  %vm8390_vm14 = vcmp.eq.s32.totalorder %v807_v14, 1 }
 0x13a   : > { %4938 = vmatprep.subr.bf16.mxu1 %v7142_v16  ;;  %vm811_vm0 = vmand %vm8386_vm13, %vm8390_vm14 }
 0x13b   : > { %4374 = vmatpush1.bf16.msra.mxu0 %v7137_v17  ;;  %vm809_vm1 = vmand %vm8402_vm15, %vm8390_vm14 }
 0x13c   : > { %4375 = vmatprep.subr.bf16.mxu0 %v7145_v18  ;;  %vm810_vm2 = vmand %vm8373_vm12, %vm8390_vm14 }
 0x13d   : > { %4939 = vmatpush1.bf16.msra.mxu1 %v7140_v19 }
 0x13e   : > { %4940 = vmatprep.subr.bf16.mxu1 %v7148_v20 }
 0x13f   : > { %4376 = vmatpush1.bf16.msra.mxu0 %v7143_v21 }
 0x140   : > { %4377 = vmatprep.subr.bf16.mxu0 %v7151_v22 }
 0x141   : > { %4941 = vmatpush1.bf16.msra.mxu1 %v7146_v23 }
 0x142   : > { %4942 = vmatprep.subr.bf16.mxu1 %v7154_v24 }
 0x143   : > { %4378 = vmatpush1.bf16.msra.mxu0 %v7149_v25 }
 0x144   : > { %4379 = vmatprep.subr.bf16.mxu0 %v7157_v26 }
 0x145   : > { %4943 = vmatpush1.bf16.msra.mxu1 %v7152_v27 }
 0x146   : > { %4944 = vmatprep.subr.bf16.mxu1 %v7160_v28 }
 0x147   : > { %4380 = vmatpush1.bf16.msra.mxu0 %v7155_v29 }
 0x148   : > { %4381 = vmatprep.subr.bf16.mxu0 %v7163_v30 }
 0x149   : > { %4945 = vmatpush1.bf16.msra.mxu1 %v7158_v31 }
 0x14a   : > { %4946 = vmatprep.subr.bf16.mxu1 %v7166_v32 }
 0x14b   : > { %4382 = vmatpush1.bf16.msra.mxu0 %v7161_v33 }
 0x14c   : > { %4464 = vmatprep.subr.bf16.mxu0 %v7169_v34 }
 0x14d   : > { %4947 = vmatpush1.bf16.msra.mxu1 %v7164_v35 }
 0x14e   : > { %5029 = vmatprep.subr.bf16.mxu1 %v7172_v36 }
 0x171   : > { %v6337_v39 = vpop.f32.mrb[0].mxu0  ;;  %v6345_v40 = vpop.f32.mrb[0].mxu1 }
 0x172   : > { %v427_v41 = vpop.f32.mrb[1].mxu0  ;;  %v510_v42 = vadd.f32 %v6345_v40, %v6337_v39  ;;  %v501_v43 = vpop.f32.mrb[1].mxu1 }
 0x173   : > { %v6338_v44 = vpop.f32.mrb[2].mxu0  ;;  %v502_v46 = vadd.f32 %v501_v43, %v427_v41  ;;  %v6346_v47 = vpop.f32.mrb[2].mxu1 }
 0x174   : > { %v430_v48 = vpop.f32.mrb[3].mxu0  ;;  %v504_v50 = vpop.f32.mrb[3].mxu1 }
 0x175   : > { %v505_v51 = vadd.f32 %v504_v50, %v430_v48 }
 0x179   : > { %v6353_v54 = vpop.f32.mrb[4].mxu0  ;;  %v6361_v56 = vpop.f32.mrb[4].mxu1 }
 0x17a   : > { %v591_v55 = vadd.f32 %v6353_v54, %v510_v42  ;;  %v575_v57 = vpop.f32.mrb[5].mxu0  ;;  %v665_v59 = vpop.f32.mrb[5].mxu1 }
 0x17b   : > { %v589_v58 = vadd.f32 %v575_v57, %v502_v46  ;;  %v6354_v60 = vpop.f32.mrb[6].mxu0  ;;  %v6362_v62 = vpop.f32.mrb[6].mxu1  ;;  %v7167_v57 = vld [vmem:[#allocation6 + $0x200] ss:$16 sps:$4 sm:$0xff]  }
 0x17c   : > { %v600_v61 = vadd.f32 %v8337_v53, %v591_v55  ;;  %v578_v63 = vpop.f32.mrb[7].mxu0  ;;  %v668_v2 = vpop.f32.mrb[7].mxu1  ;;  %v7178_v62 = vld [vmem:[#allocation6 + $0x22c] ss:$16 sps:$4 sm:$0xff]  }
 0x17d   : > { %v8349_v0 = vadd.f32 %v8337_v53, %v589_v58  ;;  %v590_v1 = vadd.f32 %v578_v63, %v505_v51  ;;  %v7170_v58 = vld [vmem:[#allocation6 + $0x208] ss:$16 sps:$4 sm:$0xff]  }
 0x17e   : > { %v603_v3 = vmax.f32 %v600_v61, 0.0  ;;  %v7175_v61 = vld [vmem:[#allocation6 + $0x224] ss:$16 sps:$4 sm:$0xff]  }
 0x17f   : > { %v601_v6 = vmax.f32 %v8349_v0, 0.0  ;;  %v8360_v7 = vadd.f32 %v8337_v53, %v590_v1  ;;  %v7181_v0 = vld [vmem:[#allocation6 + $0x244] ss:$16 sps:$4 sm:$0xff]  }
 0x180   : > { %v627_v8 = vsel %vm618_vm9, %v603_v3, 0.0  ;;  %v7173_v3 = vld [vmem:[#allocation6 + $0x220] ss:$16 sps:$4 sm:$0xff]  }
 0x181   : > { %630 = vst [vmem:[#allocation2 + $0x10] sm:$0x3] %v627_v8  ;;  %v625_v10 = vsel %vm8354_vm10, %v601_v6, 0.0  ;;  %v602_v11 = vmax.f32 %v8360_v7, 0.0  ;;  %v6369_v12 = vpop.f32.mrb[8].mxu0  ;;  %v6377_v16 = vpop.f32.mrb[8].mxu1 }
 0x182   : > { %628 = vst [vmem:[#allocation2] sm:$0xff] %v625_v10  ;;  %v722_v15 = vadd.f32 %v6369_v12, %v6361_v56  ;;  %v713_v17 = vpop.f32.mrb[9].mxu0  ;;  %v775_v20 = vpop.f32.mrb[9].mxu1  ;;  %v995_v56 = vstv %s994_s26  ;;  %s2359_s26 = scalar_select %p8969_p5, 1, 0 }
 0x183   : > { %v626_v18 = vsel %vm8364_vm11, %v602_v11, 0.0  ;;  %v714_v19 = vadd.f32 %v713_v17, %v665_v59  ;;  %v6370_v21 = vpop.f32.mrb[10].mxu0  ;;  %v6378_v25 = vpop.f32.mrb[10].mxu1  ;;  %v7505_v1 = vpack.c.bf16 %v602_v11, %v601_v6  ;;  %vm996_vm6 = vcmp.eq.s32.totalorder %v995_v56, 1  ;;  %v7184_v6 = vld [vmem:[#allocation6 + $0x24c] ss:$16 sps:$4 sm:$0xff]  }
 0x184   : > { %629 = vst [vmem:[#allocation2 + $0x8] sm:$0xff] %v626_v18  ;;  %v791_v22 = vadd.f32 %v6377_v16, %v722_v15  ;;  %v716_v26 = vpop.f32.mrb[11].mxu0  ;;  %v778_v30 = vpop.f32.mrb[11].mxu1  ;;  %vm999_vm7 = vmand %vm361_vm3, %vm996_vm6  ;;  %v8497_v25 = vstv %s1189_s23  ;;  %s1781_s23 = scalar_select %p8741_p2, 1, 0 }
 0x185   : > { %v789_v27 = vadd.f32 %v775_v20, %v714_v19  ;;  %v717_v29 = vadd.f32 %v716_v26, %v668_v2  ;;  %v1002_v2 = vstv %s1001_s14  ;;  %vm8481_vm9 = vmand %vm356_vm5, %vm996_vm6 }
 0x186   : > { %v794_v31 = vadd.f32 %v8337_v53, %v791_v22  ;;  %vm1003_vm8 = vcmp.eq.s32.totalorder %v1002_v2, 1  ;;  %v7194_v2 = vld [vmem:[#allocation6 + $0x288] ss:$16 sps:$4 sm:$0xff]  }
 0x187   : > { %v8416_v32 = vadd.f32 %v8337_v53, %v789_v27  ;;  %v790_v33 = vadd.f32 %v778_v30, %v717_v29  ;;  %vm8487_vm10 = vmand %vm999_vm7, %vm1003_vm8  ;;  %v7179_v30 = vld [vmem:[#allocation6 + $0x240] ss:$16 sps:$4 sm:$0xff]   ;;  %v1392_v27 = vstv %s1391_s17 }
 0x188   : > { %v797_v34 = vmax.f32 %v794_v31, 0.0  ;;  %vm8504_vm11 = vmand %vm8481_vm9, %vm1003_vm8  ;;  %v7182_v31 = vld [vmem:[#allocation6 + $0x248] ss:$16 sps:$4 sm:$0xff]  }
 0x189   : > { %v795_v35 = vmax.f32 %v8416_v32, 0.0  ;;  %v8427_v36 = vadd.f32 %v8337_v53, %v790_v33  ;;  %v6385_v39 = vpop.f32.mrb[12].mxu0  ;;  %v6393_v41 = vpop.f32.mrb[12].mxu1  ;;  %vm8516_vm13 = vmand %vm996_vm6, %vm1003_vm8 }
 0x18a   : > { %v820_v40 = vsel %vm811_vm0, %v797_v34, 0.0  ;;  %v859_v42 = vpop.f32.mrb[13].mxu0  ;;  %v916_v46 = vadd.f32 %v6393_v41, %v6385_v39  ;;  %v907_v47 = vpop.f32.mrb[13].mxu1  ;;  %v7187_v39 = vld [vmem:[#allocation6 + $0x264] ss:$16 sps:$4 sm:$0xff]   ;;  %vm1191_vm0 = vcmp.eq.s32.totalorder %v8497_v25, 1  ;;  %vm8618_vm7 = vmpackc.low %vm8516_vm13, %vm8504_vm11 }
 0x18b   : > { %824 = vst [vmem:[#allocation2 + $0x28] sm:$0x3] %v820_v40  ;;  %v818_v43 = vsel %vm809_vm1, %v795_v35, 0.0  ;;  %v796_v44 = vmax.f32 %v8427_v36, 0.0  ;;  %v6386_v48 = vpop.f32.mrb[14].mxu0  ;;  %v2690_v49 = vld [vmem:[#allocation2 + $0x1] sm:$0xff]  ;;  %v908_v51 = vadd.f32 %v907_v47, %v859_v42  ;;  %vm8549_vm12 = vmand %vm361_vm3, %vm1191_vm0 }
 0x18c   : > { %v2691_v50 = vld [vmem:[#allocation2 + $0x9] sm:$0xff]  ;;  %822 = vst [vmem:[#allocation2 + $0x18] sm:$0xff] %v818_v43  ;;  %v6394_v52 = vpop.f32.mrb[14].mxu1  ;;  %v862_v54 = vpop.f32.mrb[15].mxu0  ;;  %v1197_v48 = vstv %s1196_s20  ;;  %vm8561_vm15 = vmand %vm356_vm5, %vm1191_vm0 }
 0x18d   : > { %v2819_v55 = vpack.c.bf16 %v2691_v50, %v2690_v49  ;;  %v819_v59 = vsel %vm810_vm2, %v796_v44, 0.0  ;;  %v910_v60 = vpop.f32.mrb[15].mxu1  ;;  %v7190_v40 = vld [vmem:[#allocation6 + $0x26c] ss:$16 sps:$4 sm:$0xff]   ;;  %v7511_v49 = vpack.c.bf16 %v796_v44, %v795_v35  ;;  %v7185_v50 = vld [vmem:[#allocation6 + $0x260] ss:$16 sps:$4 sm:$0xff]  }
 0x18e   : > { %823 = vst [vmem:[#allocation2 + $0x20] sm:$0xff] %v819_v59  ;;  %v911_v63 = vadd.f32 %v910_v60, %v862_v54  ;;  %v7193_v54 = vld [vmem:[#allocation6 + $0x284] ss:$16 sps:$4 sm:$0xff]   ;;  %v7196_v44 = vld [vmem:[#allocation6 + $0x28c] ss:$16 sps:$4 sm:$0xff]   ;;  %vm1198_vm14 = vcmp.eq.s32.totalorder %v1197_v48, 1 }
 0x18f   : > { %4383 = vmatprep.mubr.bf16.mxu0 %v2819_v55  ;;  %4948 = vmatprep.mubr.bf16.mxu1 %v2819_v55  ;;  %vm8595_vm6 = vmand %vm1191_vm0, %vm1198_vm14  ;;  %v7208_v48 = vld [vmem:[#allocation6 + $0x2cc] ss:$16 sps:$4 sm:$0xff]   ;;  %v7211_v42 = vld [vmem:[#allocation6 + $0x2e4] ss:$16 sps:$4 sm:$0xff]  }
 0x190   : > { %7506 = vmatmul.mubr.msk.bf16.vlgmr.msra.gmra.mrb[60].mxu0 %vm7504_vm4, %v7505_v1  ;;  %7509 = vmatmul.mubr.msk.bf16.vlgmr.msra.gmra.mrb[60].mxu1 %vm7504_vm4, %v7505_v1  ;;  %vm7510_vm4 = vmpackc.low %vm810_vm2, %vm809_vm1  ;;  %v7191_v1 = vld [vmem:[#allocation6 + $0x280] ss:$16 sps:$4 sm:$0xff]  }
 0x191   : > { %4465 = vmatpush1.bf16.msra.mxu0 %v7167_v57  ;;  %5030 = vmatpush1.bf16.msra.mxu1 %v7170_v58  ;;  %v6401_v5 = vpop.f32.mrb[16].mxu0  ;;  %v6409_v8 = vpop.f32.mrb[16].mxu1  ;;  %vm1201_vm1 = vmand %vm8549_vm12, %vm1198_vm14 }
 0x192   : > { %4466 = vmatprep.subr.bf16.mxu0 %v7175_v61  ;;  %5031 = vmatprep.subr.bf16.mxu1 %v7178_v62  ;;  %v985_v7 = vadd.f32 %v6401_v5, %v916_v46  ;;  %v969_v9 = vpop.f32.mrb[17].mxu0  ;;  %v1054_v12 = vpop.f32.mrb[17].mxu1  ;;  %v7199_v5 = vld [vmem:[#allocation6 + $0x2a4] ss:$16 sps:$4 sm:$0xff]   ;;  %vm8580_vm2 = vmand %vm8561_vm15, %vm1198_vm14 }
 0x193   : > { %v983_v10 = vadd.f32 %v969_v9, %v908_v51  ;;  %v6402_v14 = vpop.f32.mrb[18].mxu0  ;;  %v6410_v16 = vpop.f32.mrb[18].mxu1  ;;  %vm8700_vm14 = vmpackc.low %vm8595_vm6, %vm8580_vm2 }
 0x194   : > { %v988_v15 = vadd.f32 %v8337_v53, %v985_v7  ;;  %v972_v17 = vpop.f32.mrb[19].mxu0  ;;  %v1057_v21 = vpop.f32.mrb[19].mxu1  ;;  %v7215_v7 = vld [vmem:[#allocation6 + $0x300] ss:$16 sps:$4 sm:$0xff]  }
 0x195   : > { %4467 = vmatpush1.bf16.msra.mxu0 %v7173_v3  ;;  %5032 = vmatpush1.bf16.msra.mxu1 %v7176_v4  ;;  %v8492_v19 = vadd.f32 %v8337_v53, %v983_v10  ;;  %v984_v20 = vadd.f32 %v972_v17, %v911_v63  ;;  %v2692_v22 = vld [vmem:[#allocation2 + $0x19] sm:$0xff]  ;;  %v2693_v23 = vld [vmem:[#allocation2 + $0x21] sm:$0xff] }
 0x196   : > { %4468 = vmatprep.subr.bf16.mxu0 %v7181_v0  ;;  %5033 = vmatprep.subr.bf16.mxu1 %v7184_v6  ;;  %v991_v26 = vmax.f32 %v988_v15, 0.0  ;;  %v2828_v29 = vpack.c.bf16 %v2693_v23, %v2692_v22  ;;  %v7202_v0 = vld [vmem:[#allocation6 + $0x2ac] ss:$16 sps:$4 sm:$0xff]  }
 0x197   : > { %v989_v33 = vmax.f32 %v8492_v19, 0.0  ;;  %v8510_v34 = vadd.f32 %v8337_v53, %v984_v20  ;;  %v7203_v19 = vld [vmem:[#allocation6 + $0x2c0] ss:$16 sps:$4 sm:$0xff]  }
 0x198   : > { %v1015_v41 = vsel %vm8487_vm10, %v991_v26, 0.0  ;;  %4393 = vmatprep.mubr.bf16.mxu0 %v2828_v29  ;;  %4958 = vmatprep.mubr.bf16.mxu1 %v2828_v29  ;;  %vm1393_vm10 = vcmp.eq.s32.totalorder %v1392_v27, 1 }
 0x199   : > { %1019 = vst [vmem:[#allocation2 + $0x40] sm:$0x3] %v1015_v41  ;;  %v1013_v43 = vsel %vm8504_vm11, %v989_v33, 0.0  ;;  %v990_v46 = vmax.f32 %v8510_v34, 0.0  ;;  %v6417_v47 = vpop.f32.mrb[20].mxu0  ;;  %7512 = vmatmul.mubr.msk.bf16.gmra.mrb[64].mxu0 %vm7510_vm4, %v7511_v49  ;;  %7515 = vmatmul.mubr.msk.bf16.gmra.mrb[64].mxu1 %vm7510_vm4, %v7511_v49  ;;  %v6425_v51 = vpop.f32.mrb[20].mxu1 }
 0x19a   : > { %1017 = vst [vmem:[#allocation2 + $0x30] sm:$0xff] %v1013_v43  ;;  %v1111_v28 = vadd.f32 %v6417_v47, %v6409_v8  ;;  %v1102_v52 = vpop.f32.mrb[21].mxu0  ;;  %4469 = vmatpush1.bf16.msra.mxu0 %v7179_v30  ;;  %5034 = vmatpush1.bf16.msra.mxu1 %v7182_v31  ;;  %v1164_v36 = vpop.f32.mrb[21].mxu1  ;;  %v1385_v31 = vstv %s1384_s27  ;;  %v7205_v47 = vld [vmem:[#allocation6 + $0x2c4] ss:$16 sps:$4 sm:$0xff]  }
 0x19b   : > { %v1014_v24 = vsel %vm8516_vm13, %v990_v46, 0.0  ;;  %v1103_v32 = vadd.f32 %v1102_v52, %v1054_v12  ;;  %v6418_v35 = vpop.f32.mrb[22].mxu0  ;;  %4470 = vmatprep.subr.bf16.mxu0 %v7187_v39  ;;  %5035 = vmatprep.subr.bf16.mxu1 %v7190_v40  ;;  %v6426_v57 = vpop.f32.mrb[22].mxu1  ;;  %v7197_v39 = vld [vmem:[#allocation6 + $0x2a0] ss:$16 sps:$4 sm:$0xff]   ;;  %vm1386_vm8 = vcmp.eq.s32.totalorder %v1385_v31, 1 }
 0x19c   : > { %1018 = vst [vmem:[#allocation2 + $0x38] sm:$0xff] %v1014_v24  ;;  %v1180_v55 = vadd.f32 %v6425_v51, %v1111_v28  ;;  %v1105_v58 = vpop.f32.mrb[23].mxu0  ;;  %v1167_v62 = vpop.f32.mrb[23].mxu1  ;;  %v7200_v40 = vld [vmem:[#allocation6 + $0x2a8] ss:$16 sps:$4 sm:$0xff]   ;;  %v8626_v28 = vpack.c.bf16 %v990_v46, %v989_v33  ;;  %vm1389_vm9 = vmand %vm361_vm3, %vm1386_vm8 }
 0x19d   : > { %v1178_v59 = vadd.f32 %v1164_v36, %v1103_v32  ;;  %v1106_v61 = vadd.f32 %v1105_v58, %v1057_v21  ;;  %v7206_v34 = vld [vmem:[#allocation6 + $0x2c8] ss:$16 sps:$4 sm:$0xff]   ;;  %v7214_v46 = vld [vmem:[#allocation6 + $0x2ec] ss:$16 sps:$4 sm:$0xff]   ;;  %vm8651_vm11 = vmand %vm356_vm5, %vm1386_vm8 }
 0x19e   : > { %v1183_v63 = vadd.f32 %v8337_v53, %v1180_v55  ;;  %4471 = vmatpush1.bf16.msra.mxu0 %v7185_v50  ;;  %5036 = vmatpush1.bf16.msra.mxu1 %v7188_v13  ;;  %vm8657_vm13 = vmand %vm1389_vm9, %vm1393_vm10  ;;  %v7226_v31 = vld [vmem:[#allocation6 + $0x32c] ss:$16 sps:$4 sm:$0xff]  }
 0x19f   : > { %v8574_v3 = vadd.f32 %v8337_v53, %v1178_v59  ;;  %v1179_v4 = vadd.f32 %v1167_v62, %v1106_v61  ;;  %4472 = vmatprep.subr.bf16.mxu0 %v7193_v54  ;;  %5037 = vmatprep.subr.bf16.mxu1 %v7196_v44  ;;  %v8667_v62 = vstv %s1579_s11  ;;  %vm8674_vm0 = vmand %vm8651_vm11, %vm1393_vm10  ;;  %s2171_s11 = scalar_select %p8920_p4, 1, 0 }
 0x1a0   : > { %v1186_v6 = vmax.f32 %v1183_v63, 0.0  ;;  %vm8686_vm4 = vmand %vm1386_vm8, %vm1393_vm10  ;;  %vm1581_vm12 = vcmp.eq.s32.totalorder %v8667_v62, 1 }
 0x1a1   : > { %v1184_v8 = vmax.f32 %v8574_v3, 0.0  ;;  %v8588_v9 = vadd.f32 %v8337_v53, %v1179_v4  ;;  %v6433_v10 = vpop.f32.mrb[24].mxu0  ;;  %v6441_v14 = vpop.f32.mrb[24].mxu1  ;;  %v7209_v4 = vld [vmem:[#allocation6 + $0x2e0] ss:$16 sps:$4 sm:$0xff]   ;;  %vm8725_vm15 = vmand %vm361_vm3, %vm1581_vm12 }
 0x1a2   : > { %v1210_v11 = vsel %vm1201_vm1, %v1186_v6, 0.0  ;;  %v1249_v15 = vpop.f32.mrb[25].mxu0  ;;  %4473 = vmatpush1.bf16.msra.mxu0 %v7191_v1  ;;  %5038 = vmatpush1.bf16.msra.mxu1 %v7194_v2  ;;  %v1306_v18 = vadd.f32 %v6441_v14, %v6433_v10  ;;  %v1297_v20 = vpop.f32.mrb[25].mxu1  ;;  %v7217_v10 = vld [vmem:[#allocation6 + $0x304] ss:$16 sps:$4 sm:$0xff]   ;;  %vm8796_vm10 = vmpackc.low %vm8686_vm4, %vm8674_vm0  ;;  %v1782_v1 = vstv %s1781_s23 }
 0x1a3   : > { %1214 = vst [vmem:[#allocation2 + $0x58] sm:$0x3] %v1210_v11  ;;  %v1208_v16 = vsel %vm8580_vm2, %v1184_v8, 0.0  ;;  %v1185_v17 = vmax.f32 %v8588_v9, 0.0  ;;  %v6434_v21 = vpop.f32.mrb[26].mxu0  ;;  %v2694_v22 = vld [vmem:[#allocation2 + $0x31] sm:$0xff]  ;;  %4474 = vmatprep.subr.bf16.mxu0 %v7199_v5  ;;  %5039 = vmatprep.subr.bf16.mxu1 %v7202_v0  ;;  %v1298_v25 = vadd.f32 %v1297_v20, %v1249_v15  ;;  %vm8737_vm2 = vmand %vm356_vm5, %vm1581_vm12 }
 0x1a4   : > { %v2695_v23 = vld [vmem:[#allocation2 + $0x39] sm:$0xff]  ;;  %1212 = vst [vmem:[#allocation2 + $0x48] sm:$0xff] %v1208_v16  ;;  %v6442_v26 = vpop.f32.mrb[26].mxu1  ;;  %v1252_v29 = vpop.f32.mrb[27].mxu0  ;;  %v1587_v21 = vstv %s1586_s12 }
 0x1a5   : > { %v2837_v30 = vpack.c.bf16 %v2695_v23, %v2694_v22  ;;  %v1209_v41 = vsel %vm8595_vm6, %v1185_v17, 0.0  ;;  %v1300_v43 = vpop.f32.mrb[27].mxu1  ;;  %v7212_v5 = vld [vmem:[#allocation6 + $0x2e8] ss:$16 sps:$4 sm:$0xff]   ;;  %v7220_v11 = vld [vmem:[#allocation6 + $0x30c] ss:$16 sps:$4 sm:$0xff]   ;;  %v8708_v23 = vpack.c.bf16 %v1185_v17, %v1184_v8 }
 0x1a6   : > { %1213 = vst [vmem:[#allocation2 + $0x50] sm:$0xff] %v1209_v41  ;;  %v1301_v49 = vadd.f32 %v1300_v43, %v1252_v29  ;;  %4475 = vmatpush1.bf16.msra.mxu0 %v7197_v39  ;;  %5040 = vmatpush1.bf16.msra.mxu1 %v7200_v40  ;;  %v7218_v3 = vld [vmem:[#allocation6 + $0x308] ss:$16 sps:$4 sm:$0xff]   ;;  %v7223_v9 = vld [vmem:[#allocation6 + $0x324] ss:$16 sps:$4 sm:$0xff]   ;;  %vm1588_vm1 = vcmp.eq.s32.totalorder %v1587_v21, 1 }
 0x1a7   : > { %4403 = vmatprep.mubr.bf16.mxu0 %v2837_v30  ;;  %4968 = vmatprep.mubr.bf16.mxu1 %v2837_v30  ;;  %vm1591_vm6 = vmand %vm8725_vm15, %vm1588_vm1  ;;  %v7241_v15 = vld [vmem:[#allocation6 + $0x384] ss:$16 sps:$4 sm:$0xff]   ;;  %v7293_v22 = vld [vmem:[#allocation6 + $0x4a0] ss:$16 sps:$4 sm:$0xff]  }
 0x1a8   : > { %7518 = vmatmul.mubr.msk.bf16.gmra.mrb[68].mxu0 %vm8618_vm7, %v8626_v28  ;;  %7521 = vmatmul.mubr.msk.bf16.gmra.mrb[68].mxu1 %vm8618_vm7, %v8626_v28  ;;  %vm8755_vm8 = vmand %vm8737_vm2, %vm1588_vm1 }
 0x1a9   : > { %v6449_v33 = vpop.f32.mrb[28].mxu0  ;;  %4476 = vmatprep.subr.bf16.mxu0 %v7205_v47  ;;  %5041 = vmatprep.subr.bf16.mxu1 %v7208_v48  ;;  %v6457_v52 = vpop.f32.mrb[28].mxu1  ;;  %vm8770_vm9 = vmand %vm1581_vm12, %vm1588_vm1 }
 0x1aa   : > { %v1375_v51 = vadd.f32 %v6449_v33, %v1306_v18  ;;  %v1359_v13 = vpop.f32.mrb[29].mxu0  ;;  %v1444_v32 = vpop.f32.mrb[29].mxu1  ;;  %4477 = vmatpush1.bf16.msra.mxu0 %v7203_v19  ;;  %5042 = vmatpush1.bf16.msra.mxu1 %v7206_v34  ;;  %v7221_v34 = vld [vmem:[#allocation6 + $0x320] ss:$16 sps:$4 sm:$0xff]   ;;  %v7224_v33 = vld [vmem:[#allocation6 + $0x328] ss:$16 sps:$4 sm:$0xff]  }
 0x1ab   : > { %v1373_v54 = vadd.f32 %v1359_v13, %v1298_v25  ;;  %v6450_v36 = vpop.f32.mrb[30].mxu0  ;;  %v6458_v44 = vpop.f32.mrb[30].mxu1  ;;  %4478 = vmatprep.subr.bf16.mxu0 %v7211_v42  ;;  %5043 = vmatprep.subr.bf16.mxu1 %v7214_v46 }
 0x1ac   : > { %v1378_v35 = vadd.f32 %v8337_v53, %v1375_v51  ;;  %v1362_v55 = vpop.f32.mrb[31].mxu0  ;;  %v1447_v59 = vpop.f32.mrb[31].mxu1  ;;  %v7229_v51 = vld [vmem:[#allocation6 + $0x344] ss:$16 sps:$4 sm:$0xff]  }
 0x1ad   : > { %v8662_v57 = vadd.f32 %v8337_v53, %v1373_v54  ;;  %v1374_v58 = vadd.f32 %v1362_v55, %v1301_v49  ;;  %v2696_v60 = vld [vmem:[#allocation2 + $0x49] sm:$0xff]  ;;  %v2697_v61 = vld [vmem:[#allocation2 + $0x51] sm:$0xff] }
 0x1ae   : > { %v1381_v63 = vmax.f32 %v1378_v35, 0.0  ;;  %v2846_v2 = vpack.c.bf16 %v2697_v61, %v2696_v60  ;;  %4479 = vmatpush1.bf16.msra.mxu0 %v7209_v4  ;;  %5044 = vmatpush1.bf16.msra.mxu1 %v7212_v5  ;;  %v7245_v54 = vld [vmem:[#allocation6 + $0x3a0] ss:$16 sps:$4 sm:$0xff]  }
 0x1af   : > { %v1379_v0 = vmax.f32 %v8662_v57, 0.0  ;;  %v8680_v6 = vadd.f32 %v8337_v53, %v1374_v58  ;;  %4480 = vmatprep.subr.bf16.mxu0 %v7217_v10  ;;  %5045 = vmatprep.subr.bf16.mxu1 %v7220_v11  ;;  %v7233_v57 = vld [vmem:[#allocation6 + $0x360] ss:$16 sps:$4 sm:$0xff]  }
 0x1b0   : > { %v1405_v14 = vsel %vm8657_vm13, %v1381_v63, 0.0  ;;  %4413 = vmatprep.mubr.bf16.mxu0 %v2846_v2  ;;  %4978 = vmatprep.mubr.bf16.mxu1 %v2846_v2 }
 0x1b1   : > { %1409 = vst [vmem:[#allocation2 + $0x70] sm:$0x3] %v1405_v14  ;;  %v1403_v16 = vsel %vm8674_vm0, %v1379_v0, 0.0  ;;  %v1380_v18 = vmax.f32 %v8680_v6, 0.0  ;;  %v6465_v20 = vpop.f32.mrb[32].mxu0  ;;  %7524 = vmatmul.mubr.msk.bf16.gmra.mrb[72].mxu0 %vm8700_vm14, %v8708_v23  ;;  %7527 = vmatmul.mubr.msk.bf16.gmra.mrb[72].mxu1 %vm8700_vm14, %v8708_v23  ;;  %v6473_v25 = vpop.f32.mrb[32].mxu1  ;;  %v8780_v14 = vstv %s1774_s13 }
 0x1b2   : > { %1407 = vst [vmem:[#allocation2 + $0x60] sm:$0xff] %v1403_v16  ;;  %v1501_v12 = vadd.f32 %v6465_v20, %v6457_v52  ;;  %v1492_v26 = vpop.f32.mrb[33].mxu0  ;;  %v1554_v29 = vpop.f32.mrb[33].mxu1  ;;  %4481 = vmatpush1.bf16.msra.mxu0 %v7215_v7  ;;  %5046 = vmatpush1.bf16.msra.mxu1 %v7218_v3  ;;  %v7232_v52 = vld [vmem:[#allocation6 + $0x34c] ss:$16 sps:$4 sm:$0xff]   ;;  %vm1776_vm11 = vcmp.eq.s32.totalorder %v8780_v14, 1 }
 0x1b3   : > { %v1404_v8 = vsel %vm8686_vm4, %v1380_v18, 0.0  ;;  %v1493_v17 = vadd.f32 %v1492_v26, %v1444_v32  ;;  %v6466_v30 = vpop.f32.mrb[34].mxu0  ;;  %v6474_v41 = vpop.f32.mrb[34].mxu1  ;;  %4482 = vmatprep.subr.bf16.mxu0 %v7223_v9  ;;  %5047 = vmatprep.subr.bf16.mxu1 %v7226_v31  ;;  %v7227_v16 = vld [vmem:[#allocation6 + $0x340] ss:$16 sps:$4 sm:$0xff]   ;;  %v8804_v9 = vpack.c.bf16 %v1380_v18, %v1379_v0  ;;  %vm1779_vm13 = vmand %vm361_vm3, %vm1776_vm11  ;;  %vm1783_vm0 = vcmp.eq.s32.totalorder %v1782_v1, 1 }
 0x1b4   : > { %1408 = vst [vmem:[#allocation2 + $0x68] sm:$0xff] %v1404_v8  ;;  %v1570_v39 = vadd.f32 %v6473_v25, %v1501_v12  ;;  %v1495_v43 = vpop.f32.mrb[35].mxu0  ;;  %v1557_v27 = vpop.f32.mrb[35].mxu1  ;;  %v7230_v20 = vld [vmem:[#allocation6 + $0x348] ss:$16 sps:$4 sm:$0xff]   ;;  %vm8832_vm4 = vmand %vm356_vm5, %vm1776_vm11 }
 0x1b5   : > { %v1568_v47 = vadd.f32 %v1554_v29, %v1493_v17  ;;  %v1496_v49 = vadd.f32 %v1495_v43, %v1447_v59  ;;  %v7235_v12 = vld [vmem:[#allocation6 + $0x364] ss:$16 sps:$4 sm:$0xff]   ;;  %v7238_v25 = vld [vmem:[#allocation6 + $0x36c] ss:$16 sps:$4 sm:$0xff]   ;;  %v7236_v6 = vld [vmem:[#allocation6 + $0x368] ss:$16 sps:$4 sm:$0xff]  }
 0x1b6   : > { %v1573_v19 = vadd.f32 %v8337_v53, %v1570_v39  ;;  %4483 = vmatpush1.bf16.msra.mxu0 %v7221_v34  ;;  %5048 = vmatpush1.bf16.msra.mxu1 %v7224_v33  ;;  %v7244_v18 = vld [vmem:[#allocation6 + $0x38c] ss:$16 sps:$4 sm:$0xff]   ;;  %vm8838_vm12 = vmand %vm1779_vm13, %vm1783_vm0  ;;  %v7305_v3 = vld [vmem:[#allocation6 + $0x4e0] ss:$16 sps:$4 sm:$0xff]  }
 0x1b7   : > { %v8750_v42 = vadd.f32 %v8337_v53, %v1568_v47  ;;  %v1569_v46 = vadd.f32 %v1557_v27, %v1496_v49  ;;  %4484 = vmatprep.subr.bf16.mxu0 %v7229_v51  ;;  %5049 = vmatprep.subr.bf16.mxu1 %v7232_v52  ;;  %vm8850_vm15 = vmand %vm8832_vm4, %vm1783_vm0  ;;  %v7262_v31 = vld [vmem:[#allocation6 + $0x3ec] ss:$16 sps:$4 sm:$0xff]  }
 0x1b8   : > { %v1576_v13 = vmax.f32 %v1573_v19, 0.0  ;;  %vm8865_vm1 = vmand %vm1776_vm11, %vm1783_vm0 }
 0x1b9   : > { %v1574_v24 = vmax.f32 %v8750_v42, 0.0  ;;  %v8763_v32 = vadd.f32 %v8337_v53, %v1569_v46  ;;  %v6481_v36 = vpop.f32.mrb[36].mxu0  ;;  %v6489_v55 = vpop.f32.mrb[36].mxu1  ;;  %v7248_v42 = vld [vmem:[#allocation6 + $0x3a8] ss:$16 sps:$4 sm:$0xff]  }
 0x1ba   : > { %v1600_v35 = vsel %vm1591_vm6, %v1576_v13, 0.0  ;;  %v1639_v56 = vpop.f32.mrb[37].mxu0  ;;  %v1696_v60 = vadd.f32 %v6489_v55, %v6481_v36  ;;  %v1687_v61 = vpop.f32.mrb[37].mxu1  ;;  %4485 = vmatpush1.bf16.msra.mxu0 %v7227_v16  ;;  %5050 = vmatpush1.bf16.msra.mxu1 %v7230_v20  ;;  %v8854_v13 = vstv %s1969_s24  ;;  %v7239_v36 = vld [vmem:[#allocation6 + $0x380] ss:$16 sps:$4 sm:$0xff]   ;;  %vm8880_vm6 = vmpackc.low %vm8770_vm9, %vm8755_vm8 }
 0x1bb   : > { %1604 = vst [vmem:[#allocation2 + $0x88] sm:$0x3] %v1600_v35  ;;  %v1598_v58 = vsel %vm8755_vm8, %v1574_v24, 0.0  ;;  %v1575_v59 = vmax.f32 %v8763_v32, 0.0  ;;  %v6482_v62 = vpop.f32.mrb[38].mxu0  ;;  %v2698_v63 = vld [vmem:[#allocation2 + $0x61] sm:$0xff]  ;;  %v1688_v4 = vadd.f32 %v1687_v61, %v1639_v56  ;;  %4486 = vmatprep.subr.bf16.mxu0 %v7235_v12  ;;  %5051 = vmatprep.subr.bf16.mxu1 %v7238_v25 }
 0x1bc   : > { %v2699_v2 = vld [vmem:[#allocation2 + $0x69] sm:$0xff]  ;;  %1602 = vst [vmem:[#allocation2 + $0x78] sm:$0xff] %v1598_v58  ;;  %v6490_v5 = vpop.f32.mrb[38].mxu1  ;;  %v1642_v10 = vpop.f32.mrb[39].mxu0  ;;  %vm1971_vm2 = vcmp.eq.s32.totalorder %v8854_v13, 1 }
 0x1bd   : > { %v2855_v11 = vpack.c.bf16 %v2699_v2, %v2698_v63  ;;  %v1599_v21 = vsel %vm8770_vm9, %v1575_v59, 0.0  ;;  %v1690_v7 = vpop.f32.mrb[39].mxu1  ;;  %v7242_v35 = vld [vmem:[#allocation6 + $0x388] ss:$16 sps:$4 sm:$0xff]   ;;  %v7247_v58 = vld [vmem:[#allocation6 + $0x3a4] ss:$16 sps:$4 sm:$0xff]   ;;  %v1977_v5 = vstv %s1976_s29  ;;  %vm1974_vm8 = vmand %vm361_vm3, %vm1971_vm2 }
 0x1be   : > { %1603 = vst [vmem:[#allocation2 + $0x80] sm:$0xff] %v1599_v21  ;;  %v1691_v26 = vadd.f32 %v1690_v7, %v1642_v10  ;;  %4487 = vmatpush1.bf16.msra.mxu0 %v7233_v57  ;;  %5052 = vmatpush1.bf16.msra.mxu1 %v7236_v6  ;;  %v7253_v32 = vld [vmem:[#allocation6 + $0x3c4] ss:$16 sps:$4 sm:$0xff]   ;;  %v7256_v7 = vld [vmem:[#allocation6 + $0x3cc] ss:$16 sps:$4 sm:$0xff]   ;;  %vm1978_vm9 = vcmp.eq.s32.totalorder %v1977_v5, 1  ;;  %vm8914_vm11 = vmand %vm356_vm5, %vm1971_vm2 }
 0x1bf   : > { %4423 = vmatprep.mubr.bf16.mxu0 %v2855_v11  ;;  %4988 = vmatprep.mubr.bf16.mxu1 %v2855_v11  ;;  %v8888_v11 = vpack.c.bf16 %v1575_v59, %v1574_v24  ;;  %vm1981_vm13 = vmand %vm1974_vm8, %vm1978_vm9  ;;  %v7317_v10 = vld [vmem:[#allocation6 + $0x520] ss:$16 sps:$4 sm:$0xff]  }
 0x1c0   : > { %7530 = vmatmul.mubr.msk.bf16.gmra.mrb[76].mxu0 %vm8796_vm10, %v8804_v9  ;;  %7533 = vmatmul.mubr.msk.bf16.gmra.mrb[76].mxu1 %vm8796_vm10, %v8804_v9  ;;  %vm8934_vm0 = vmand %vm8914_vm11, %vm1978_vm9 }
 0x1c1   : > { %v6497_v0 = vpop.f32.mrb[40].mxu0  ;;  %v6505_v17 = vpop.f32.mrb[40].mxu1  ;;  %4488 = vmatprep.subr.bf16.mxu0 %v7241_v15  ;;  %5053 = vmatprep.subr.bf16.mxu1 %v7244_v18  ;;  %v7251_v18 = vld [vmem:[#allocation6 + $0x3c0] ss:$16 sps:$4 sm:$0xff]   ;;  %vm8947_vm4 = vmand %vm1971_vm2, %vm1978_vm9 }
 0x1c2   : > { %v1765_v8 = vadd.f32 %v6497_v0, %v1696_v60  ;;  %v1749_v29 = vpop.f32.mrb[41].mxu0  ;;  %v1834_v39 = vpop.f32.mrb[41].mxu1  ;;  %v7250_v60 = vld [vmem:[#allocation6 + $0x3ac] ss:$16 sps:$4 sm:$0xff]   ;;  %4489 = vmatpush1.bf16.msra.mxu0 %v7239_v36  ;;  %5054 = vmatpush1.bf16.msra.mxu1 %v7242_v35  ;;  %v8957_v36 = vstv %s2164_s9  ;;  %vm8977_vm2 = vmpackc.low %vm8865_vm1, %vm8850_vm15 }
 0x1c3   : > { %v1763_v30 = vadd.f32 %v1749_v29, %v1688_v4  ;;  %v6498_v40 = vpop.f32.mrb[42].mxu0  ;;  %v6506_v43 = vpop.f32.mrb[42].mxu1  ;;  %4490 = vmatprep.subr.bf16.mxu0 %v7247_v58  ;;  %5055 = vmatprep.subr.bf16.mxu1 %v7250_v60  ;;  %v7257_v58 = vld [vmem:[#allocation6 + $0x3e0] ss:$16 sps:$4 sm:$0xff]   ;;  %v7260_v60 = vld [vmem:[#allocation6 + $0x3e8] ss:$16 sps:$4 sm:$0xff]  }
 0x1c4   : > { %v1768_v41 = vadd.f32 %v8337_v53, %v1765_v8  ;;  %v1752_v47 = vpop.f32.mrb[43].mxu0  ;;  %v1837_v19 = vpop.f32.mrb[43].mxu1  ;;  %v7254_v8 = vld [vmem:[#allocation6 + $0x3c8] ss:$16 sps:$4 sm:$0xff]  }
 0x1c5   : > { %v8843_v49 = vadd.f32 %v8337_v53, %v1763_v30  ;;  %v1764_v27 = vadd.f32 %v1752_v47, %v1691_v26  ;;  %v2700_v34 = vld [vmem:[#allocation2 + $0x79] sm:$0xff]  ;;  %v2701_v33 = vld [vmem:[#allocation2 + $0x81] sm:$0xff] }
 0x1c6   : > { %v1771_v46 = vmax.f32 %v1768_v41, 0.0  ;;  %v2864_v52 = vpack.c.bf16 %v2701_v33, %v2700_v34  ;;  %4491 = vmatpush1.bf16.msra.mxu0 %v7245_v54  ;;  %5056 = vmatpush1.bf16.msra.mxu1 %v7248_v42  ;;  %v7259_v30 = vld [vmem:[#allocation6 + $0x3e4] ss:$16 sps:$4 sm:$0xff]   ;;  %v2172_v42 = vstv %s2171_s11 }
 0x1c7   : > { %v1769_v55 = vmax.f32 %v8843_v49, 0.0  ;;  %v8858_v56 = vadd.f32 %v8337_v53, %v1764_v27  ;;  %4492 = vmatprep.subr.bf16.mxu0 %v7253_v32  ;;  %5057 = vmatprep.subr.bf16.mxu1 %v7256_v7  ;;  %v7265_v54 = vld [vmem:[#allocation6 + $0x404] ss:$16 sps:$4 sm:$0xff]   ;;  %v9013_v7 = vld [vmem:[#allocation8] ss:$0 sm:$0xff] }
 0x1c8   : > { %v1795_v61 = vsel %vm8838_vm12, %v1771_v46, 0.0  ;;  %4433 = vmatprep.mubr.bf16.mxu0 %v2864_v52  ;;  %4998 = vmatprep.mubr.bf16.mxu1 %v2864_v52  ;;  %vm2166_vm12 = vcmp.eq.s32.totalorder %v8957_v36, 1 }
 0x1c9   : > { %1799 = vst [vmem:[#allocation2 + $0xa0] sm:$0x3] %v1795_v61  ;;  %v1793_v63 = vsel %vm8850_vm15, %v1769_v55, 0.0  ;;  %v1770_v2 = vmax.f32 %v8858_v56, 0.0  ;;  %v6513_v4 = vpop.f32.mrb[44].mxu0  ;;  %7536 = vmatmul.mubr.msk.bf16.gmra.mrb[80].mxu0 %vm8880_vm6, %v8888_v11  ;;  %7539 = vmatmul.mubr.msk.bf16.gmra.mrb[80].mxu1 %vm8880_vm6, %v8888_v11  ;;  %v6521_v14 = vpop.f32.mrb[44].mxu1  ;;  %vm2169_vm15 = vmand %vm361_vm3, %vm2166_vm12 }
 0x1ca   : > { %1797 = vst [vmem:[#allocation2 + $0x90] sm:$0xff] %v1793_v63  ;;  %v1891_v44 = vadd.f32 %v6513_v4, %v6505_v17  ;;  %v1882_v16 = vpop.f32.mrb[45].mxu0  ;;  %v1944_v20 = vpop.f32.mrb[45].mxu1  ;;  %4493 = vmatpush1.bf16.msra.mxu0 %v7251_v18  ;;  %5058 = vmatpush1.bf16.msra.mxu1 %v7254_v8  ;;  %vm9009_vm8 = vmand %vm356_vm5, %vm2166_vm12 }
 0x1cb   : > { %v1794_v24 = vsel %vm8865_vm1, %v1770_v2, 0.0  ;;  %v1883_v59 = vadd.f32 %v1882_v16, %v1834_v39  ;;  %v6514_v21 = vpop.f32.mrb[46].mxu0  ;;  %v6522_v25 = vpop.f32.mrb[46].mxu1  ;;  %4494 = vmatprep.subr.bf16.mxu0 %v7259_v30  ;;  %5059 = vmatprep.subr.bf16.mxu1 %v7262_v31  ;;  %vm2173_vm1 = vcmp.eq.s32.totalorder %v2172_v42, 1  ;;  %v7352_v31 = vld [vmem:[#allocation6 + $0x5cc] ss:$16 sps:$4 sm:$0xff]  }
 0x1cc   : > { %1798 = vst [vmem:[#allocation2 + $0x98] sm:$0xff] %v1794_v24  ;;  %v1960_v12 = vadd.f32 %v6521_v14, %v1891_v44  ;;  %v1885_v26 = vpop.f32.mrb[47].mxu0  ;;  %v1947_v0 = vpop.f32.mrb[47].mxu1  ;;  %v7268_v44 = vld [vmem:[#allocation6 + $0x40c] ss:$16 sps:$4 sm:$0xff]   ;;  %vm9017_vm9 = vmand %vm2169_vm15, %vm2173_vm1 }
 0x1cd   : > { %v1958_v1 = vadd.f32 %v1944_v20, %v1883_v59  ;;  %v1886_v6 = vadd.f32 %v1885_v26, %v1837_v19  ;;  %v8985_v59 = vpack.c.bf16 %v1770_v2, %v1769_v55  ;;  %vm9029_vm11 = vmand %vm9009_vm8, %vm2173_vm1  ;;  %v7271_v2 = vld [vmem:[#allocation6 + $0x424] ss:$16 sps:$4 sm:$0xff]   ;;  %v7329_v24 = vld [vmem:[#allocation6 + $0x560] ss:$16 sps:$4 sm:$0xff]  }
 0x1ce   : > { %v1963_v15 = vadd.f32 %v8337_v53, %v1960_v12  ;;  %4495 = vmatpush1.bf16.msra.mxu0 %v7257_v58  ;;  %5060 = vmatpush1.bf16.msra.mxu1 %v7260_v60  ;;  %vm9050_vm15 = vmpackc.low %vm8947_vm4, %vm8934_vm0 }
 0x1cf   : > { %v8927_v17 = vadd.f32 %v8337_v53, %v1958_v1  ;;  %v1959_v29 = vadd.f32 %v1947_v0, %v1886_v6  ;;  %4577 = vmatprep.subr.bf16.mxu0 %v7265_v54  ;;  %5142 = vmatprep.subr.bf16.mxu1 %v7268_v44  ;;  %v2723_v0 = vld [vmem:[#allocation2 + $0x20] sm:$0xff] }
 0x1d0   : > { %v1966_v39 = vmax.f32 %v1963_v15, 0.0 }
 0x1d1   : > { %v1964_v41 = vmax.f32 %v8927_v17, 0.0  ;;  %v8940_v43 = vadd.f32 %v8337_v53, %v1959_v29  ;;  %v6529_v47 = vpop.f32.mrb[48].mxu0 }
 0x1d2   : > { %v1990_v48 = vsel %vm1981_vm13, %v1966_v39, 0.0  ;;  %v2029_v19 = vpop.f32.mrb[49].mxu0  ;;  %vm9042_vm13 = vmand %vm2166_vm12, %vm2173_vm1 }
 0x1d3   : > { %1994 = vst [vmem:[#allocation2 + $0xb8] sm:$0x3] %v1990_v48  ;;  %v1988_v53 = vsel %vm8934_vm0, %v1964_v41, 0.0  ;;  %v1965_v34 = vmax.f32 %v8940_v43, 0.0  ;;  %v2702_v33 = vld [vmem:[#allocation2 + $0x91] sm:$0xff]  ;;  %v2703_v46 = vld [vmem:[#allocation2 + $0x99] sm:$0xff] }
 0x1d4   : > { %v6530_v52 = vpop.f32.mrb[50].mxu0  ;;  %v6537_v13 = vpop.f32.mrb[48].mxu1  ;;  %1992 = vst [vmem:[#allocation2 + $0xa8] sm:$0xff] %v1988_v53  ;;  %v2873_v35 = vpack.c.bf16 %v2703_v46, %v2702_v33  ;;  %v2722_v48 = vld [vmem:[#allocation2 + $0x18] sm:$0xff] }
 0x1d5   : > { %v2086_v61 = vadd.f32 %v6537_v13, %v6529_v47  ;;  %v2032_v63 = vpop.f32.mrb[51].mxu0  ;;  %v2077_v4 = vpop.f32.mrb[49].mxu1  ;;  %v1989_v5 = vsel %vm8947_vm4, %v1965_v34, 0.0  ;;  %v2360_v47 = vstv %s2359_s26  ;;  %v2821_v33 = vpack.c.bf16 %v2723_v0, %v2722_v48  ;;  %v7277_v0 = vld [vmem:[#allocation6 + $0x444] ss:$16 sps:$4 sm:$0xff]  }
 0x1d6   : > { %v2078_v14 = vadd.f32 %v2077_v4, %v2029_v19  ;;  %v6538_v16 = vpop.f32.mrb[50].mxu1  ;;  %1993 = vst [vmem:[#allocation2 + $0xb0] sm:$0xff] %v1989_v5  ;;  %4443 = vmatprep.mubr.bf16.mxu0 %v2873_v35  ;;  %5008 = vmatprep.mubr.bf16.mxu1 %v2873_v35  ;;  %v9058_v35 = vpack.c.bf16 %v1965_v34, %v1964_v41  ;;  %vm2361_vm0 = vcmp.eq.s32.totalorder %v2360_v47, 1  ;;  %v2367_v41 = vstv %s2366_s2  ;;  %v2707_v4 = vld [vmem:[#allocation2 + $0xa] sm:$0xff]  ;;  %v7347_v52 = vld [vmem:[#allocation6 + $0x5c0] ss:$16 sps:$4 sm:$0xff]  }
 0x1d7   : > { %v2080_v32 = vpop.f32.mrb[51].mxu1  ;;  %7542 = vmatmul.mubr.msk.bf16.gmra.mrb[84].mxu0 %vm8977_vm2, %v8985_v59  ;;  %7545 = vmatmul.mubr.msk.bf16.gmra.mrb[84].mxu1 %vm8977_vm2, %v8985_v59  ;;  %vm2364_vm4 = vmand %vm361_vm3, %vm2361_vm0  ;;  %vm2368_vm12 = vcmp.eq.s32.totalorder %v2367_v41, 1  ;;  %v7278_v48 = vld [vmem:[#allocation6 + $0x448] ss:$16 sps:$4 sm:$0xff]   ;;  %v7289_v41 = vld [vmem:[#allocation6 + $0x484] ss:$16 sps:$4 sm:$0xff]  }
 0x1d8   : > { %v2081_v51 = vadd.f32 %v2080_v32, %v2032_v63  ;;  %v2706_v63 = vld [vmem:[#allocation2 + $0x2] sm:$0xff]  ;;  %vm2362_vm1 = vmand %vm356_vm5, %vm2361_vm0 }
 0x1d9   : > { %v6545_v62 = vpop.f32.mrb[52].mxu0  ;;  %v7263_v32 = vld [vmem:[#allocation6 + $0x400] ss:$16 sps:$4 sm:$0xff]   ;;  %vm2371_vm8 = vmand %vm2364_vm4, %vm2368_vm12 }
 0x1da   : > { %v2155_v49 = vadd.f32 %v6545_v62, %v2086_v61  ;;  %v2139_v55 = vpop.f32.mrb[53].mxu0  ;;  %vm9087_vm3 = vmand %vm2362_vm1, %vm2368_vm12 }
 0x1db   : > { %v2153_v56 = vadd.f32 %v2139_v55, %v2078_v14  ;;  %v6546_v20 = vpop.f32.mrb[54].mxu0  ;;  %v6553_v21 = vpop.f32.mrb[52].mxu1  ;;  %v7266_v55 = vld [vmem:[#allocation6 + $0x408] ss:$16 sps:$4 sm:$0xff]   ;;  %vm9100_vm5 = vmand %vm2361_vm0, %vm2368_vm12 }
 0x1dc   : > { %v2158_v12 = vadd.f32 %v9013_v7, %v2155_v49  ;;  %v2142_v26 = vpop.f32.mrb[55].mxu0  ;;  %v2224_v1 = vpop.f32.mrb[53].mxu1  ;;  %v2820_v49 = vpack.c.bf16 %v2707_v4, %v2706_v63  ;;  %v7274_v20 = vld [vmem:[#allocation6 + $0x42c] ss:$16 sps:$4 sm:$0xff]   ;;  %v7295_v63 = vld [vmem:[#allocation6 + $0x4a4] ss:$16 sps:$4 sm:$0xff]  }
 0x1dd   : > { %v2704_v57 = vld [vmem:[#allocation2 + $0xa9] sm:$0xff]  ;;  %v2705_v6 = vld [vmem:[#allocation2 + $0xb1] sm:$0xff]  ;;  %v9022_v15 = vadd.f32 %v9013_v7, %v2153_v56  ;;  %v2154_v18 = vadd.f32 %v2142_v26, %v2081_v51  ;;  %v6554_v8 = vpop.f32.mrb[54].mxu1 }
 0x1de   : > { %v2882_v29 = vpack.c.bf16 %v2705_v6, %v2704_v57  ;;  %v2161_v30 = vmax.f32 %v2158_v12, 0.0  ;;  %v2227_v39 = vpop.f32.mrb[55].mxu1  ;;  %v7298_v4 = vld [vmem:[#allocation6 + $0x4ac] ss:$16 sps:$4 sm:$0xff]  }
 0x1df   : > { %v2159_v19 = vmax.f32 %v9022_v15, 0.0  ;;  %v9035_v53 = vadd.f32 %v9013_v7, %v2154_v18  ;;  %v7350_v15 = vld [vmem:[#allocation6 + $0x5c8] ss:$16 sps:$4 sm:$0xff]   ;;  %v2805_v6 = vld [vmem:[#allocation2 + $0x52] sm:$0xff] }
 0x1e0   : > { %4453 = vmatprep.mubr.bf16.mxu0 %v2882_v29  ;;  %5018 = vmatprep.mubr.bf16.mxu1 %v2882_v29  ;;  %v2185_v46 = vsel %vm9017_vm9, %v2161_v30, 0.0  ;;  %v2708_v29 = vld [vmem:[#allocation2 + $0x1a] sm:$0xff]  ;;  %v2709_v30 = vld [vmem:[#allocation2 + $0x22] sm:$0xff]  ;;  %v2804_v12 = vld [vmem:[#allocation2 + $0x4a] sm:$0xff] }
 0x1e1   : > { %7548 = vmatmul.mubr.msk.bf16.gmra.mrb[88].mxu0 %vm9050_vm15, %v9058_v35  ;;  %7551 = vmatmul.mubr.msk.bf16.gmra.mrb[88].mxu1 %vm9050_vm15, %v9058_v35  ;;  %2189 = vst [vmem:[#allocation2 + $0xd0] sm:$0x3] %v2185_v46  ;;  %v2183_v40 = vsel %vm9029_vm11, %v2159_v19, 0.0  ;;  %v2160_v17 = vmax.f32 %v9035_v53, 0.0  ;;  %v6561_v27 = vpop.f32.mrb[56].mxu0  ;;  %v9116_v47 = vpack.c.bf16 %v2709_v30, %v2708_v29  ;;  %v2717_v29 = vld [vmem:[#allocation2 + $0x82] sm:$0xff] }
 0x1e2   : > { %4496 = vmatprep.mubr.bf16.mxu0 %v2821_v33  ;;  %5061 = vmatprep.mubr.bf16.mxu1 %v2821_v33  ;;  %2187 = vst [vmem:[#allocation2 + $0xc0] sm:$0xff] %v2183_v40  ;;  %v2281_v43 = vadd.f32 %v6561_v27, %v6553_v21  ;;  %v2272_v34 = vpop.f32.mrb[57].mxu0  ;;  %v7283_v33 = vld [vmem:[#allocation6 + $0x464] ss:$16 sps:$4 sm:$0xff]   ;;  %v7286_v46 = vld [vmem:[#allocation6 + $0x46c] ss:$16 sps:$4 sm:$0xff]  }
 0x1e3   : > { %v2184_v36 = vsel %vm9042_vm13, %v2160_v17, 0.0  ;;  %v2273_v58 = vadd.f32 %v2272_v34, %v2224_v1  ;;  %v6562_v60 = vpop.f32.mrb[58].mxu0  ;;  %v6569_v61 = vpop.f32.mrb[56].mxu1  ;;  %v7269_v1 = vld [vmem:[#allocation6 + $0x420] ss:$16 sps:$4 sm:$0xff]   ;;  %v2711_v34 = vld [vmem:[#allocation2 + $0x3a] sm:$0xff]  ;;  %v7589_v13 = vpack.c.bf16 %v2160_v17, %v2159_v19 }
 0x1e4   : > { %2188 = vst [vmem:[#allocation2 + $0xc8] sm:$0xff] %v2184_v36  ;;  %v2350_v5 = vadd.f32 %v6569_v61, %v2281_v43  ;;  %v2275_v54 = vpop.f32.mrb[59].mxu0  ;;  %v2334_v44 = vpop.f32.mrb[57].mxu1  ;;  %v7281_v40 = vld [vmem:[#allocation6 + $0x460] ss:$16 sps:$4 sm:$0xff]  }
 0x1e5   : > { %v2276_v14 = vadd.f32 %v2275_v54, %v2227_v39  ;;  %v2348_v16 = vadd.f32 %v2334_v44, %v2273_v58  ;;  %v6570_v42 = vpop.f32.mrb[58].mxu1  ;;  %v7280_v39 = vld [vmem:[#allocation6 + $0x44c] ss:$16 sps:$4 sm:$0xff]   ;;  %v7284_v27 = vld [vmem:[#allocation6 + $0x468] ss:$16 sps:$4 sm:$0xff]  }
 0x1e6   : > { %v2353_v51 = vadd.f32 %v9013_v7, %v2350_v5  ;;  %v2337_v62 = vpop.f32.mrb[59].mxu1  ;;  %v2710_v43 = vld [vmem:[#allocation2 + $0x32] sm:$0xff]  ;;  %v7290_v61 = vld [vmem:[#allocation6 + $0x488] ss:$16 sps:$4 sm:$0xff]  }
 0x1e7   : > { %v9084_v45 = vadd.f32 %v9013_v7, %v2348_v16  ;;  %v2349_v56 = vadd.f32 %v2337_v62, %v2276_v14  ;;  %v7292_v36 = vld [vmem:[#allocation6 + $0x48c] ss:$16 sps:$4 sm:$0xff]   ;;  %v7287_v58 = vld [vmem:[#allocation6 + $0x480] ss:$16 sps:$4 sm:$0xff]   ;;  %v9126_v60 = vpack.c.bf16 %v2711_v34, %v2710_v43  ;;  %v7301_v5 = vld [vmem:[#allocation6 + $0x4c4] ss:$16 sps:$4 sm:$0xff]  }
 0x1e8   : > { %v2356_v21 = vmax.f32 %v2353_v51, 0.0  ;;  %v2712_v54 = vld [vmem:[#allocation2 + $0x4a] sm:$0xff]  ;;  %v2713_v44 = vld [vmem:[#allocation2 + $0x52] sm:$0xff] }
 0x1e9   : > { %4497 = vmatmul.mubr.bf16.vlgmr.msra.gmra.mrb[60].mxu0 %v2820_v49  ;;  %5062 = vmatmul.mubr.bf16.vlgmr.msra.gmra.mrb[60].mxu1 %v2820_v49  ;;  %v2354_v25 = vmax.f32 %v9084_v45, 0.0  ;;  %v9093_v26 = vadd.f32 %v9013_v7, %v2349_v56  ;;  %v7272_v7 = vld [vmem:[#allocation6 + $0x428] ss:$16 sps:$4 sm:$0xff]   ;;  %v7304_v14 = vld [vmem:[#allocation6 + $0x4cc] ss:$16 sps:$4 sm:$0xff]   ;;  %v9136_v42 = vpack.c.bf16 %v2713_v44, %v2712_v54 }
 0x1ea   : > { %7554 = vmatprep.mubr.msk.bf16.mxu0 %vm8618_vm7, %v8626_v28  ;;  %4578 = vmatpush1.bf16.msra.mxu0 %v7263_v32  ;;  %v2380_v57 = vsel %vm2371_vm8, %v2356_v21, 0.0  ;;  %v7299_v16 = vld [vmem:[#allocation6 + $0x4c0] ss:$16 sps:$4 sm:$0xff]   ;;  %v7302_v32 = vld [vmem:[#allocation6 + $0x4c8] ss:$16 sps:$4 sm:$0xff]  }
 0x1eb   : > { %7557 = vmatprep.mubr.msk.bf16.mxu1 %vm8618_vm7, %v8626_v28  ;;  %5143 = vmatpush1.bf16.msra.mxu1 %v7266_v55  ;;  %2384 = vst [vmem:[#allocation2 + $0xe8] sm:$0x3] %v2380_v57  ;;  %v2378_v18 = vsel %vm9087_vm3, %v2354_v25, 0.0  ;;  %v2355_v8 = vmax.f32 %v9093_v26, 0.0  ;;  %v7275_v28 = vld [vmem:[#allocation6 + $0x440] ss:$16 sps:$4 sm:$0xff]   ;;  %vm7588_vm7 = vmpackc.low %vm9042_vm13, %vm9029_vm11 }
 0x1ec   : > { %4579 = vmatprep.subr.bf16.mxu0 %v7271_v2  ;;  %5144 = vmatprep.subr.bf16.mxu1 %v7274_v20  ;;  %2382 = vst [vmem:[#allocation2 + $0xd8] sm:$0xff] %v2378_v18  ;;  %v7307_v51 = vld [vmem:[#allocation6 + $0x4e4] ss:$16 sps:$4 sm:$0xff]   ;;  %v7310_v62 = vld [vmem:[#allocation6 + $0x4ec] ss:$16 sps:$4 sm:$0xff]  }
 0x1ed   : > { %v2379_v50 = vsel %vm9100_vm5, %v2355_v8, 0.0  ;;  %v7313_v49 = vld [vmem:[#allocation6 + $0x504] ss:$16 sps:$4 sm:$0xff]   ;;  %v7316_v2 = vld [vmem:[#allocation6 + $0x50c] ss:$16 sps:$4 sm:$0xff]  }
 0x1ee   : > { %4580 = vmatpush1.bf16.msra.mxu0 %v7269_v1  ;;  %2383 = vst [vmem:[#allocation2 + $0xe0] sm:$0xff] %v2379_v50  ;;  %v2714_v55 = vld [vmem:[#allocation2 + $0x62] sm:$0xff]  ;;  %v2715_v56 = vld [vmem:[#allocation2 + $0x6a] sm:$0xff]  ;;  %v2716_v18 = vld [vmem:[#allocation2 + $0x7a] sm:$0xff] }
 0x1ef   : > { %5145 = vmatpush1.bf16.msra.mxu1 %v7272_v7  ;;  %4581 = vmatprep.subr.bf16.mxu0 %v7277_v0  ;;  %v7311_v20 = vld [vmem:[#allocation6 + $0x500] ss:$16 sps:$4 sm:$0xff]   ;;  %v9146_v21 = vpack.c.bf16 %v2715_v56, %v2714_v55  ;;  %v7314_v1 = vld [vmem:[#allocation6 + $0x508] ss:$16 sps:$4 sm:$0xff]   ;;  %v7319_v57 = vld [vmem:[#allocation6 + $0x524] ss:$16 sps:$4 sm:$0xff]   ;;  %v9156_v50 = vpack.c.bf16 %v2717_v29, %v2716_v18 }
 0x1f0   : > { %5146 = vmatprep.subr.bf16.mxu1 %v7280_v39  ;;  %v7322_v7 = vld [vmem:[#allocation6 + $0x52c] ss:$16 sps:$4 sm:$0xff]   ;;  %v7325_v0 = vld [vmem:[#allocation6 + $0x544] ss:$16 sps:$4 sm:$0xff]   ;;  %v7323_v39 = vld [vmem:[#allocation6 + $0x540] ss:$16 sps:$4 sm:$0xff]  }
 0x1f1   : > { %4507 = vmatmul.mubr.bf16.gmra.mrb[64].mxu0 %v9116_v47  ;;  %5072 = vmatmul.mubr.bf16.gmra.mrb[64].mxu1 %v9116_v47  ;;  %v7328_v30 = vld [vmem:[#allocation6 + $0x54c] ss:$16 sps:$4 sm:$0xff]   ;;  %v7335_v43 = vld [vmem:[#allocation6 + $0x580] ss:$16 sps:$4 sm:$0xff]   ;;  %v7355_v19 = vld [vmem:[#allocation6 + $0x5e4] ss:$16 sps:$4 sm:$0xff]  }
 0x1f2   : > { %7560 = vmatprep.mubr.msk.bf16.mxu0 %vm8700_vm14, %v8708_v23  ;;  %4582 = vmatpush1.bf16.msra.mxu0 %v7275_v28  ;;  %v7326_v28 = vld [vmem:[#allocation6 + $0x548] ss:$16 sps:$4 sm:$0xff]   ;;  %v7358_v53 = vld [vmem:[#allocation6 + $0x5ec] ss:$16 sps:$4 sm:$0xff]   ;;  %v7353_v17 = vld [vmem:[#allocation6 + $0x5e0] ss:$16 sps:$4 sm:$0xff]  }
 0x1f3   : > { %7563 = vmatprep.mubr.msk.bf16.mxu1 %vm8700_vm14, %v8708_v23  ;;  %5147 = vmatpush1.bf16.msra.mxu1 %v7278_v48  ;;  %v7296_v23 = vld [vmem:[#allocation6 + $0x4a8] ss:$16 sps:$4 sm:$0xff]   ;;  %v7331_v48 = vld [vmem:[#allocation6 + $0x564] ss:$16 sps:$4 sm:$0xff]   ;;  %vm7594_vm14 = vmpackc.low %vm9100_vm5, %vm9087_vm3 }
 0x1f4   : > { %4583 = vmatprep.subr.bf16.mxu0 %v7283_v33  ;;  %5148 = vmatprep.subr.bf16.mxu1 %v7286_v46  ;;  %v7334_v33 = vld [vmem:[#allocation6 + $0x56c] ss:$16 sps:$4 sm:$0xff]   ;;  %v7337_v46 = vld [vmem:[#allocation6 + $0x584] ss:$16 sps:$4 sm:$0xff]   ;;  %v7356_v54 = vld [vmem:[#allocation6 + $0x5e8] ss:$16 sps:$4 sm:$0xff]  }
 0x1f5   : > { %v7361_v44 = vld [vmem:[#allocation6 + $0x604] ss:$16 sps:$4 sm:$0xff]   ;;  %v7368_v56 = vld [vmem:[#allocation6 + $0x628] ss:$16 sps:$4 sm:$0xff]  }
 0x1f6   : > { %4584 = vmatpush1.bf16.msra.mxu0 %v7281_v40  ;;  %v2718_v40 = vld [vmem:[#allocation2 + $0x92] sm:$0xff]  ;;  %v2742_v18 = vld [vmem:[#allocation2 + $0x49] sm:$0xff] }
 0x1f7   : > { %5149 = vmatpush1.bf16.msra.mxu1 %v7284_v27  ;;  %4585 = vmatprep.subr.bf16.mxu0 %v7289_v41  ;;  %v2719_v27 = vld [vmem:[#allocation2 + $0x9a] sm:$0xff]  ;;  %v2740_v55 = vld [vmem:[#allocation2 + $0x31] sm:$0xff]  ;;  %v2806_v45 = vld [vmem:[#allocation2 + $0x62] sm:$0xff] }
 0x1f8   : > { %5150 = vmatprep.subr.bf16.mxu1 %v7292_v36  ;;  %v7340_v41 = vld [vmem:[#allocation6 + $0x58c] ss:$16 sps:$4 sm:$0xff]   ;;  %v9166_v34 = vpack.c.bf16 %v2719_v27, %v2718_v40  ;;  %v7338_v36 = vld [vmem:[#allocation6 + $0x588] ss:$16 sps:$4 sm:$0xff]  }
 0x1f9   : > { %4517 = vmatmul.mubr.bf16.gmra.mrb[68].mxu0 %v9126_v60  ;;  %5082 = vmatmul.mubr.bf16.gmra.mrb[68].mxu1 %v9126_v60  ;;  %v7380_v29 = vld [vmem:[#allocation6 + $0x668] ss:$16 sps:$4 sm:$0xff]   ;;  %v2744_v27 = vld [vmem:[#allocation2 + $0x61] sm:$0xff] }
 0x1fa   : > { %7566 = vmatprep.mubr.msk.bf16.mxu0 %vm8796_vm10, %v8804_v9  ;;  %4586 = vmatpush1.bf16.msra.mxu0 %v7287_v58  ;;  %v7343_v58 = vld [vmem:[#allocation6 + $0x5a4] ss:$16 sps:$4 sm:$0xff]   ;;  %v7392_v40 = vld [vmem:[#allocation6 + $0x6a8] ss:$16 sps:$4 sm:$0xff]  }
 0x1fb   : > { %7569 = vmatprep.mubr.msk.bf16.mxu1 %vm8796_vm10, %v8804_v9  ;;  %5151 = vmatpush1.bf16.msra.mxu1 %v7290_v61  ;;  %v7308_v9 = vld [vmem:[#allocation6 + $0x4e8] ss:$16 sps:$4 sm:$0xff]   ;;  %v7346_v61 = vld [vmem:[#allocation6 + $0x5ac] ss:$16 sps:$4 sm:$0xff]   ;;  %vm5666_vm10 = vcmp.lt.s32.totalorder %v352_v37, 512 }
 0x1fc   : > { %4587 = vmatprep.subr.bf16.mxu0 %v7295_v63  ;;  %5152 = vmatprep.subr.bf16.mxu1 %v7298_v4  ;;  %v7344_v63 = vld [vmem:[#allocation6 + $0x5a8] ss:$16 sps:$4 sm:$0xff]   ;;  %v7349_v4 = vld [vmem:[#allocation6 + $0x5c4] ss:$16 sps:$4 sm:$0xff]  }
 0x1fe   : > { %4588 = vmatpush1.bf16.msra.mxu0 %v7293_v22  ;;  %v2720_v22 = vld [vmem:[#allocation2 + $0xaa] sm:$0xff] }
 0x1ff   : > { %5153 = vmatpush1.bf16.msra.mxu1 %v7296_v23  ;;  %4589 = vmatprep.subr.bf16.mxu0 %v7301_v5  ;;  %v2721_v23 = vld [vmem:[#allocation2 + $0xb2] sm:$0xff] }
 0x200   : > { %5154 = vmatprep.subr.bf16.mxu1 %v7304_v14  ;;  %v9178_v5 = vpack.c.bf16 %v2721_v23, %v2720_v22  ;;  %v2738_v14 = vld [vmem:[#allocation2 + $0x19] sm:$0xff]  ;;  %v2747_v23 = vld [vmem:[#allocation2 + $0x81] sm:$0xff] }
 0x201   : > { %4527 = vmatmul.mubr.bf16.gmra.mrb[72].mxu0 %v9136_v42  ;;  %5092 = vmatmul.mubr.bf16.gmra.mrb[72].mxu1 %v9136_v42  ;;  %v2746_v22 = vld [vmem:[#allocation2 + $0x79] sm:$0xff] }
 0x202   : > { %7572 = vmatprep.mubr.msk.bf16.mxu0 %vm8880_vm6, %v8888_v11  ;;  %4590 = vmatpush1.bf16.msra.mxu0 %v7299_v16  ;;  %v2739_v16 = vld [vmem:[#allocation2 + $0x21] sm:$0xff] }
 0x203   : > { %7575 = vmatprep.mubr.msk.bf16.mxu1 %vm8880_vm6, %v8888_v11  ;;  %5155 = vmatpush1.bf16.msra.mxu1 %v7302_v32  ;;  %v7320_v11 = vld [vmem:[#allocation6 + $0x528] ss:$16 sps:$4 sm:$0xff]   ;;  %v7364_v32 = vld [vmem:[#allocation6 + $0x60c] ss:$16 sps:$4 sm:$0xff]  }
 0x204   : > { %4591 = vmatprep.subr.bf16.mxu0 %v7307_v51  ;;  %5156 = vmatprep.subr.bf16.mxu1 %v7310_v62  ;;  %v2822_v51 = vpack.c.bf16 %v2739_v16, %v2738_v14  ;;  %v7359_v62 = vld [vmem:[#allocation6 + $0x600] ss:$16 sps:$4 sm:$0xff]   ;;  %v2749_v16 = vld [vmem:[#allocation2 + $0x99] sm:$0xff] }
 0x205   : > { %v2748_v14 = vld [vmem:[#allocation2 + $0x91] sm:$0xff] }
 0x206   : > { %4592 = vmatpush1.bf16.msra.mxu0 %v7305_v3  ;;  %v7362_v3 = vld [vmem:[#allocation6 + $0x608] ss:$16 sps:$4 sm:$0xff]  }
 0x207   : > { %5157 = vmatpush1.bf16.msra.mxu1 %v7308_v9  ;;  %4593 = vmatprep.subr.bf16.mxu0 %v7313_v49  ;;  %v7367_v9 = vld [vmem:[#allocation6 + $0x624] ss:$16 sps:$4 sm:$0xff]   ;;  %v7370_v49 = vld [vmem:[#allocation6 + $0x62c] ss:$16 sps:$4 sm:$0xff]  }
 0x208   : > { %5158 = vmatprep.subr.bf16.mxu1 %v7316_v2  ;;  %v2741_v2 = vld [vmem:[#allocation2 + $0x39] sm:$0xff] }
 0x209   : > { %4537 = vmatmul.mubr.bf16.gmra.mrb[76].mxu0 %v9146_v21  ;;  %5102 = vmatmul.mubr.bf16.gmra.mrb[76].mxu1 %v9146_v21 }
 0x20a   : > { %7578 = vmatprep.mubr.msk.bf16.mxu0 %vm8977_vm2, %v8985_v59  ;;  %4594 = vmatpush1.bf16.msra.mxu0 %v7311_v20  ;;  %v7373_v20 = vld [vmem:[#allocation6 + $0x644] ss:$16 sps:$4 sm:$0xff]  }
 0x20b   : > { %7581 = vmatprep.mubr.msk.bf16.mxu1 %vm8977_vm2, %v8985_v59  ;;  %5159 = vmatpush1.bf16.msra.mxu1 %v7314_v1  ;;  %v7332_v59 = vld [vmem:[#allocation6 + $0x568] ss:$16 sps:$4 sm:$0xff]   ;;  %v7376_v1 = vld [vmem:[#allocation6 + $0x64c] ss:$16 sps:$4 sm:$0xff]  }
 0x20c   : > { %4595 = vmatprep.subr.bf16.mxu0 %v7319_v57  ;;  %5160 = vmatprep.subr.bf16.mxu1 %v7322_v7  ;;  %v9186_v57 = vpack.c.bf16 %v2741_v2, %v2740_v55  ;;  %v7371_v7 = vld [vmem:[#allocation6 + $0x640] ss:$16 sps:$4 sm:$0xff]   ;;  %v7428_v55 = vld [vmem:[#allocation6 + $0x768] ss:$16 sps:$4 sm:$0xff]  }
 0x20d   : > { %v2751_v2 = vld [vmem:[#allocation2 + $0xb1] sm:$0xff] }
 0x20e   : > { %4596 = vmatpush1.bf16.msra.mxu0 %v7317_v10  ;;  %v7374_v10 = vld [vmem:[#allocation6 + $0x648] ss:$16 sps:$4 sm:$0xff]  }
 0x20f   : > { %5161 = vmatpush1.bf16.msra.mxu1 %v7320_v11  ;;  %4597 = vmatprep.subr.bf16.mxu0 %v7325_v0  ;;  %v7379_v11 = vld [vmem:[#allocation6 + $0x664] ss:$16 sps:$4 sm:$0xff]   ;;  %v7377_v0 = vld [vmem:[#allocation6 + $0x660] ss:$16 sps:$4 sm:$0xff]  }
 0x210   : > { %5162 = vmatprep.subr.bf16.mxu1 %v7328_v30  ;;  %v2743_v30 = vld [vmem:[#allocation2 + $0x51] sm:$0xff] }
 0x211   : > { %4547 = vmatmul.mubr.bf16.gmra.mrb[80].mxu0 %v9156_v50  ;;  %5112 = vmatmul.mubr.bf16.gmra.mrb[80].mxu1 %v9156_v50 }
 0x212   : > { %7584 = vmatprep.mubr.msk.bf16.mxu0 %vm9050_vm15, %v9058_v35  ;;  %4598 = vmatpush1.bf16.msra.mxu0 %v7323_v39  ;;  %v7385_v39 = vld [vmem:[#allocation6 + $0x684] ss:$16 sps:$4 sm:$0xff]  }
 0x213   : > { %7587 = vmatprep.mubr.msk.bf16.mxu1 %vm9050_vm15, %v9058_v35  ;;  %5163 = vmatpush1.bf16.msra.mxu1 %v7326_v28  ;;  %v7341_v35 = vld [vmem:[#allocation6 + $0x5a0] ss:$16 sps:$4 sm:$0xff]   ;;  %v7388_v28 = vld [vmem:[#allocation6 + $0x68c] ss:$16 sps:$4 sm:$0xff]  }
 0x214   : > { %4599 = vmatprep.subr.bf16.mxu0 %v7331_v48  ;;  %5164 = vmatprep.subr.bf16.mxu1 %v7334_v33  ;;  %v9192_v48 = vpack.c.bf16 %v2743_v30, %v2742_v18  ;;  %v7383_v33 = vld [vmem:[#allocation6 + $0x680] ss:$16 sps:$4 sm:$0xff]  }
 0x215   : > { %v7437_v30 = vld [vmem:[#allocation6 + $0x7a0] ss:$16 sps:$4 sm:$0xff]  }
 0x216   : > { %4600 = vmatpush1.bf16.msra.mxu0 %v7329_v24  ;;  %v7386_v24 = vld [vmem:[#allocation6 + $0x688] ss:$16 sps:$4 sm:$0xff]  }
 0x217   : > { %5165 = vmatpush1.bf16.msra.mxu1 %v7332_v59  ;;  %4601 = vmatprep.subr.bf16.mxu0 %v7337_v46  ;;  %v7391_v59 = vld [vmem:[#allocation6 + $0x6a4] ss:$16 sps:$4 sm:$0xff]   ;;  %v7389_v46 = vld [vmem:[#allocation6 + $0x6a0] ss:$16 sps:$4 sm:$0xff]  }
 0x218   : > { %5166 = vmatprep.subr.bf16.mxu1 %v7340_v41  ;;  %v2745_v41 = vld [vmem:[#allocation2 + $0x69] sm:$0xff] }
 0x219   : > { %4557 = vmatmul.mubr.bf16.gmra.mrb[84].mxu0 %v9166_v34  ;;  %5122 = vmatmul.mubr.bf16.gmra.mrb[84].mxu1 %v9166_v34 }
 0x21a   : > { %7590 = vmatprep.mubr.msk.bf16.mxu0 %vm7588_vm7, %v7589_v13  ;;  %4602 = vmatpush1.bf16.msra.mxu0 %v7335_v43  ;;  %v7397_v43 = vld [vmem:[#allocation6 + $0x6c4] ss:$16 sps:$4 sm:$0xff]  }
 0x21b   : > { %7593 = vmatprep.mubr.msk.bf16.mxu1 %vm7588_vm7, %v7589_v13  ;;  %5167 = vmatpush1.bf16.msra.mxu1 %v7338_v36  ;;  %v7400_v36 = vld [vmem:[#allocation6 + $0x6cc] ss:$16 sps:$4 sm:$0xff]   ;;  %v7398_v13 = vld [vmem:[#allocation6 + $0x6c8] ss:$16 sps:$4 sm:$0xff]  }
 0x21c   : > { %4603 = vmatprep.subr.bf16.mxu0 %v7343_v58  ;;  %5168 = vmatprep.subr.bf16.mxu1 %v7346_v61  ;;  %v9198_v58 = vpack.c.bf16 %v2745_v41, %v2744_v27  ;;  %v7395_v61 = vld [vmem:[#allocation6 + $0x6c0] ss:$16 sps:$4 sm:$0xff]   ;;  %v7451_v27 = vld [vmem:[#allocation6 + $0x7e4] ss:$16 sps:$4 sm:$0xff]   ;;  %v7454_v41 = vld [vmem:[#allocation6 + $0x7ec] ss:$16 sps:$4 sm:$0xff]  }
 0x21e   : > { %4604 = vmatpush1.bf16.msra.mxu0 %v7341_v35  ;;  %v7403_v35 = vld [vmem:[#allocation6 + $0x6e4] ss:$16 sps:$4 sm:$0xff]  }
 0x21f   : > { %5169 = vmatpush1.bf16.msra.mxu1 %v7344_v63  ;;  %4605 = vmatprep.subr.bf16.mxu0 %v7349_v4  ;;  %v7401_v63 = vld [vmem:[#allocation6 + $0x6e0] ss:$16 sps:$4 sm:$0xff]   ;;  %v7404_v4 = vld [vmem:[#allocation6 + $0x6e8] ss:$16 sps:$4 sm:$0xff]  }
 0x220   : > { %5170 = vmatprep.subr.bf16.mxu1 %v7352_v31  ;;  %v7409_v31 = vld [vmem:[#allocation6 + $0x704] ss:$16 sps:$4 sm:$0xff]  }
 0x221   : > { %4567 = vmatmul.mubr.bf16.gmra.mrb[88].mxu0 %v9178_v5  ;;  %5132 = vmatmul.mubr.bf16.gmra.mrb[88].mxu1 %v9178_v5 }
 0x222   : > { %4606 = vmatpush1.bf16.msra.mxu0 %v7347_v52  ;;  %4609 = vmatprep.mubr.bf16.mxu0 %v9116_v47  ;;  %v7412_v52 = vld [vmem:[#allocation6 + $0x70c] ss:$16 sps:$4 sm:$0xff]  }
 0x223   : > { %5171 = vmatpush1.bf16.msra.mxu1 %v7350_v15  ;;  %5174 = vmatprep.mubr.bf16.mxu1 %v9116_v47  ;;  %v7365_v47 = vld [vmem:[#allocation6 + $0x620] ss:$16 sps:$4 sm:$0xff]   ;;  %v9204_v15 = vpack.c.bf16 %v2747_v23, %v2746_v22  ;;  %v7458_v22 = vld [vmem:[#allocation6 + $0x808] ss:$16 sps:$4 sm:$0xff]   ;;  %v7463_v23 = vld [vmem:[#allocation6 + $0x824] ss:$16 sps:$4 sm:$0xff]  }
 0x224   : > { %4607 = vmatprep.subr.bf16.mxu0 %v7355_v19  ;;  %5172 = vmatprep.subr.bf16.mxu1 %v7358_v53  ;;  %v7407_v19 = vld [vmem:[#allocation6 + $0x700] ss:$16 sps:$4 sm:$0xff]   ;;  %v7410_v53 = vld [vmem:[#allocation6 + $0x708] ss:$16 sps:$4 sm:$0xff]  }
 0x226   : > { %4608 = vmatpush1.bf16.msra.mxu0 %v7353_v17  ;;  %v7415_v17 = vld [vmem:[#allocation6 + $0x724] ss:$16 sps:$4 sm:$0xff]  }
 0x227   : > { %5173 = vmatpush1.bf16.msra.mxu1 %v7356_v54  ;;  %4690 = vmatprep.subr.bf16.mxu0 %v7361_v44  ;;  %v7413_v54 = vld [vmem:[#allocation6 + $0x720] ss:$16 sps:$4 sm:$0xff]   ;;  %v7416_v44 = vld [vmem:[#allocation6 + $0x728] ss:$16 sps:$4 sm:$0xff]  }
 0x228   : > { %5255 = vmatprep.subr.bf16.mxu1 %v7364_v32  ;;  %v7421_v32 = vld [vmem:[#allocation6 + $0x744] ss:$16 sps:$4 sm:$0xff]  }
 0x229   : > { %4610 = vmatmul.mubr.bf16.vlgmr.msra.gmra.mrb[60].mxu0 %v2822_v51 }
 0x22a   : > { %5175 = vmatmul.mubr.bf16.vlgmr.msra.gmra.mrb[60].mxu1 %v2822_v51  ;;  %4619 = vmatprep.mubr.bf16.mxu0 %v9126_v60  ;;  %v7424_v51 = vld [vmem:[#allocation6 + $0x74c] ss:$16 sps:$4 sm:$0xff]  }
 0x22b   : > { %4691 = vmatpush1.bf16.msra.mxu0 %v7359_v62  ;;  %5184 = vmatprep.mubr.bf16.mxu1 %v9126_v60  ;;  %v7382_v60 = vld [vmem:[#allocation6 + $0x66c] ss:$16 sps:$4 sm:$0xff]   ;;  %v9210_v62 = vpack.c.bf16 %v2749_v16, %v2748_v14  ;;  %v7470_v14 = vld [vmem:[#allocation6 + $0x848] ss:$16 sps:$4 sm:$0xff]   ;;  %v7475_v16 = vld [vmem:[#allocation6 + $0x864] ss:$16 sps:$4 sm:$0xff]  }
 0x22c   : > { %5256 = vmatpush1.bf16.msra.mxu1 %v7362_v3  ;;  %4692 = vmatprep.subr.bf16.mxu0 %v7367_v9  ;;  %v7419_v3 = vld [vmem:[#allocation6 + $0x740] ss:$16 sps:$4 sm:$0xff]   ;;  %v7422_v9 = vld [vmem:[#allocation6 + $0x748] ss:$16 sps:$4 sm:$0xff]  }
 0x22d   : > { %5257 = vmatprep.subr.bf16.mxu1 %v7370_v49  ;;  %v7427_v49 = vld [vmem:[#allocation6 + $0x764] ss:$16 sps:$4 sm:$0xff]  }
 0x22f   : > { %4693 = vmatpush1.bf16.msra.mxu0 %v7365_v47  ;;  %v7425_v47 = vld [vmem:[#allocation6 + $0x760] ss:$16 sps:$4 sm:$0xff]  }
 0x230   : > { %5258 = vmatpush1.bf16.msra.mxu1 %v7368_v56  ;;  %4694 = vmatprep.subr.bf16.mxu0 %v7373_v20  ;;  %v2750_v56 = vld [vmem:[#allocation2 + $0xa9] sm:$0xff] }
 0x231   : > { %4620 = vmatmul.mubr.bf16.gmra.mrb[64].mxu0 %v9186_v57  ;;  %5259 = vmatprep.subr.bf16.mxu1 %v7376_v1  ;;  %v7433_v20 = vld [vmem:[#allocation6 + $0x784] ss:$16 sps:$4 sm:$0xff]   ;;  %v7436_v1 = vld [vmem:[#allocation6 + $0x78c] ss:$16 sps:$4 sm:$0xff]  }
 0x232   : > { %5185 = vmatmul.mubr.bf16.gmra.mrb[64].mxu1 %v9186_v57  ;;  %4629 = vmatprep.mubr.bf16.mxu0 %v9136_v42 }
 0x233   : > { %4695 = vmatpush1.bf16.msra.mxu0 %v7371_v7  ;;  %5194 = vmatprep.mubr.bf16.mxu1 %v9136_v42  ;;  %v7394_v42 = vld [vmem:[#allocation6 + $0x6ac] ss:$16 sps:$4 sm:$0xff]  }
 0x234   : > { %5260 = vmatpush1.bf16.msra.mxu1 %v7374_v10  ;;  %4696 = vmatprep.subr.bf16.mxu0 %v7379_v11  ;;  %v2768_v7 = vld [vmem:[#allocation2 + $0xc2] sm:$0xff]  ;;  %v2769_v10 = vld [vmem:[#allocation2 + $0xca] sm:$0xff]  ;;  %v9216_v11 = vpack.c.bf16 %v2751_v2, %v2750_v56 }
 0x235   : > { %5261 = vmatprep.subr.bf16.mxu1 %v7382_v60  ;;  %v7431_v60 = vld [vmem:[#allocation6 + $0x780] ss:$16 sps:$4 sm:$0xff]   ;;  %v9218_v18 = vpack.c.bf16 %v2769_v10, %v2768_v7  ;;  %v7482_v56 = vld [vmem:[#allocation6 + $0x888] ss:$16 sps:$4 sm:$0xff]   ;;  %v7487_v2 = vld [vmem:[#allocation6 + $0x8a4] ss:$16 sps:$4 sm:$0xff]  }
 0x236   : > { %v7488_v7 = vld [vmem:[#allocation6 + $0x8a8] ss:$16 sps:$4 sm:$0xff]   ;;  %v7493_v10 = vld [vmem:[#allocation6 + $0x8c4] ss:$16 sps:$4 sm:$0xff]  }
 0x237   : > { %4697 = vmatpush1.bf16.msra.mxu0 %v7377_v0  ;;  %v7434_v0 = vld [vmem:[#allocation6 + $0x788] ss:$16 sps:$4 sm:$0xff]  }
 0x238   : > { %5262 = vmatpush1.bf16.msra.mxu1 %v7380_v29  ;;  %4698 = vmatprep.subr.bf16.mxu0 %v7385_v39  ;;  %v7442_v29 = vld [vmem:[#allocation6 + $0x7ac] ss:$16 sps:$4 sm:$0xff]   ;;  %v7440_v39 = vld [vmem:[#allocation6 + $0x7a8] ss:$16 sps:$4 sm:$0xff]  }
 0x239   : > { %4630 = vmatmul.mubr.bf16.gmra.mrb[68].mxu0 %v9192_v48  ;;  %5263 = vmatprep.subr.bf16.mxu1 %v7388_v28  ;;  %v2752_v28 = vld [vmem:[#allocation2 + $0xc1] sm:$0xff] }
 0x23a   : > { %5195 = vmatmul.mubr.bf16.gmra.mrb[68].mxu1 %v9192_v48  ;;  %4639 = vmatprep.mubr.bf16.mxu0 %v9146_v21 }
 0x23b   : > { %4699 = vmatpush1.bf16.msra.mxu0 %v7383_v33  ;;  %5204 = vmatprep.mubr.bf16.mxu1 %v9146_v21  ;;  %v7406_v21 = vld [vmem:[#allocation6 + $0x6ec] ss:$16 sps:$4 sm:$0xff]  }
 0x23c   : > { %5264 = vmatpush1.bf16.msra.mxu1 %v7386_v24  ;;  %4700 = vmatprep.subr.bf16.mxu0 %v7391_v59  ;;  %v2753_v33 = vld [vmem:[#allocation2 + $0xc9] sm:$0xff] }
 0x23d   : > { %5265 = vmatprep.subr.bf16.mxu1 %v7394_v42  ;;  %v7445_v24 = vld [vmem:[#allocation6 + $0x7c4] ss:$16 sps:$4 sm:$0xff]   ;;  %v7448_v59 = vld [vmem:[#allocation6 + $0x7cc] ss:$16 sps:$4 sm:$0xff]   ;;  %v9224_v42 = vpack.c.bf16 %v2753_v33, %v2752_v28  ;;  %v7497_v28 = vld [vmem:[#allocation6 + $0x8e0] ss:$16 sps:$4 sm:$0xff]  }
 0x23e   : > { %v2779_v33 = vld [vmem:[#allocation2 + $0x98] sm:$0xff] }
 0x23f   : > { %4701 = vmatpush1.bf16.msra.mxu0 %v7389_v46  ;;  %v7443_v46 = vld [vmem:[#allocation6 + $0x7c0] ss:$16 sps:$4 sm:$0xff]  }
 0x240   : > { %5266 = vmatpush1.bf16.msra.mxu1 %v7392_v40  ;;  %4702 = vmatprep.subr.bf16.mxu0 %v7397_v43  ;;  %v7446_v40 = vld [vmem:[#allocation6 + $0x7c8] ss:$16 sps:$4 sm:$0xff]   ;;  %v7449_v43 = vld [vmem:[#allocation6 + $0x7e0] ss:$16 sps:$4 sm:$0xff]  }
 0x241   : > { %4640 = vmatmul.mubr.bf16.gmra.mrb[72].mxu0 %v9198_v58  ;;  %5267 = vmatprep.subr.bf16.mxu1 %v7400_v36  ;;  %v7452_v36 = vld [vmem:[#allocation6 + $0x7e8] ss:$16 sps:$4 sm:$0xff]  }
 0x242   : > { %5205 = vmatmul.mubr.bf16.gmra.mrb[72].mxu1 %v9198_v58  ;;  %4649 = vmatprep.mubr.bf16.mxu0 %v9156_v50 }
 0x243   : > { %4703 = vmatpush1.bf16.msra.mxu0 %v7395_v61  ;;  %5214 = vmatprep.mubr.bf16.mxu1 %v9156_v50  ;;  %v7418_v50 = vld [vmem:[#allocation6 + $0x72c] ss:$16 sps:$4 sm:$0xff]   ;;  %v7457_v61 = vld [vmem:[#allocation6 + $0x804] ss:$16 sps:$4 sm:$0xff]  }
 0x244   : > { %5268 = vmatpush1.bf16.msra.mxu1 %v7398_v13  ;;  %4704 = vmatprep.subr.bf16.mxu0 %v7403_v35  ;;  %v2771_v13 = vld [vmem:[#allocation2 + $0x38] sm:$0xff]  ;;  %v7460_v35 = vld [vmem:[#allocation6 + $0x80c] ss:$16 sps:$4 sm:$0xff]  }
 0x245   : > { %5269 = vmatprep.subr.bf16.mxu1 %v7406_v21  ;;  %v2770_v21 = vld [vmem:[#allocation2 + $0x30] sm:$0xff] }
 0x247   : > { %4705 = vmatpush1.bf16.msra.mxu0 %v7401_v63  ;;  %v2824_v63 = vpack.c.bf16 %v2771_v13, %v2770_v21  ;;  %v2802_v21 = vld [vmem:[#allocation2 + $0x32] sm:$0xff] }
 0x248   : > { %5270 = vmatpush1.bf16.msra.mxu1 %v7404_v4  ;;  %4706 = vmatprep.subr.bf16.mxu0 %v7409_v31  ;;  %v7455_v4 = vld [vmem:[#allocation6 + $0x800] ss:$16 sps:$4 sm:$0xff]   ;;  %v7466_v31 = vld [vmem:[#allocation6 + $0x82c] ss:$16 sps:$4 sm:$0xff]  }
 0x249   : > { %4650 = vmatmul.mubr.bf16.gmra.mrb[76].mxu0 %v9204_v15  ;;  %5271 = vmatprep.subr.bf16.mxu1 %v7412_v52  ;;  %v2773_v52 = vld [vmem:[#allocation2 + $0x50] sm:$0xff] }
 0x24a   : > { %5215 = vmatmul.mubr.bf16.gmra.mrb[76].mxu1 %v9204_v15  ;;  %4659 = vmatprep.mubr.bf16.mxu0 %v9166_v34 }
 0x24b   : > { %4707 = vmatpush1.bf16.msra.mxu0 %v7407_v19  ;;  %5224 = vmatprep.mubr.bf16.mxu1 %v9166_v34  ;;  %v7430_v34 = vld [vmem:[#allocation6 + $0x76c] ss:$16 sps:$4 sm:$0xff]   ;;  %v7464_v19 = vld [vmem:[#allocation6 + $0x828] ss:$16 sps:$4 sm:$0xff]  }
 0x24c   : > { %5272 = vmatpush1.bf16.msra.mxu1 %v7410_v53  ;;  %4708 = vmatprep.subr.bf16.mxu0 %v7415_v17  ;;  %v7469_v53 = vld [vmem:[#allocation6 + $0x844] ss:$16 sps:$4 sm:$0xff]   ;;  %v7472_v17 = vld [vmem:[#allocation6 + $0x84c] ss:$16 sps:$4 sm:$0xff]  }
 0x24d   : > { %5273 = vmatprep.subr.bf16.mxu1 %v7418_v50  ;;  %v2772_v50 = vld [vmem:[#allocation2 + $0x48] sm:$0xff] }
 0x24f   : > { %4709 = vmatpush1.bf16.msra.mxu0 %v7413_v54  ;;  %v2833_v54 = vpack.c.bf16 %v2773_v52, %v2772_v50  ;;  %v2811_v52 = vld [vmem:[#allocation2 + $0x9a] sm:$0xff] }
 0x250   : > { %5274 = vmatpush1.bf16.msra.mxu1 %v7416_v44  ;;  %4710 = vmatprep.subr.bf16.mxu0 %v7421_v32  ;;  %v7467_v44 = vld [vmem:[#allocation6 + $0x840] ss:$16 sps:$4 sm:$0xff]   ;;  %v7478_v32 = vld [vmem:[#allocation6 + $0x86c] ss:$16 sps:$4 sm:$0xff]  }
 0x251   : > { %4660 = vmatmul.mubr.bf16.gmra.mrb[80].mxu0 %v9210_v62  ;;  %5275 = vmatprep.subr.bf16.mxu1 %v7424_v51  ;;  %v2775_v51 = vld [vmem:[#allocation2 + $0x68] sm:$0xff] }
 0x252   : > { %5225 = vmatmul.mubr.bf16.gmra.mrb[80].mxu1 %v9210_v62  ;;  %4669 = vmatprep.mubr.bf16.mxu0 %v9178_v5 }
 0x253   : > { %4711 = vmatpush1.bf16.msra.mxu0 %v7419_v3  ;;  %5234 = vmatprep.mubr.bf16.mxu1 %v9178_v5  ;;  %v7439_v5 = vld [vmem:[#allocation6 + $0x7a4] ss:$16 sps:$4 sm:$0xff]   ;;  %v7476_v3 = vld [vmem:[#allocation6 + $0x868] ss:$16 sps:$4 sm:$0xff]  }
 0x254   : > { %5276 = vmatpush1.bf16.msra.mxu1 %v7422_v9  ;;  %4712 = vmatprep.subr.bf16.mxu0 %v7427_v49  ;;  %v7481_v9 = vld [vmem:[#allocation6 + $0x884] ss:$16 sps:$4 sm:$0xff]   ;;  %v7484_v49 = vld [vmem:[#allocation6 + $0x88c] ss:$16 sps:$4 sm:$0xff]  }
 0x255   : > { %5277 = vmatprep.subr.bf16.mxu1 %v7430_v34  ;;  %v2774_v34 = vld [vmem:[#allocation2 + $0x60] sm:$0xff] }
 0x257   : > { %4713 = vmatpush1.bf16.msra.mxu0 %v7425_v47  ;;  %v2842_v47 = vpack.c.bf16 %v2775_v51, %v2774_v34  ;;  %v2897_v51 = vsub.s32 1, %v8321_v38 }
 0x258   : > { %5278 = vmatpush1.bf16.msra.mxu1 %v7428_v55  ;;  %4714 = vmatprep.subr.bf16.mxu0 %v7433_v20  ;;  %v7479_v55 = vld [vmem:[#allocation6 + $0x880] ss:$16 sps:$4 sm:$0xff]  }
 0x259   : > { %4670 = vmatmul.mubr.bf16.gmra.mrb[84].mxu0 %v9216_v11  ;;  %5279 = vmatprep.subr.bf16.mxu1 %v7436_v1  ;;  %v7485_v20 = vld [vmem:[#allocation6 + $0x8a0] ss:$16 sps:$4 sm:$0xff]  }
 0x25a   : > { %5235 = vmatmul.mubr.bf16.gmra.mrb[84].mxu1 %v9216_v11  ;;  %4679 = vmatprep.mubr.bf16.mxu0 %v9218_v18  ;;  %v2777_v1 = vld [vmem:[#allocation2 + $0x80] sm:$0xff] }
 0x25b   : > { %4715 = vmatpush1.bf16.msra.mxu0 %v7431_v60  ;;  %5244 = vmatprep.mubr.bf16.mxu1 %v9218_v18  ;;  %v7496_v60 = vld [vmem:[#allocation6 + $0x8cc] ss:$16 sps:$4 sm:$0xff]  }
 0x25c   : > { %5280 = vmatpush1.bf16.msra.mxu1 %v7434_v0  ;;  %4716 = vmatprep.subr.bf16.mxu0 %v7439_v5  ;;  %v2776_v0 = vld [vmem:[#allocation2 + $0x78] sm:$0xff] }
 0x25d   : > { %5281 = vmatprep.subr.bf16.mxu1 %v7442_v29  ;;  %v2851_v5 = vpack.c.bf16 %v2777_v1, %v2776_v0  ;;  %v7491_v29 = vld [vmem:[#allocation6 + $0x8c0] ss:$16 sps:$4 sm:$0xff]  }
 0x25f   : > { %4717 = vmatpush1.bf16.msra.mxu0 %v7437_v30  ;;  %v7494_v30 = vld [vmem:[#allocation6 + $0x8c8] ss:$16 sps:$4 sm:$0xff]  }
 0x260   : > { %5282 = vmatpush1.bf16.msra.mxu1 %v7440_v39  ;;  %4718 = vmatprep.subr.bf16.mxu0 %v7445_v24  ;;  %v7499_v39 = vld [vmem:[#allocation6 + $0x8e4] ss:$16 sps:$4 sm:$0xff]   ;;  %v7500_v24 = vld [vmem:[#allocation6 + $0x8e8] ss:$16 sps:$4 sm:$0xff]  }
 0x261   : > { %4680 = vmatmul.mubr.bf16.gmra.mrb[88].mxu0 %v9224_v42  ;;  %5283 = vmatprep.subr.bf16.mxu1 %v7448_v59  ;;  %v2778_v59 = vld [vmem:[#allocation2 + $0x90] sm:$0xff] }
 0x262   : > { %5245 = vmatmul.mubr.bf16.gmra.mrb[88].mxu1 %v9224_v42  ;;  %4722 = vmatprep.mubr.bf16.mxu0 %v9186_v57 }
 0x263   : > { %4719 = vmatpush1.bf16.msra.mxu0 %v7443_v46  ;;  %5287 = vmatprep.mubr.bf16.mxu1 %v9186_v57  ;;  %v7461_v57 = vld [vmem:[#allocation6 + $0x820] ss:$16 sps:$4 sm:$0xff]   ;;  %v2860_v46 = vpack.c.bf16 %v2779_v33, %v2778_v59 }
 0x264   : > { %5284 = vmatpush1.bf16.msra.mxu1 %v7446_v40  ;;  %4720 = vmatprep.subr.bf16.mxu0 %v7451_v27  ;;  %v2781_v40 = vld [vmem:[#allocation2 + $0xb0] sm:$0xff]  ;;  %v2780_v27 = vld [vmem:[#allocation2 + $0xa8] sm:$0xff] }
 0x265   : > { %5285 = vmatprep.subr.bf16.mxu1 %v7454_v41  ;;  %v2782_v41 = vld [vmem:[#allocation2 + $0xc0] sm:$0xff] }
 0x267   : > { %4721 = vmatpush1.bf16.msra.mxu0 %v7449_v43  ;;  %v2783_v43 = vld [vmem:[#allocation2 + $0xc8] sm:$0xff] }
 0x268   : > { %5286 = vmatpush1.bf16.msra.mxu1 %v7452_v36  ;;  %4803 = vmatprep.subr.bf16.mxu0 %v7457_v61  ;;  %v2800_v36 = vld [vmem:[#allocation2 + $0xd9] sm:$0xff]  ;;  %v2801_v61 = vld [vmem:[#allocation2 + $0xe1] sm:$0xff]  ;;  %v2878_v13 = vpack.c.bf16 %v2783_v43, %v2782_v41 }
 0x269   : > { %5368 = vmatprep.subr.bf16.mxu1 %v7460_v35  ;;  %v2888_v35 = vpack.c.bf16 %v2801_v61, %v2800_v36 }
 0x26a   : > { %4723 = vmatmul.mubr.bf16.vlgmr.msra.gmra.mrb[60].mxu0 %v2824_v63 }
 0x26b   : > { %5288 = vmatmul.mubr.bf16.vlgmr.msra.gmra.mrb[60].mxu1 %v2824_v63  ;;  %4732 = vmatprep.mubr.bf16.mxu0 %v9192_v48  ;;  %v2803_v63 = vld [vmem:[#allocation2 + $0x3a] sm:$0xff] }
 0x26c   : > { %4804 = vmatpush1.bf16.msra.mxu0 %v7455_v4  ;;  %5297 = vmatprep.mubr.bf16.mxu1 %v9192_v48  ;;  %v7473_v48 = vld [vmem:[#allocation6 + $0x860] ss:$16 sps:$4 sm:$0xff]   ;;  %v2826_v4 = vpack.c.bf16 %v2803_v63, %v2802_v21 }
 0x26d   : > { %5369 = vmatpush1.bf16.msra.mxu1 %v7458_v22  ;;  %4805 = vmatprep.subr.bf16.mxu0 %v7463_v23  ;;  %v2835_v22 = vpack.c.bf16 %v2805_v6, %v2804_v12  ;;  %v2809_v23 = vld [vmem:[#allocation2 + $0x82] sm:$0xff] }
 0x26e   : > { %5370 = vmatprep.subr.bf16.mxu1 %v7466_v31 }
 0x270   : > { %4806 = vmatpush1.bf16.msra.mxu0 %v7461_v57  ;;  %v2810_v57 = vld [vmem:[#allocation2 + $0x92] sm:$0xff] }
 0x271   : > { %5371 = vmatpush1.bf16.msra.mxu1 %v7464_v19  ;;  %4807 = vmatprep.subr.bf16.mxu0 %v7469_v53  ;;  %v2862_v19 = vpack.c.bf16 %v2811_v52, %v2810_v57  ;;  %v2812_v53 = vld [vmem:[#allocation2 + $0xaa] sm:$0xff] }
 0x272   : > { %4733 = vmatmul.mubr.bf16.gmra.mrb[64].mxu0 %v2833_v54  ;;  %5372 = vmatprep.subr.bf16.mxu1 %v7472_v17  ;;  %v2813_v17 = vld [vmem:[#allocation2 + $0xb2] sm:$0xff] }
 0x273   : > { %5298 = vmatmul.mubr.bf16.gmra.mrb[64].mxu1 %v2833_v54  ;;  %4742 = vmatprep.mubr.bf16.mxu0 %v9198_v58  ;;  %v2871_v50 = vpack.c.bf16 %v2813_v17, %v2812_v53  ;;  %v2816_v54 = vld [vmem:[#allocation2 + $0xda] sm:$0xff] }
 0x274   : > { %5307 = vmatprep.mubr.bf16.mxu1 %v9198_v58  ;;  %4808 = vmatpush1.bf16.msra.mxu0 %v7467_v44  ;;  %v7490_v58 = vld [vmem:[#allocation6 + $0x8ac] ss:$16 sps:$4 sm:$0xff]  }
 0x275   : > { %5373 = vmatpush1.bf16.msra.mxu1 %v7470_v14  ;;  %4809 = vmatprep.subr.bf16.mxu0 %v7475_v16  ;;  %v2817_v44 = vld [vmem:[#allocation2 + $0xe2] sm:$0xff]  ;;  %v2893_v16 = vsub.s32 0, %v8321_v38 }
 0x276   : > { %5374 = vmatprep.subr.bf16.mxu1 %v7478_v32  ;;  %v2889_v14 = vpack.c.bf16 %v2817_v44, %v2816_v54  ;;  %v2673_v32 = vld [vmem:[#allocation9] sm:$0xf] }
 0x278   : > { %4810 = vmatpush1.bf16.msra.mxu0 %v7473_v48  ;;  %v2901_v48 = vsub.s32 2, %v8321_v38 }
 0x279   : > { %5375 = vmatpush1.bf16.msra.mxu1 %v7476_v3  ;;  %4811 = vmatprep.subr.bf16.mxu0 %v7481_v9  ;;  %v2905_v3 = vsub.s32 3, %v8321_v38  ;;  %v9256_v9 = vrot.slane %v2673_v32, %v2893_v16 }
 0x27a   : > { %4743 = vmatmul.mubr.bf16.gmra.mrb[68].mxu0 %v2842_v47  ;;  %5376 = vmatprep.subr.bf16.mxu1 %v7484_v49  ;;  %v9258_v49 = vrot.slane %v2673_v32, %v2901_v48 }
 0x27b   : > { %5308 = vmatmul.mubr.bf16.gmra.mrb[68].mxu1 %v2842_v47  ;;  %4752 = vmatprep.mubr.bf16.mxu0 %v9204_v15  ;;  %v9262_v34 = vrot.slane %v2673_v32, %v2905_v3 }
 0x27c   : > { %5317 = vmatprep.mubr.bf16.mxu1 %v9204_v15  ;;  %4812 = vmatpush1.bf16.msra.mxu0 %v7479_v55  ;;  %v7502_v15 = vld [vmem:[#allocation6 + $0x8ec] ss:$16 sps:$4 sm:$0xff]  }
 0x27d   : > { %5377 = vmatpush1.bf16.msra.mxu1 %v7482_v56  ;;  %4813 = vmatprep.subr.bf16.mxu0 %v7487_v2 }
 0x27e   : > { %5378 = vmatprep.subr.bf16.mxu1 %v7490_v58 }
 0x280   : > { %4814 = vmatpush1.bf16.msra.mxu0 %v7485_v20 }
 0x281   : > { %5379 = vmatpush1.bf16.msra.mxu1 %v7488_v7  ;;  %4815 = vmatprep.subr.bf16.mxu0 %v7493_v10 }
 0x282   : > { %4753 = vmatmul.mubr.bf16.gmra.mrb[72].mxu0 %v2851_v5  ;;  %5380 = vmatprep.subr.bf16.mxu1 %v7496_v60 }
 0x283   : > { %5318 = vmatmul.mubr.bf16.gmra.mrb[72].mxu1 %v2851_v5  ;;  %4762 = vmatprep.mubr.bf16.mxu0 %v9210_v62 }
 0x284   : > { %5327 = vmatprep.mubr.bf16.mxu1 %v9210_v62  ;;  %4816 = vmatpush1.bf16.msra.mxu0 %v7491_v29  ;;  %v2869_v62 = vpack.c.bf16 %v2781_v40, %v2780_v27 }
 0x285   : > { %5381 = vmatpush1.bf16.msra.mxu1 %v7494_v30  ;;  %4817 = vmatprep.subr.bf16.mxu0 %v7499_v39 }
 0x286   : > { %5382 = vmatprep.subr.bf16.mxu1 %v7502_v15 }
 0x288   : > { %4818 = vmatpush1.bf16.msra.mxu0 %v7497_v28 }
 0x289   : > { %5383 = vmatpush1.bf16.msra.mxu1 %v7500_v24 }
 0x28a   : > { %4763 = vmatmul.mubr.bf16.gmra.mrb[76].mxu0 %v2860_v46 }
 0x28b   : > { %5328 = vmatmul.mubr.bf16.gmra.mrb[76].mxu1 %v2860_v46  ;;  %4772 = vmatprep.mubr.bf16.mxu0 %v9216_v11 }
 0x28c   : > { %5337 = vmatprep.mubr.bf16.mxu1 %v9216_v11  ;;  %v7595_v11 = vpack.c.bf16 %v2355_v8, %v2354_v25  ;;  %v2807_v25 = vld [vmem:[#allocation2 + $0x6a] sm:$0xff]  ;;  %v2808_v8 = vld [vmem:[#allocation2 + $0x7a] sm:$0xff] }
 0x28d   : > { %v2844_v26 = vpack.c.bf16 %v2807_v25, %v2806_v45  ;;  %v2853_v31 = vpack.c.bf16 %v2809_v23, %v2808_v8 }
 0x292   : > { %4773 = vmatmul.mubr.bf16.gmra.mrb[80].mxu0 %v2869_v62 }
 0x293   : > { %5338 = vmatmul.mubr.bf16.gmra.mrb[80].mxu1 %v2869_v62  ;;  %4782 = vmatprep.mubr.bf16.mxu0 %v9224_v42 }
 0x294   : > { %5347 = vmatprep.mubr.bf16.mxu1 %v9224_v42  ;;  %v7829_v42 = vmov 0  }
 0x29a   : > { %4783 = vmatmul.mubr.bf16.gmra.mrb[84].mxu0 %v2878_v13 }
 0x29b   : > { %5348 = vmatmul.mubr.bf16.gmra.mrb[84].mxu1 %v2878_v13  ;;  %4792 = vmatprep.mubr.bf16.mxu0 %v2888_v35 }
 0x29c   : > { %5357 = vmatprep.mubr.bf16.mxu1 %v2888_v35 }
 0x2a2   : > { %7596 = vmatmul.mubr.msk.bf16.gmra.mrb[88].mxu0 %vm7594_vm14, %v7595_v11 }
 0x2a3   : > { %7599 = vmatmul.mubr.msk.bf16.gmra.mrb[88].mxu1 %vm7594_vm14, %v7595_v11  ;;  %4835 = vmatprep.mubr.bf16.mxu0 %v7829_v42 }
 0x2a4   : > { %5400 = vmatprep.mubr.bf16.mxu1 %v7829_v42 }
 0x2aa   : > { %4836 = vmatmul.mubr.bf16.vlgmr.msra.gmra.mrb[60].mxu0 %v2826_v4 }
 0x2ab   : > { %5401 = vmatmul.mubr.bf16.vlgmr.msra.gmra.mrb[60].mxu1 %v2826_v4  ;;  %4845 = vmatprep.mubr.bf16.mxu0 %v7829_v42 }
 0x2ac   : > { %5410 = vmatprep.mubr.bf16.mxu1 %v7829_v42 }
 0x2b2   : > { %4846 = vmatmul.mubr.bf16.gmra.mrb[64].mxu0 %v2835_v22 }
 0x2b3   : > { %5411 = vmatmul.mubr.bf16.gmra.mrb[64].mxu1 %v2835_v22  ;;  %4855 = vmatprep.mubr.bf16.mxu0 %v7829_v42 }
 0x2b4   : > { %5420 = vmatprep.mubr.bf16.mxu1 %v7829_v42 }
 0x2ba   : > { %4856 = vmatmul.mubr.bf16.gmra.mrb[68].mxu0 %v2844_v26 }
 0x2bb   : > { %5421 = vmatmul.mubr.bf16.gmra.mrb[68].mxu1 %v2844_v26  ;;  %4865 = vmatprep.mubr.bf16.mxu0 %v7829_v42 }
 0x2bc   : > { %5430 = vmatprep.mubr.bf16.mxu1 %v7829_v42 }
 0x2c2   : > { %4866 = vmatmul.mubr.bf16.gmra.mrb[72].mxu0 %v2853_v31 }
 0x2c3   : > { %5431 = vmatmul.mubr.bf16.gmra.mrb[72].mxu1 %v2853_v31  ;;  %4875 = vmatprep.mubr.bf16.mxu0 %v7829_v42 }
 0x2c4   : > { %5440 = vmatprep.mubr.bf16.mxu1 %v7829_v42 }
 0x2ca   : > { %4876 = vmatmul.mubr.bf16.gmra.mrb[76].mxu0 %v2862_v19 }
 0x2cb   : > { %5441 = vmatmul.mubr.bf16.gmra.mrb[76].mxu1 %v2862_v19  ;;  %4885 = vmatprep.mubr.bf16.mxu0 %v7829_v42 }
 0x2cc   : > { %5450 = vmatprep.mubr.bf16.mxu1 %v7829_v42 }
 0x2d2   : > { %4886 = vmatmul.mubr.bf16.gmra.mrb[80].mxu0 %v2871_v50 }
 0x2d3   : > { %5451 = vmatmul.mubr.bf16.gmra.mrb[80].mxu1 %v2871_v50  ;;  %4895 = vmatprep.mubr.bf16.mxu0 %v7829_v42 }
 0x2d4   : > { %5460 = vmatprep.mubr.bf16.mxu1 %v7829_v42 }
 0x2da   : > { %4896 = vmatmul.mubr.bf16.gmra.mrb[84].mxu0 %v9218_v18 }
 0x2db   : > { %5461 = vmatmul.mubr.bf16.gmra.mrb[84].mxu1 %v9218_v18  ;;  %4905 = vmatprep.mubr.bf16.mxu0 %v7829_v42  ;;  %v9260_v18 = vrot.slane %v2673_v32, %v2897_v51 }
 0x2dc   : > { %5470 = vmatprep.mubr.bf16.mxu1 %v7829_v42 }
 0x2e2   : > { %4906 = vmatmul.mubr.bf16.gmra.mrb[88].mxu0 %v2889_v14 }
 0x2e3   : > { %5471 = vmatmul.mubr.bf16.gmra.mrb[88].mxu1 %v2889_v14 }
 0x37d   : > { %v4837_v47 = vpop.f32.mrb[60].mxu0 }
 0x37e   : > { %v6571_v55 = vadd.f32 %v4837_v47, %v9256_v9  ;;  %v5402_v56 = vpop.f32.mrb[60].mxu1  ;;  %v4839_v2 = vpop.f32.mrb[61].mxu0 }
 0x37f   : > { %v6603_v58 = vadd.f32 %v5402_v56, %v9258_v49  ;;  %v6572_v20 = vadd.f32 %v4839_v2, %v9260_v18  ;;  %v5404_v1 = vpop.f32.mrb[61].mxu1  ;;  %v4841_v7 = vpop.f32.mrb[62].mxu0 }
 0x380   : > { %v6604_v10 = vadd.f32 %v5404_v1, %v9262_v34  ;;  %v6573_v60 = vadd.f32 %v4841_v7, %v9256_v9  ;;  %v5406_v0 = vpop.f32.mrb[62].mxu1  ;;  %v4843_v5 = vpop.f32.mrb[63].mxu0  ;;  %v5481_v15 = vmax.f32 %v6571_v55, 0.0 }
 0x381   : > { %v6605_v29 = vadd.f32 %v5406_v0, %v9258_v49  ;;  %v6574_v30 = vadd.f32 %v4843_v5, %v9260_v18  ;;  %v5408_v39 = vpop.f32.mrb[63].mxu1  ;;  %v5483_v24 = vmax.f32 %v6603_v58, 0.0  ;;  %v5482_v59 = vmax.f32 %v6572_v20, 0.0 }
 0x382   : > { %v5485_v28 = vmax.f32 %v6573_v60, 0.0  ;;  %v6606_v33 = vadd.f32 %v5408_v39, %v9262_v34  ;;  %v5484_v27 = vmax.f32 %v6604_v10, 0.0 }
 0x383   : > { %v5487_v46 = vmax.f32 %v6605_v29, 0.0  ;;  %v5486_v40 = vmax.f32 %v6574_v30, 0.0 }
 0x384   : > { %v5545_v62 = vadd.f32 %v5485_v28, %v5481_v15  ;;  %v5488_v41 = vmax.f32 %v6606_v33, 0.0 }
 0x385   : > { %v5587_v43 = vadd.f32 %v5487_v46, %v5483_v24  ;;  %v5566_v36 = vadd.f32 %v5486_v40, %v5482_v59  ;;  %v4847_v61 = vpop.f32.mrb[64].mxu0 }
 0x386   : > { %v5608_v13 = vadd.f32 %v5488_v41, %v5484_v27  ;;  %v6575_v35 = vadd.f32 %v4847_v61, %v9256_v9  ;;  %v5412_v11 = vpop.f32.mrb[64].mxu1  ;;  %v4849_v42 = vpop.f32.mrb[65].mxu0 }
 0x387   : > { %v6607_v21 = vadd.f32 %v5412_v11, %v9258_v49  ;;  %v6576_v63 = vadd.f32 %v4849_v42, %v9260_v18  ;;  %v5414_v4 = vpop.f32.mrb[65].mxu1  ;;  %v4851_v12 = vpop.f32.mrb[66].mxu0 }
 0x388   : > { %v5489_v6 = vmax.f32 %v6575_v35, 0.0  ;;  %v6608_v22 = vadd.f32 %v5414_v4, %v9262_v34  ;;  %v6577_v45 = vadd.f32 %v4851_v12, %v9256_v9  ;;  %v5416_v25 = vpop.f32.mrb[66].mxu1  ;;  %v4853_v26 = vpop.f32.mrb[67].mxu0 }
 0x389   : > { %v5491_v8 = vmax.f32 %v6607_v21, 0.0  ;;  %v5490_v23 = vmax.f32 %v6576_v63, 0.0  ;;  %v6609_v31 = vadd.f32 %v5416_v25, %v9258_v49  ;;  %v6578_v57 = vadd.f32 %v4853_v26, %v9260_v18  ;;  %v5418_v52 = vpop.f32.mrb[67].mxu1 }
 0x38a   : > { %v5546_v19 = vadd.f32 %v5545_v62, %v5489_v6  ;;  %v5492_v53 = vmax.f32 %v6608_v22, 0.0  ;;  %v5493_v17 = vmax.f32 %v6577_v45, 0.0  ;;  %v6610_v50 = vadd.f32 %v5418_v52, %v9262_v34 }
 0x38b   : > { %v5588_v54 = vadd.f32 %v5587_v43, %v5491_v8  ;;  %v5567_v44 = vadd.f32 %v5566_v36, %v5490_v23  ;;  %v5495_v14 = vmax.f32 %v6609_v31, 0.0  ;;  %v5494_v16 = vmax.f32 %v6578_v57, 0.0 }
 0x38c   : > { %v5609_v32 = vadd.f32 %v5608_v13, %v5492_v53  ;;  %v5547_v48 = vadd.f32 %v5546_v19, %v5493_v17  ;;  %v5496_v51 = vmax.f32 %v6610_v50, 0.0 }
 0x38d   : > { %v5589_v3 = vadd.f32 %v5588_v54, %v5495_v14  ;;  %v5568_v47 = vadd.f32 %v5567_v44, %v5494_v16  ;;  %v4857_v55 = vpop.f32.mrb[68].mxu0 }
 0x38e   : > { %v5610_v56 = vadd.f32 %v5609_v32, %v5496_v51  ;;  %v6579_v2 = vadd.f32 %v4857_v55, %v9256_v9  ;;  %v5422_v58 = vpop.f32.mrb[68].mxu1  ;;  %v4859_v20 = vpop.f32.mrb[69].mxu0 }
 0x38f   : > { %v6611_v1 = vadd.f32 %v5422_v58, %v9258_v49  ;;  %v6580_v7 = vadd.f32 %v4859_v20, %v9260_v18  ;;  %v5424_v10 = vpop.f32.mrb[69].mxu1  ;;  %v4861_v60 = vpop.f32.mrb[70].mxu0 }
 0x390   : > { %v5497_v0 = vmax.f32 %v6579_v2, 0.0  ;;  %v6612_v5 = vadd.f32 %v5424_v10, %v9262_v34  ;;  %v6581_v29 = vadd.f32 %v4861_v60, %v9256_v9  ;;  %v5426_v30 = vpop.f32.mrb[70].mxu1  ;;  %v4863_v39 = vpop.f32.mrb[71].mxu0 }
 0x391   : > { %v5499_v15 = vmax.f32 %v6611_v1, 0.0  ;;  %v5498_v28 = vmax.f32 %v6580_v7, 0.0  ;;  %v6613_v33 = vadd.f32 %v5426_v30, %v9258_v49  ;;  %v6582_v24 = vadd.f32 %v4863_v39, %v9260_v18  ;;  %v5428_v59 = vpop.f32.mrb[71].mxu1 }
 0x392   : > { %v5548_v46 = vadd.f32 %v5547_v48, %v5497_v0  ;;  %v5500_v40 = vmax.f32 %v6612_v5, 0.0  ;;  %v5501_v27 = vmax.f32 %v6581_v29, 0.0  ;;  %v6614_v62 = vadd.f32 %v5428_v59, %v9262_v34 }
 0x393   : > { %v5590_v41 = vadd.f32 %v5589_v3, %v5499_v15  ;;  %v5569_v43 = vadd.f32 %v5568_v47, %v5498_v28  ;;  %v5503_v36 = vmax.f32 %v6613_v33, 0.0  ;;  %v5502_v61 = vmax.f32 %v6582_v24, 0.0 }
 0x394   : > { %v5611_v13 = vadd.f32 %v5610_v56, %v5500_v40  ;;  %v5549_v35 = vadd.f32 %v5548_v46, %v5501_v27  ;;  %v5504_v11 = vmax.f32 %v6614_v62, 0.0 }
 0x395   : > { %v5591_v42 = vadd.f32 %v5590_v41, %v5503_v36  ;;  %v5570_v21 = vadd.f32 %v5569_v43, %v5502_v61  ;;  %v4867_v63 = vpop.f32.mrb[72].mxu0 }
 0x396   : > { %v5612_v4 = vadd.f32 %v5611_v13, %v5504_v11  ;;  %v6583_v12 = vadd.f32 %v4867_v63, %v9256_v9  ;;  %v5432_v6 = vpop.f32.mrb[72].mxu1  ;;  %v4869_v22 = vpop.f32.mrb[73].mxu0 }
 0x397   : > { %v6615_v45 = vadd.f32 %v5432_v6, %v9258_v49  ;;  %v6584_v25 = vadd.f32 %v4869_v22, %v9260_v18  ;;  %v5434_v26 = vpop.f32.mrb[73].mxu1  ;;  %v4871_v8 = vpop.f32.mrb[74].mxu0 }
 0x398   : > { %v5505_v23 = vmax.f32 %v6583_v12, 0.0  ;;  %v6616_v31 = vadd.f32 %v5434_v26, %v9262_v34  ;;  %v6585_v57 = vadd.f32 %v4871_v8, %v9256_v9  ;;  %v5436_v52 = vpop.f32.mrb[74].mxu1  ;;  %v4873_v19 = vpop.f32.mrb[75].mxu0 }
 0x399   : > { %v5507_v53 = vmax.f32 %v6615_v45, 0.0  ;;  %v5506_v17 = vmax.f32 %v6584_v25, 0.0  ;;  %v6617_v50 = vadd.f32 %v5436_v52, %v9258_v49  ;;  %v6586_v54 = vadd.f32 %v4873_v19, %v9260_v18  ;;  %v5438_v44 = vpop.f32.mrb[75].mxu1 }
 0x39a   : > { %v5550_v14 = vadd.f32 %v5549_v35, %v5505_v23  ;;  %v5508_v16 = vmax.f32 %v6616_v31, 0.0  ;;  %v5509_v32 = vmax.f32 %v6585_v57, 0.0  ;;  %v6618_v48 = vadd.f32 %v5438_v44, %v9262_v34 }
 0x39b   : > { %v5592_v51 = vadd.f32 %v5591_v42, %v5507_v53  ;;  %v5571_v3 = vadd.f32 %v5570_v21, %v5506_v17  ;;  %v5511_v47 = vmax.f32 %v6617_v50, 0.0  ;;  %v5510_v55 = vmax.f32 %v6586_v54, 0.0 }
 0x39c   : > { %v5613_v56 = vadd.f32 %v5612_v4, %v5508_v16  ;;  %v5551_v2 = vadd.f32 %v5550_v14, %v5509_v32  ;;  %v5512_v58 = vmax.f32 %v6618_v48, 0.0 }
 0x39d   : > { %v5593_v20 = vadd.f32 %v5592_v51, %v5511_v47  ;;  %v5572_v1 = vadd.f32 %v5571_v3, %v5510_v55  ;;  %v4877_v7 = vpop.f32.mrb[76].mxu0 }
 0x39e   : > { %v5614_v10 = vadd.f32 %v5613_v56, %v5512_v58  ;;  %v6587_v60 = vadd.f32 %v4877_v7, %v9256_v9  ;;  %v5442_v0 = vpop.f32.mrb[76].mxu1  ;;  %v4879_v5 = vpop.f32.mrb[77].mxu0 }
 0x39f   : > { %v6619_v29 = vadd.f32 %v5442_v0, %v9258_v49  ;;  %v6588_v30 = vadd.f32 %v4879_v5, %v9260_v18  ;;  %v5444_v39 = vpop.f32.mrb[77].mxu1  ;;  %v4881_v15 = vpop.f32.mrb[78].mxu0 }
 0x3a0   : > { %v5513_v28 = vmax.f32 %v6587_v60, 0.0  ;;  %v6620_v33 = vadd.f32 %v5444_v39, %v9262_v34  ;;  %v6589_v24 = vadd.f32 %v4881_v15, %v9256_v9  ;;  %v5446_v59 = vpop.f32.mrb[78].mxu1  ;;  %v4883_v46 = vpop.f32.mrb[79].mxu0 }
 0x3a1   : > { %v5515_v40 = vmax.f32 %v6619_v29, 0.0  ;;  %v5514_v27 = vmax.f32 %v6588_v30, 0.0  ;;  %v6621_v62 = vadd.f32 %v5446_v59, %v9258_v49  ;;  %v6590_v41 = vadd.f32 %v4883_v46, %v9260_v18  ;;  %v5448_v43 = vpop.f32.mrb[79].mxu1 }
 0x3a2   : > { %v5552_v36 = vadd.f32 %v5551_v2, %v5513_v28  ;;  %v5516_v61 = vmax.f32 %v6620_v33, 0.0  ;;  %v5517_v13 = vmax.f32 %v6589_v24, 0.0  ;;  %v6622_v35 = vadd.f32 %v5448_v43, %v9262_v34 }
 0x3a3   : > { %v5594_v11 = vadd.f32 %v5593_v20, %v5515_v40  ;;  %v5573_v42 = vadd.f32 %v5572_v1, %v5514_v27  ;;  %v5519_v21 = vmax.f32 %v6621_v62, 0.0  ;;  %v5518_v63 = vmax.f32 %v6590_v41, 0.0 }
 0x3a4   : > { %v5615_v4 = vadd.f32 %v5614_v10, %v5516_v61  ;;  %v5553_v12 = vadd.f32 %v5552_v36, %v5517_v13  ;;  %v5520_v6 = vmax.f32 %v6622_v35, 0.0 }
 0x3a5   : > { %v5595_v22 = vadd.f32 %v5594_v11, %v5519_v21  ;;  %v5574_v45 = vadd.f32 %v5573_v42, %v5518_v63  ;;  %v4887_v25 = vpop.f32.mrb[80].mxu0 }
 0x3a6   : > { %v5616_v26 = vadd.f32 %v5615_v4, %v5520_v6  ;;  %v6591_v8 = vadd.f32 %v4887_v25, %v9256_v9  ;;  %v5452_v23 = vpop.f32.mrb[80].mxu1  ;;  %v4889_v31 = vpop.f32.mrb[81].mxu0 }
 0x3a7   : > { %v6623_v57 = vadd.f32 %v5452_v23, %v9258_v49  ;;  %v6592_v52 = vadd.f32 %v4889_v31, %v9260_v18  ;;  %v5454_v19 = vpop.f32.mrb[81].mxu1  ;;  %v4891_v53 = vpop.f32.mrb[82].mxu0 }
 0x3a8   : > { %v5521_v17 = vmax.f32 %v6591_v8, 0.0  ;;  %v6624_v50 = vadd.f32 %v5454_v19, %v9262_v34  ;;  %v6593_v54 = vadd.f32 %v4891_v53, %v9256_v9  ;;  %v5456_v44 = vpop.f32.mrb[82].mxu1  ;;  %v4893_v14 = vpop.f32.mrb[83].mxu0 }
 0x3a9   : > { %v5523_v16 = vmax.f32 %v6623_v57, 0.0  ;;  %v5522_v32 = vmax.f32 %v6592_v52, 0.0  ;;  %v6625_v48 = vadd.f32 %v5456_v44, %v9258_v49  ;;  %v6594_v51 = vadd.f32 %v4893_v14, %v9260_v18  ;;  %v5458_v3 = vpop.f32.mrb[83].mxu1 }
 0x3aa   : > { %v5554_v47 = vadd.f32 %v5553_v12, %v5521_v17  ;;  %v5524_v55 = vmax.f32 %v6624_v50, 0.0  ;;  %v5525_v56 = vmax.f32 %v6593_v54, 0.0  ;;  %v6626_v2 = vadd.f32 %v5458_v3, %v9262_v34 }
 0x3ab   : > { %v5596_v58 = vadd.f32 %v5595_v22, %v5523_v16  ;;  %v5575_v20 = vadd.f32 %v5574_v45, %v5522_v32  ;;  %v5527_v1 = vmax.f32 %v6625_v48, 0.0  ;;  %v5526_v7 = vmax.f32 %v6594_v51, 0.0 }
 0x3ac   : > { %v5617_v10 = vadd.f32 %v5616_v26, %v5524_v55  ;;  %v5555_v60 = vadd.f32 %v5554_v47, %v5525_v56  ;;  %v5528_v0 = vmax.f32 %v6626_v2, 0.0 }
 0x3ad   : > { %v5597_v5 = vadd.f32 %v5596_v58, %v5527_v1  ;;  %v5576_v29 = vadd.f32 %v5575_v20, %v5526_v7  ;;  %v4897_v30 = vpop.f32.mrb[84].mxu0 }
 0x3ae   : > { %v5618_v39 = vadd.f32 %v5617_v10, %v5528_v0  ;;  %v6595_v15 = vadd.f32 %v4897_v30, %v9256_v9  ;;  %v5462_v28 = vpop.f32.mrb[84].mxu1  ;;  %v4899_v33 = vpop.f32.mrb[85].mxu0 }
 0x3af   : > { %v6627_v24 = vadd.f32 %v5462_v28, %v9258_v49  ;;  %v6596_v59 = vadd.f32 %v4899_v33, %v9260_v18  ;;  %v5464_v46 = vpop.f32.mrb[85].mxu1  ;;  %v4901_v40 = vpop.f32.mrb[86].mxu0 }
 0x3b0   : > { %v5529_v27 = vmax.f32 %v6595_v15, 0.0  ;;  %v6628_v62 = vadd.f32 %v5464_v46, %v9262_v34  ;;  %v6597_v41 = vadd.f32 %v4901_v40, %v9256_v9  ;;  %v5466_v43 = vpop.f32.mrb[86].mxu1  ;;  %v4903_v36 = vpop.f32.mrb[87].mxu0 }
 0x3b1   : > { %v5531_v61 = vmax.f32 %v6627_v24, 0.0  ;;  %v5530_v13 = vmax.f32 %v6596_v59, 0.0  ;;  %v6629_v35 = vadd.f32 %v5466_v43, %v9258_v49  ;;  %v6598_v11 = vadd.f32 %v4903_v36, %v9260_v18  ;;  %v5468_v42 = vpop.f32.mrb[87].mxu1 }
 0x3b2   : > { %v5556_v21 = vadd.f32 %v5555_v60, %v5529_v27  ;;  %v5532_v63 = vmax.f32 %v6628_v62, 0.0  ;;  %v5533_v4 = vmax.f32 %v6597_v41, 0.0  ;;  %v6630_v12 = vadd.f32 %v5468_v42, %v9262_v34 }
 0x3b3   : > { %v5598_v6 = vadd.f32 %v5597_v5, %v5531_v61  ;;  %v5577_v22 = vadd.f32 %v5576_v29, %v5530_v13  ;;  %v5535_v45 = vmax.f32 %v6629_v35, 0.0  ;;  %v5534_v25 = vmax.f32 %v6598_v11, 0.0 }
 0x3b4   : > { %v5619_v26 = vadd.f32 %v5618_v39, %v5532_v63  ;;  %v5557_v8 = vadd.f32 %v5556_v21, %v5533_v4  ;;  %v5536_v23 = vmax.f32 %v6630_v12, 0.0  ;;  %v7830_v41 = vmov 1966171168  }
 0x3b5   : > { %v5599_v31 = vadd.f32 %v5598_v6, %v5535_v45  ;;  %v5578_v57 = vadd.f32 %v5577_v22, %v5534_v25  ;;  %v4907_v52 = vpop.f32.mrb[88].mxu0  ;;  %v5641_v43 = vunpack.c.l.s4 %v7830_v41 }
 0x3b6   : > { %v5620_v19 = vadd.f32 %v5619_v26, %v5536_v23  ;;  %v6599_v53 = vadd.f32 %v4907_v52, %v9256_v9  ;;  %v5472_v17 = vpop.f32.mrb[88].mxu1  ;;  %v4909_v50 = vpop.f32.mrb[89].mxu0 }
 0x3b7   : > { %v6631_v54 = vadd.f32 %v5472_v17, %v9258_v49  ;;  %v6600_v44 = vadd.f32 %v4909_v50, %v9260_v18  ;;  %v5474_v14 = vpop.f32.mrb[89].mxu1  ;;  %v4911_v16 = vpop.f32.mrb[90].mxu0  ;;  %v5642_v63 = vunpack.c.0.s8 %v5641_v43  ;;  %v5633_v50 = vld [vmem:[%s8047_s28] sm:$0xf] }
 0x3b8   : > { %v5537_v32 = vmax.f32 %v6599_v53, 0.0  ;;  %v6632_v48 = vadd.f32 %v5474_v14, %v9262_v34  ;;  %v6601_v51 = vadd.f32 %v4911_v16, %v9256_v9  ;;  %v5476_v3 = vpop.f32.mrb[90].mxu1  ;;  %v4913_v47 = vpop.f32.mrb[91].mxu0 }
 0x3b9   : > { %v5539_v55 = vmax.f32 %v6631_v54, 0.0  ;;  %v5538_v56 = vmax.f32 %v6600_v44, 0.0  ;;  %v6633_v2 = vadd.f32 %v5476_v3, %v9258_v49  ;;  %v6602_v58 = vadd.f32 %v4913_v47, %v9260_v18  ;;  %v5478_v20 = vpop.f32.mrb[91].mxu1 }
 0x3ba   : > { %v5558_v1 = vadd.f32 %v5557_v8, %v5537_v32  ;;  %v5540_v7 = vmax.f32 %v6632_v48, 0.0  ;;  %v5541_v10 = vmax.f32 %v6601_v51, 0.0  ;;  %v6634_v60 = vadd.f32 %v5478_v20, %v9262_v34 }
 0x3bb   : > { %v5600_v0 = vadd.f32 %v5599_v31, %v5539_v55  ;;  %v5579_v5 = vadd.f32 %v5578_v57, %v5538_v56  ;;  %v5543_v29 = vmax.f32 %v6633_v2, 0.0  ;;  %v5542_v30 = vmax.f32 %v6602_v58, 0.0 }
 0x3bc   : > { %v5621_v39 = vadd.f32 %v5620_v19, %v5540_v7  ;;  %v5559_v9 = vadd.f32 %v5558_v1, %v5541_v10  ;;  %v5544_v15 = vmax.f32 %v6634_v60, 0.0  ;;  %v5645_v23 = vsub.s32 %v5642_v63, %v8321_v38 }
 0x3bd   : > { %v5601_v28 = vadd.f32 %v5600_v0, %v5543_v29  ;;  %v5580_v33 = vadd.f32 %v5579_v5, %v5542_v30 }
 0x3be   : > { %v5560_v24 = vrot.slane %v5559_v9, 4  ;;  %v5622_v59 = vadd.f32 %v5621_v39, %v5544_v15 }
 0x3bf   : > { %v5602_v49 = vrot.slane %v5601_v28, 4  ;;  %v5581_v46 = vrot.slane %v5580_v33, 4 }
 0x3c0   : > { %v5561_v18 = vadd.f32 %v5560_v24, %v5559_v9  ;;  %v5623_v40 = vrot.slane %v5622_v59, 4 }
 0x3c1   : > { %v5603_v27 = vadd.f32 %v5602_v49, %v5601_v28  ;;  %v5582_v62 = vadd.f32 %v5581_v46, %v5580_v33 }
 0x3c2   : > { %v5562_v34 = vrot.slane %v5561_v18, 2  ;;  %v5624_v36 = vadd.f32 %v5623_v40, %v5622_v59 }
 0x3c3   : > { %v5604_v61 = vrot.slane %v5603_v27, 2  ;;  %v5583_v13 = vrot.slane %v5582_v62, 2 }
 0x3c4   : > { %v5563_v35 = vadd.f32 %v5562_v34, %v5561_v18  ;;  %v5625_v11 = vrot.slane %v5624_v36, 2 }
 0x3c5   : > { %v5605_v42 = vadd.f32 %v5604_v61, %v5603_v27  ;;  %v5584_v21 = vadd.f32 %v5583_v13, %v5582_v62 }
 0x3c6   : > { %v5564_v4 = vrot.slane %v5563_v35, 1  ;;  %v5626_v12 = vadd.f32 %v5625_v11, %v5624_v36 }
 0x3c7   : > { %v5606_v6 = vrot.slane %v5605_v42, 1  ;;  %v5585_v22 = vrot.slane %v5584_v21, 1 }
 0x3c8   : > { %v5565_v45 = vadd.f32 %v5564_v4, %v5563_v35  ;;  %v5627_v25 = vrot.slane %v5626_v12, 1 }
 0x3c9   : > { %v5607_v26 = vadd.f32 %v5606_v6, %v5605_v42  ;;  %v5586_v8 = vadd.f32 %v5585_v22, %v5584_v21 }
 0x3ca   : > { %v5628_v31 = vadd.f32 %v5627_v25, %v5626_v12 }
 0x3cb   : > { %v5638_v57 = vcombine.low %v5565_v45, %v5586_v8 }
 0x3cc   : > { %v5639_v52 = vcombine.low %v5607_v26, %v5628_v31 }
 0x3cd   : > { %v5646_v19 = vrot.slane %v5638_v57, %v5645_v23 }
 0x3ce   : > { %v5653_v53 = vrot.slane %v5639_v52, %v5645_v23 }
 0x3d0   : > { %v5654_v17 = vcombine.low %v5646_v19, %v5653_v53  ;;  %5672 = sbr.rel (%p6203_p7) target bundleno = 993 (0x3e1), region = 64 }
 0x3d2   : > { %v5661_v54 = vrot.slane %v5654_v17, %v5645_v23 }
 0x3d4   : > { %v5663_v44 = vadd.f32 %v5661_v54, %v5633_v50 }
 0x3d6   : > { %5668 = vst.msk [vmem:[%s8047_s28] sm:$0xf] %vm5666_vm10, %v5663_v44 }
 0x3dd   : > { %v5673_v14 = vld [vmem:[%s8047_s28] sm:$0xf] }
 0x3de   : > { %v5674_v16 = vmul.f32 0.00390625, %v5673_v14 }
 0x3e0   : > { %5675 = vst.msk [vmem:[%s8047_s28] sm:$0xf] %vm5666_vm10, %v5674_v16 }
 0x3e1 PF: > { %s6210_s14 = sshll.u32 %s7806_s22, 6  ;;  %s5691_s20 = sshll.u32 %s8047_s28, 4  ;;  %s5692_s20 = int_to_ptr.vmem [resolvable:$true] %s5691_s20 }
 0x3e2   : > { %s9339_s10 = scalar_lea.hbm %s9394_s5, %s6210_s14  ;;  %s5677_s21 = scalar_lea.sflag [#allocation5], %s282_s8 }
 0x3e3   : > { %s7712_s7 = scalar_lea.vmem %s5692_s20, 64  ;;  %p9521_p11 = scmp.ne.s32.totalorder %s9409_s6, 0 }
 0x3e4   : > { %p7713_p8 = scmp.ne.s32.totalorder %s5692_s20, %s7712_s7  ;;  %s7831_s24 = smov [#allocation11]  }
 0x3e5   : > { %s7716_s29 = sshll.u32 %s7831_s24, 4  ;;  %s7717_s29 = int_to_ptr.vmem [resolvable:$false] %s7716_s29 }
 0x3e6   : > { %p7714_p12 = pnand %p7713_p8, %p9521_p11  ;;  %s7718_s16 = scalar_lea.vmem %s7717_s29, 128 }
 0x3e7   : > { %p7719_p9 = scmp.lt.s32.totalorder %s5692_s20, %s7717_s29  ;;  %p7720_p0 = scmp.lt.s32.totalorder %s7718_s16, %s7712_s7 }
 0x3e8   : > { %p7715_p3 = pneg %p7714_p12 }
 0x3e9   : > { %p7721_p2 = por %p7720_p0, %p7719_p9 }
 0x3eb   : > { %p7722_p10 = pnand %p7721_p2, %p7715_p3 }
 0x3ed   : > { %7725 = shalt.err (!%p7722_p10)
}
 0x3ee   : > { %s7726_s22 = scalar_lea.hbm %s9339_s10, 64  ;;  %s7730_s27 = scalar_lea.hbm %s9394_s5, 128 }
 0x3ef   : > { %p7727_p13 = scmp.ne.s32.totalorder %s9339_s10, %s7726_s22  ;;  %p7731_p5 = scmp.lt.u32.totalorder %s9339_s10, %s9394_s5 }
 0x3f0   : > { %p7732_p6 = scmp.lt.u32.totalorder %s7730_s27, %s7726_s22  ;;  %p7734_p8 = scmp.lt.u32.totalorder %s7726_s22, %s9339_s10 }
 0x3f1   : > { %p7728_p1 = pnand %p7727_p13, %p9521_p11 }
 0x3f2   : > { %p7733_p7 = por %p7732_p6, %p7731_p5 }
 0x3f3   : > { %p7729_p4 = pneg %p7728_p1 }
 0x3f4   : > { %p7735_p12 = por %p7734_p8, %p7733_p7 }
 0x3f6   : > { %p7736_p3 = pnand %p7735_p12, %p7729_p4 }
 0x3f8   : > { %7739 = shalt.err (!%p7736_p3)
}
 0x3f9   : > { %6938 = dma.vmem_to_hbm [thread:$0]  (%p9521_p11), %s5692_s20, 64, %s9339_s10, %s5677_s21  }
 0x3fa PF: > { %s9522_s11 = sld [smem:[#allocation21_spill]]  ;;  %p6965_p9 = scmp.ge.s32.totalorder %s7818_s25, 2 }
 0x3fb   : > { %s5703_s15 = sand.u32 1, %s7790_s18  }
 0x3fc   : > { %s5704_s12 = scalar_lea.sflag [#allocation5], %s5703_s15 }
 0x400   : > { %p9523_p0 = scmp.ne.s32.totalorder %s9522_s11, 0 }
 0x402   : > { %p6954_p2 = pnand %p6965_p9, %p9523_p0 }
 0x404   : > { %7785 = dma.done.wait (!%p6954_p2), %s5704_s12, 64  }
 0x405   : > { %7787 = vsyncadd (!%p6954_p2), %s5704_s12, 4294967232  ;;  %s21_s25 = sadd.s32 1, %s7818_s25   ;;  %s9524_s30 = sld [smem:[#allocation16_spill]] }
 0x406   : > { %p18_p10 = scmp.ge.s32.totalorder %s21_s25, 6   ;;  %s9525_s20 = sld [smem:[#allocation22_spill]] }
 0x407   : > { %s9526_s21 = sld [smem:[#allocation17_spill]]  ;;  %s9527_s22 = sld [smem:[#allocation18_spill]] }
 0x408   : > { %s9528_s23 = sld [smem:[#allocation19_spill]]  ;;  %s9529_s24 = sld [smem:[#allocation20_spill]] }
 0x409   : > { %s9530_s18 = smov %s7794_s19  ;;  %20 = sbr.rel (!%p18_p10) target bundleno = 10 (0xa), region = 112 }
 0x40b   : > { %s9531_s19 = smov %s9524_s30 }
 0x410   :  { %5709 = vsyncpa [#allocation4], 1 }
 0x411   :  { %5711 = vsyncpa [#allocation4 + $0x1], 1 }
 0x412   :  { %5712 = vsyncpa [#allocation7], 1 }
 0x413   :  { %5713 = vsyncpa [#allocation10], 1 }
 0x414   :  { %5714 = vsyncpa [#allocation5], 1 }
 0x415   :  { %5716 = vsyncpa [#allocation5 + $0x1], 1 }

</bundles_post_ra>
